<compile_context>
chip_gen: v7x
topology: tpu7x:2x2x1
jax: 0.10.0
libtpu: 0.0.40
codegen_flags: <defaults>
</compile_context>

<pallas_src>
import functools

import jax
import jax.numpy as jnp
from jax.experimental import pallas as pl
from jax.experimental.pallas import tpu as pltpu

ACT_DTYPE = jnp.bfloat16  # inter-layer activation storage dtype


# ---------------- Pallas kernels ----------------

def _conv_bn_kernel(a_ref, w_ref, g_ref, b_ref, o_ref, *, relu, eps):
    """[M,K]@[K,C] (MXU, f32 acc) -> train-mode BN -> (ReLU) -> single store."""
    y = jnp.dot(a_ref[...], w_ref[...], preferred_element_type=jnp.float32)
    mean = jnp.mean(y, axis=0, keepdims=True)          # [1, C]
    yc = y - mean
    var = jnp.mean(yc * yc, axis=0, keepdims=True)     # biased var (PyTorch train)
    scale = jax.lax.rsqrt(var + eps) * g_ref[...]
    out = yc * scale + b_ref[...]
    if relu:
        out = jnp.maximum(out, 0.0)
    o_ref[...] = out.astype(o_ref.dtype)


def _conv_bn_add_relu_kernel(a_ref, w_ref, res_ref, g_ref, b_ref, o_ref, *, eps):
    """Same as above, plus residual add before the final ReLU (BasicBlock tail)."""
    y = jnp.dot(a_ref[...], w_ref[...], preferred_element_type=jnp.float32)
    mean = jnp.mean(y, axis=0, keepdims=True)
    yc = y - mean
    var = jnp.mean(yc * yc, axis=0, keepdims=True)
    scale = jax.lax.rsqrt(var + eps) * g_ref[...]
    out = yc * scale + b_ref[...] + res_ref[...].astype(jnp.float32)
    o_ref[...] = jnp.maximum(out, 0.0).astype(o_ref.dtype)


def _tail_kernel(x_ref, m1_ref, b1_ref, w2_ref, b2_ref, o_ref):
    """DC(1x1) + view(-1,64) + Linear folded into one matmul; ReLU; Linear(64,1)."""
    h = jnp.dot(x_ref[...], m1_ref[...], preferred_element_type=jnp.float32)
    h = jnp.maximum(h + b1_ref[...], 0.0)                               # [N, 64]
    s = jnp.sum(h * w2_ref[...], axis=-1, keepdims=True) + b2_ref[...]  # [N, 1]
    o_ref[...] = s


# ---------------- Pallas wrappers ----------------

def fused_conv_bn(patches, wmat, gamma, beta, *, relu=True, residual=None,
                  eps=1e-5):
    """One pallas_call per conv layer: matmul + BN(+residual)(+ReLU)."""
    M, K = patches.shape
    K2, C = wmat.shape
    assert K == K2
    a = patches.astype(ACT_DTYPE)
    w = wmat.astype(ACT_DTYPE)
    g = gamma.reshape(1, C).astype(jnp.float32)
    b = beta.reshape(1, C).astype(jnp.float32)
    cp = pltpu.CompilerParams(dimension_semantics=("arbitrary",))

    if residual is None:
        kern = functools.partial(_conv_bn_kernel, relu=relu, eps=eps)
        in_specs = [
            pl.BlockSpec((M, K), lambda i: (0, 0)),
            pl.BlockSpec((K, C), lambda i: (0, 0)),
            pl.BlockSpec((1, C), lambda i: (0, 0)),
            pl.BlockSpec((1, C), lambda i: (0, 0)),
        ]
        args = (a, w, g, b)
    else:
        kern = functools.partial(_conv_bn_add_relu_kernel, eps=eps)
        in_specs = [
            pl.BlockSpec((M, K), lambda i: (0, 0)),
            pl.BlockSpec((K, C), lambda i: (0, 0)),
            pl.BlockSpec((M, C), lambda i: (0, 0)),
            pl.BlockSpec((1, C), lambda i: (0, 0)),
            pl.BlockSpec((1, C), lambda i: (0, 0)),
        ]
        args = (a, w, residual.astype(ACT_DTYPE), g, b)

    return pl.pallas_call(
        kern,
        out_shape=jax.ShapeDtypeStruct((M, C), ACT_DTYPE),
        grid=(1,),
        in_specs=in_specs,
        out_specs=pl.BlockSpec((M, C), lambda i: (0, 0)),
        compiler_params=cp,
    )(*args)


def fused_tail(x_nhwc, dc_w, dc_b, w1, b1, w2, b2):
    """DC 1x1 conv -> view(-1,64) -> Linear+ReLU -> Linear, as ONE pallas_call."""
    N, H, W, C = x_nhwc.shape
    P = H * W
    fin, hidden = w1.shape
    assert P == fin, "view(-1, 64) requires H*W == 64 pixels per image"
    xflat = x_nhwc.reshape(N, P * C).astype(ACT_DTYPE)          # [N, P*C]
    dcw = dc_w.reshape(C).astype(jnp.float32)                    # [C]
    # feats[n, j] = sum_c x[n, j, c] * dcw[c] + dc_b
    # h = feats @ w1 + b1  ==  xflat @ m1 + (b1 + dc_b * sum_j w1[j, :])
    m1 = (w1.astype(jnp.float32)[:, None, :] * dcw[None, :, None]
          ).reshape(P * C, hidden).astype(ACT_DTYPE)             # [P*C, hidden]
    b1eff = (b1.astype(jnp.float32)
             + dc_b.astype(jnp.float32) * jnp.sum(w1.astype(jnp.float32), axis=0)
             ).reshape(1, hidden)
    w2row = w2.reshape(1, hidden).astype(jnp.float32)
    b2r = b2.reshape(1, 1).astype(jnp.float32)

    return pl.pallas_call(
        _tail_kernel,
        out_shape=jax.ShapeDtypeStruct((N, 1), jnp.float32),
        grid=(1,),
        in_specs=[
            pl.BlockSpec((N, P * C), lambda i: (0, 0)),
            pl.BlockSpec((P * C, hidden), lambda i: (0, 0)),
            pl.BlockSpec((1, hidden), lambda i: (0, 0)),
            pl.BlockSpec((1, hidden), lambda i: (0, 0)),
            pl.BlockSpec((1, 1), lambda i: (0, 0)),
        ],
        out_specs=pl.BlockSpec((N, 1), lambda i: (0, 0)),
        compiler_params=pltpu.CompilerParams(
            dimension_semantics=("arbitrary",)),
    )(xflat, m1, b1eff, w2row, b2r)


# ---------------- plain-JAX glue ----------------

def im2col(x, kh, kw, stride, pad):
    """x:[N,H,W,C] -> patches:[N*Ho*Wo, kh*kw*C] (row order n,h,w; col order i,j,c)."""
    x = jnp.pad(x, ((0, 0), (pad, pad), (pad, pad), (0, 0)))
    N, Hp, Wp, C = x.shape
    Ho = (Hp - kh) // stride + 1
    Wo = (Wp - kw) // stride + 1
    cols = []
    for i in range(kh):
        for j in range(kw):
            cols.append(x[:, i:i + stride * Ho:stride, j:j + stride * Wo:stride, :])
    patches = jnp.stack(cols, axis=3)                  # [N, Ho, Wo, kh*kw, C]
    return patches.reshape(N * Ho * Wo, kh * kw * C), (N, Ho, Wo)


def conv_w_to_mat(w_oihw):
    """Conv weight [Cout,Cin,kh,kw] -> [kh*kw*Cin, Cout] matching im2col col order."""
    Cout, Cin, kh, kw = w_oihw.shape
    return jnp.transpose(w_oihw, (2, 3, 1, 0)).reshape(kh * kw * Cin, Cout)


def maxpool_3x3_s2_p1(x_nhwc):
    neg_inf = jnp.array(-jnp.inf, dtype=x_nhwc.dtype)  # matches PyTorch -inf padding
    return jax.lax.reduce_window(
        x_nhwc, neg_inf, jax.lax.max,
        window_dimensions=(1, 3, 3, 1),
        window_strides=(1, 2, 2, 1),
        padding=((0, 0), (1, 1), (1, 1), (0, 0)))


def basic_block(x_nhwc, p):
    N, H, W, C = x_nhwc.shape
    identity = x_nhwc.reshape(N * H * W, C)
    patches, _ = im2col(x_nhwc, 3, 3, 1, 1)
    out = fused_conv_bn(patches, conv_w_to_mat(p['conv1_w']),
                        p['bn1_g'], p['bn1_b'], relu=True)
    out = out.reshape(N, H, W, C)
    patches, _ = im2col(out, 3, 3, 1, 1)
    out = fused_conv_bn(patches, conv_w_to_mat(p['conv2_w']),
                        p['bn2_g'], p['bn2_b'], residual=identity)  # add, then ReLU
    return out.reshape(N, H, W, C)


def base_model_forward(params, imgs_nchw):
    x = jnp.transpose(imgs_nchw, (0, 2, 3, 1)).astype(ACT_DTYPE)   # NCHW -> NHWC
    # stem: conv7x7/s2 (no bias) -> BN -> ReLU -> maxpool3x3/s2
    patches, (N, Ho, Wo) = im2col(x, 7, 7, 2, 3)
    out = fused_conv_bn(patches, conv_w_to_mat(params['conv1_w']),
                        params['bn1_g'], params['bn1_b'], relu=True)
    out = maxpool_3x3_s2_p1(out.reshape(N, Ho, Wo, 64))
    # layer1: two BasicBlocks (64 -> 64, stride 1)
    out = basic_block(out, params['block1'])
    out = basic_block(out, params['block2'])
    # DC 1x1 conv -> view(-1,64) -> Linear(64,64)+ReLU -> Linear(64,1), fused
    return fused_tail(out, params['dc_w'], params['dc_b'],
                      params['mlp_w1'], params['mlp_b1'],
                      params['mlp_w2'], params['mlp_b2'])


# NOTE: self.embeds / Weights_Generator_MLP are unused in forward() -> not built.
def init_params(key):
    ks = jax.random.split(key, 16)
    w = lambda k, shape, s=0.05: jax.random.normal(k, shape, jnp.float32) * s
    ones = lambda n: jnp.ones((n,), jnp.float32)
    zeros = lambda n: jnp.zeros((n,), jnp.float32)

    def block(k1, k2):
        return {
            'conv1_w': w(k1, (64, 64, 3, 3)),
            'bn1_g': ones(64), 'bn1_b': zeros(64),
            'conv2_w': w(k2, (64, 64, 3, 3)),
            'bn2_g': ones(64), 'bn2_b': zeros(64),
        }

    return {
        'conv1_w': w(ks[0], (64, 3, 7, 7)),
        'bn1_g': ones(64), 'bn1_b': zeros(64),
        'block1': block(ks[1], ks[2]),
        'block2': block(ks[3], ks[4]),
        'dc_w': w(ks[5], (64, 1)),            # Conv2d(64,1,1) weight, stored [Cin, Cout]
        'dc_b': w(ks[6], (1,)),
        'mlp_w1': w(ks[7], (64, 64)),         # Linear weights stored [in, out]
        'mlp_b1': w(ks[8], (64,)),
        'mlp_w2': w(ks[9], (64, 1)),
        'mlp_b2': w(ks[10], (1,)),
    }


if __name__ == "__main__":
    key = jax.random.PRNGKey(0)
    pkey, xkey = jax.random.split(key)
    params = init_params(pkey)
    # imgs: NCHW like the PyTorch module; 32x32 -> 8x8 after the stem so view(-1,64) works
    imgs = jax.random.normal(xkey, (2, 3, 32, 32), jnp.float32)
    fwd = jax.jit(base_model_forward)
    out = fwd(params, imgs)
    jax.block_until_ready(out)
    assert out.shape == (2, 1) and out.dtype == jnp.float32
    print("KERNEL_OK")
</pallas_src>

<mosaic_0001>
module attributes {stable_mosaic.version = 11 : i64} {
  func.func @_conv_bn_kernel(%arg0: i32, %arg1: memref<512x147xbf16, #tpu.memory_space<vmem>>, %arg2: memref<147x64xbf16, #tpu.memory_space<vmem>>, %arg3: memref<1x64xf32, #tpu.memory_space<vmem>>, %arg4: memref<1x64xf32, #tpu.memory_space<vmem>>, %arg5: memref<512x64xbf16, #tpu.memory_space<vmem>>) attributes {dimension_semantics = [#tpu.dimension_semantics<arbitrary>], iteration_bounds = array<i64: 1>, scalar_prefetch = 0 : i64, scratch_operands = 0 : i64, tpu.core_type = #tpu.core_type<tc>, window_params = [{pipeline_mode = #tpu.pipeline_mode<synchronous>, transform_indices = @transform_0, window_bounds = array<i64: 512, 147>}, {pipeline_mode = #tpu.pipeline_mode<synchronous>, transform_indices = @transform_1, window_bounds = array<i64: 147, 64>}, {pipeline_mode = #tpu.pipeline_mode<synchronous>, transform_indices = @transform_2, window_bounds = array<i64: 1, 64>}, {pipeline_mode = #tpu.pipeline_mode<synchronous>, transform_indices = @transform_3, window_bounds = array<i64: 1, 64>}, {pipeline_mode = #tpu.pipeline_mode<synchronous>, transform_indices = @transform_4, window_bounds = array<i64: 512, 64>}]} {
    %c0 = arith.constant 0 : index
    %c0_0 = arith.constant 0 : index
    %0 = vector.load %arg1[%c0, %c0_0] : memref<512x147xbf16, #tpu.memory_space<vmem>>, vector<512x147xbf16>
    %c0_1 = arith.constant 0 : index
    %c0_2 = arith.constant 0 : index
    %1 = vector.load %arg2[%c0_1, %c0_2] : memref<147x64xbf16, #tpu.memory_space<vmem>>, vector<147x64xbf16>
    %cst = arith.constant dense<0.000000e+00> : vector<512x64xf32>
    %2 = tpu.matmul %0, %1, %cst {dimension_numbers = #tpu.dot_dimension_numbers<[1], [0], [0], [1], [0, 0, 1, 1], [], []>} : vector<512x147xbf16>, vector<147x64xbf16>, vector<512x64xf32> -> vector<512x64xf32>
    %cst_3 = arith.constant dense<0.000000e+00> : vector<64xf32>
    %3 = vector.multi_reduction <add>, %2, %cst_3 [0] : vector<512x64xf32> to vector<64xf32>
    %4 = vector.shape_cast %3 : vector<64xf32> to vector<1x64xf32>
    %cst_4 = arith.constant 5.120000e+02 : f32
    %5 = vector.broadcast %cst_4 : f32 to vector<1x64xf32>
    %6 = arith.divf %4, %5 : vector<1x64xf32>
    %7 = vector.broadcast %6 : vector<1x64xf32> to vector<512x64xf32>
    %8 = arith.subf %2, %7 : vector<512x64xf32>
    %9 = arith.mulf %8, %8 : vector<512x64xf32>
    %cst_5 = arith.constant dense<0.000000e+00> : vector<64xf32>
    %10 = vector.multi_reduction <add>, %9, %cst_5 [0] : vector<512x64xf32> to vector<64xf32>
    %11 = vector.shape_cast %10 : vector<64xf32> to vector<1x64xf32>
    %cst_6 = arith.constant 5.120000e+02 : f32
    %12 = vector.broadcast %cst_6 : f32 to vector<1x64xf32>
    %13 = arith.divf %11, %12 : vector<1x64xf32>
    %cst_7 = arith.constant 9.99999974E-6 : f32
    %14 = vector.broadcast %cst_7 : f32 to vector<1x64xf32>
    %15 = arith.addf %13, %14 : vector<1x64xf32>
    %16 = math.rsqrt %15 : vector<1x64xf32>
    %c0_8 = arith.constant 0 : index
    %c0_9 = arith.constant 0 : index
    %17 = vector.load %arg3[%c0_8, %c0_9] : memref<1x64xf32, #tpu.memory_space<vmem>>, vector<1x64xf32>
    %18 = arith.mulf %16, %17 : vector<1x64xf32>
    %19 = vector.broadcast %18 : vector<1x64xf32> to vector<512x64xf32>
    %20 = arith.mulf %8, %19 : vector<512x64xf32>
    %c0_10 = arith.constant 0 : index
    %c0_11 = arith.constant 0 : index
    %21 = vector.load %arg4[%c0_10, %c0_11] : memref<1x64xf32, #tpu.memory_space<vmem>>, vector<1x64xf32>
    %22 = vector.broadcast %21 : vector<1x64xf32> to vector<512x64xf32>
    %23 = arith.addf %20, %22 : vector<512x64xf32>
    %cst_12 = arith.constant 0.000000e+00 : f32
    %24 = vector.broadcast %cst_12 : f32 to vector<512x64xf32>
    %25 = arith.maximumf %23, %24 : vector<512x64xf32>
    %26 = arith.truncf %25 : vector<512x64xf32> to vector<512x64xbf16>
    %c0_13 = arith.constant 0 : index
    %c0_14 = arith.constant 0 : index
    %27 = vector.load %arg5[%c0_13, %c0_14] : memref<512x64xbf16, #tpu.memory_space<vmem>>, vector<512x64xbf16>
    tpu.vector_store %arg5[%c0_13, %c0_14], %26 {strides = array<i32>} : memref<512x64xbf16, #tpu.memory_space<vmem>>, vector<512x64xbf16>,
    return
  }
  func.func @transform_0(%arg0: i32) -> (i32, i32) {
    %c0_i32 = arith.constant 0 : i32
    %c0_i32_0 = arith.constant 0 : i32
    %c0_i32_1 = arith.constant 0 : i32
    return %c0_i32, %c0_i32_0 : i32, i32
  }
  func.func @transform_1(%arg0: i32) -> (i32, i32) {
    %c0_i32 = arith.constant 0 : i32
    %c0_i32_0 = arith.constant 0 : i32
    %c0_i32_1 = arith.constant 0 : i32
    return %c0_i32, %c0_i32_0 : i32, i32
  }
  func.func @transform_2(%arg0: i32) -> (i32, i32) {
    %c0_i32 = arith.constant 0 : i32
    %c0_i32_0 = arith.constant 0 : i32
    %c0_i32_1 = arith.constant 0 : i32
    return %c0_i32, %c0_i32_0 : i32, i32
  }
  func.func @transform_3(%arg0: i32) -> (i32, i32) {
    %c0_i32 = arith.constant 0 : i32
    %c0_i32_0 = arith.constant 0 : i32
    %c0_i32_1 = arith.constant 0 : i32
    return %c0_i32, %c0_i32_0 : i32, i32
  }
  func.func @transform_4(%arg0: i32) -> (i32, i32) {
    %c0_i32 = arith.constant 0 : i32
    %c0_i32_0 = arith.constant 0 : i32
    %c0_i32_1 = arith.constant 0 : i32
    return %c0_i32, %c0_i32_0 : i32, i32
  }
}

module attributes {stable_mosaic.version = 11 : i64} {
  func.func @_conv_bn_kernel(%arg0: i32, %arg1: memref<128x576xbf16, #tpu.memory_space<vmem>>, %arg2: memref<576x64xbf16, #tpu.memory_space<vmem>>, %arg3: memref<1x64xf32, #tpu.memory_space<vmem>>, %arg4: memref<1x64xf32, #tpu.memory_space<vmem>>, %arg5: memref<128x64xbf16, #tpu.memory_space<vmem>>) attributes {dimension_semantics = [#tpu.dimension_semantics<arbitrary>], iteration_bounds = array<i64: 1>, scalar_prefetch = 0 : i64, scratch_operands = 0 : i64, tpu.core_type = #tpu.core_type<tc>, window_params = [{pipeline_mode = #tpu.pipeline_mode<synchronous>, transform_indices = @transform_0, window_bounds = array<i64: 128, 576>}, {pipeline_mode = #tpu.pipeline_mode<synchronous>, transform_indices = @transform_1, window_bounds = array<i64: 576, 64>}, {pipeline_mode = #tpu.pipeline_mode<synchronous>, transform_indices = @transform_2, window_bounds = array<i64: 1, 64>}, {pipeline_mode = #tpu.pipeline_mode<synchronous>, transform_indices = @transform_3, window_bounds = array<i64: 1, 64>}, {pipeline_mode = #tpu.pipeline_mode<synchronous>, transform_indices = @transform_4, window_bounds = array<i64: 128, 64>}]} {
    %c0 = arith.constant 0 : index
    %c0_0 = arith.constant 0 : index
    %0 = vector.load %arg1[%c0, %c0_0] : memref<128x576xbf16, #tpu.memory_space<vmem>>, vector<128x576xbf16>
    %c0_1 = arith.constant 0 : index
    %c0_2 = arith.constant 0 : index
    %1 = vector.load %arg2[%c0_1, %c0_2] : memref<576x64xbf16, #tpu.memory_space<vmem>>, vector<576x64xbf16>
    %cst = arith.constant dense<0.000000e+00> : vector<128x64xf32>
    %2 = tpu.matmul %0, %1, %cst {dimension_numbers = #tpu.dot_dimension_numbers<[1], [0], [0], [1], [0, 0, 1, 1], [], []>} : vector<128x576xbf16>, vector<576x64xbf16>, vector<128x64xf32> -> vector<128x64xf32>
    %cst_3 = arith.constant dense<0.000000e+00> : vector<64xf32>
    %3 = vector.multi_reduction <add>, %2, %cst_3 [0] : vector<128x64xf32> to vector<64xf32>
    %4 = vector.shape_cast %3 : vector<64xf32> to vector<1x64xf32>
    %cst_4 = arith.constant 1.280000e+02 : f32
    %5 = vector.broadcast %cst_4 : f32 to vector<1x64xf32>
    %6 = arith.divf %4, %5 : vector<1x64xf32>
    %7 = vector.broadcast %6 : vector<1x64xf32> to vector<128x64xf32>
    %8 = arith.subf %2, %7 : vector<128x64xf32>
    %9 = arith.mulf %8, %8 : vector<128x64xf32>
    %cst_5 = arith.constant dense<0.000000e+00> : vector<64xf32>
    %10 = vector.multi_reduction <add>, %9, %cst_5 [0] : vector<128x64xf32> to vector<64xf32>
    %11 = vector.shape_cast %10 : vector<64xf32> to vector<1x64xf32>
    %cst_6 = arith.constant 1.280000e+02 : f32
    %12 = vector.broadcast %cst_6 : f32 to vector<1x64xf32>
    %13 = arith.divf %11, %12 : vector<1x64xf32>
    %cst_7 = arith.constant 9.99999974E-6 : f32
    %14 = vector.broadcast %cst_7 : f32 to vector<1x64xf32>
    %15 = arith.addf %13, %14 : vector<1x64xf32>
    %16 = math.rsqrt %15 : vector<1x64xf32>
    %c0_8 = arith.constant 0 : index
    %c0_9 = arith.constant 0 : index
    %17 = vector.load %arg3[%c0_8, %c0_9] : memref<1x64xf32, #tpu.memory_space<vmem>>, vector<1x64xf32>
    %18 = arith.mulf %16, %17 : vector<1x64xf32>
    %19 = vector.broadcast %18 : vector<1x64xf32> to vector<128x64xf32>
    %20 = arith.mulf %8, %19 : vector<128x64xf32>
    %c0_10 = arith.constant 0 : index
    %c0_11 = arith.constant 0 : index
    %21 = vector.load %arg4[%c0_10, %c0_11] : memref<1x64xf32, #tpu.memory_space<vmem>>, vector<1x64xf32>
    %22 = vector.broadcast %21 : vector<1x64xf32> to vector<128x64xf32>
    %23 = arith.addf %20, %22 : vector<128x64xf32>
    %cst_12 = arith.constant 0.000000e+00 : f32
    %24 = vector.broadcast %cst_12 : f32 to vector<128x64xf32>
    %25 = arith.maximumf %23, %24 : vector<128x64xf32>
    %26 = arith.truncf %25 : vector<128x64xf32> to vector<128x64xbf16>
    %c0_13 = arith.constant 0 : index
    %c0_14 = arith.constant 0 : index
    %27 = vector.load %arg5[%c0_13, %c0_14] : memref<128x64xbf16, #tpu.memory_space<vmem>>, vector<128x64xbf16>
    tpu.vector_store %arg5[%c0_13, %c0_14], %26 {strides = array<i32>} : memref<128x64xbf16, #tpu.memory_space<vmem>>, vector<128x64xbf16>,
    return
  }
  func.func @transform_0(%arg0: i32) -> (i32, i32) {
    %c0_i32 = arith.constant 0 : i32
    %c0_i32_0 = arith.constant 0 : i32
    %c0_i32_1 = arith.constant 0 : i32
    return %c0_i32, %c0_i32_0 : i32, i32
  }
  func.func @transform_1(%arg0: i32) -> (i32, i32) {
    %c0_i32 = arith.constant 0 : i32
    %c0_i32_0 = arith.constant 0 : i32
    %c0_i32_1 = arith.constant 0 : i32
    return %c0_i32, %c0_i32_0 : i32, i32
  }
  func.func @transform_2(%arg0: i32) -> (i32, i32) {
    %c0_i32 = arith.constant 0 : i32
    %c0_i32_0 = arith.constant 0 : i32
    %c0_i32_1 = arith.constant 0 : i32
    return %c0_i32, %c0_i32_0 : i32, i32
  }
  func.func @transform_3(%arg0: i32) -> (i32, i32) {
    %c0_i32 = arith.constant 0 : i32
    %c0_i32_0 = arith.constant 0 : i32
    %c0_i32_1 = arith.constant 0 : i32
    return %c0_i32, %c0_i32_0 : i32, i32
  }
  func.func @transform_4(%arg0: i32) -> (i32, i32) {
    %c0_i32 = arith.constant 0 : i32
    %c0_i32_0 = arith.constant 0 : i32
    %c0_i32_1 = arith.constant 0 : i32
    return %c0_i32, %c0_i32_0 : i32, i32
  }
}

module attributes {stable_mosaic.version = 11 : i64} {
  func.func @_conv_bn_add_relu_kernel(%arg0: i32, %arg1: memref<128x576xbf16, #tpu.memory_space<vmem>>, %arg2: memref<576x64xbf16, #tpu.memory_space<vmem>>, %arg3: memref<128x64xbf16, #tpu.memory_space<vmem>>, %arg4: memref<1x64xf32, #tpu.memory_space<vmem>>, %arg5: memref<1x64xf32, #tpu.memory_space<vmem>>, %arg6: memref<128x64xbf16, #tpu.memory_space<vmem>>) attributes {dimension_semantics = [#tpu.dimension_semantics<arbitrary>], iteration_bounds = array<i64: 1>, scalar_prefetch = 0 : i64, scratch_operands = 0 : i64, tpu.core_type = #tpu.core_type<tc>, window_params = [{pipeline_mode = #tpu.pipeline_mode<synchronous>, transform_indices = @transform_0, window_bounds = array<i64: 128, 576>}, {pipeline_mode = #tpu.pipeline_mode<synchronous>, transform_indices = @transform_1, window_bounds = array<i64: 576, 64>}, {pipeline_mode = #tpu.pipeline_mode<synchronous>, transform_indices = @transform_2, window_bounds = array<i64: 128, 64>}, {pipeline_mode = #tpu.pipeline_mode<synchronous>, transform_indices = @transform_3, window_bounds = array<i64: 1, 64>}, {pipeline_mode = #tpu.pipeline_mode<synchronous>, transform_indices = @transform_4, window_bounds = array<i64: 1, 64>}, {pipeline_mode = #tpu.pipeline_mode<synchronous>, transform_indices = @transform_5, window_bounds = array<i64: 128, 64>}]} {
    %c0 = arith.constant 0 : index
    %c0_0 = arith.constant 0 : index
    %0 = vector.load %arg1[%c0, %c0_0] : memref<128x576xbf16, #tpu.memory_space<vmem>>, vector<128x576xbf16>
    %c0_1 = arith.constant 0 : index
    %c0_2 = arith.constant 0 : index
    %1 = vector.load %arg2[%c0_1, %c0_2] : memref<576x64xbf16, #tpu.memory_space<vmem>>, vector<576x64xbf16>
    %cst = arith.constant dense<0.000000e+00> : vector<128x64xf32>
    %2 = tpu.matmul %0, %1, %cst {dimension_numbers = #tpu.dot_dimension_numbers<[1], [0], [0], [1], [0, 0, 1, 1], [], []>} : vector<128x576xbf16>, vector<576x64xbf16>, vector<128x64xf32> -> vector<128x64xf32>
    %cst_3 = arith.constant dense<0.000000e+00> : vector<64xf32>
    %3 = vector.multi_reduction <add>, %2, %cst_3 [0] : vector<128x64xf32> to vector<64xf32>
    %4 = vector.shape_cast %3 : vector<64xf32> to vector<1x64xf32>
    %cst_4 = arith.constant 1.280000e+02 : f32
    %5 = vector.broadcast %cst_4 : f32 to vector<1x64xf32>
    %6 = arith.divf %4, %5 : vector<1x64xf32>
    %7 = vector.broadcast %6 : vector<1x64xf32> to vector<128x64xf32>
    %8 = arith.subf %2, %7 : vector<128x64xf32>
    %9 = arith.mulf %8, %8 : vector<128x64xf32>
    %cst_5 = arith.constant dense<0.000000e+00> : vector<64xf32>
    %10 = vector.multi_reduction <add>, %9, %cst_5 [0] : vector<128x64xf32> to vector<64xf32>
    %11 = vector.shape_cast %10 : vector<64xf32> to vector<1x64xf32>
    %cst_6 = arith.constant 1.280000e+02 : f32
    %12 = vector.broadcast %cst_6 : f32 to vector<1x64xf32>
    %13 = arith.divf %11, %12 : vector<1x64xf32>
    %cst_7 = arith.constant 9.99999974E-6 : f32
    %14 = vector.broadcast %cst_7 : f32 to vector<1x64xf32>
    %15 = arith.addf %13, %14 : vector<1x64xf32>
    %16 = math.rsqrt %15 : vector<1x64xf32>
    %c0_8 = arith.constant 0 : index
    %c0_9 = arith.constant 0 : index
    %17 = vector.load %arg4[%c0_8, %c0_9] : memref<1x64xf32, #tpu.memory_space<vmem>>, vector<1x64xf32>
    %18 = arith.mulf %16, %17 : vector<1x64xf32>
    %19 = vector.broadcast %18 : vector<1x64xf32> to vector<128x64xf32>
    %20 = arith.mulf %8, %19 : vector<128x64xf32>
    %c0_10 = arith.constant 0 : index
    %c0_11 = arith.constant 0 : index
    %21 = vector.load %arg5[%c0_10, %c0_11] : memref<1x64xf32, #tpu.memory_space<vmem>>, vector<1x64xf32>
    %22 = vector.broadcast %21 : vector<1x64xf32> to vector<128x64xf32>
    %23 = arith.addf %20, %22 : vector<128x64xf32>
    %c0_12 = arith.constant 0 : index
    %c0_13 = arith.constant 0 : index
    %24 = vector.load %arg3[%c0_12, %c0_13] : memref<128x64xbf16, #tpu.memory_space<vmem>>, vector<128x64xbf16>
    %25 = arith.extf %24 : vector<128x64xbf16> to vector<128x64xf32>
    %26 = arith.addf %23, %25 : vector<128x64xf32>
    %cst_14 = arith.constant 0.000000e+00 : f32
    %27 = vector.broadcast %cst_14 : f32 to vector<128x64xf32>
    %28 = arith.maximumf %26, %27 : vector<128x64xf32>
    %29 = arith.truncf %28 : vector<128x64xf32> to vector<128x64xbf16>
    %c0_15 = arith.constant 0 : index
    %c0_16 = arith.constant 0 : index
    %30 = vector.load %arg6[%c0_15, %c0_16] : memref<128x64xbf16, #tpu.memory_space<vmem>>, vector<128x64xbf16>
    tpu.vector_store %arg6[%c0_15, %c0_16], %29 {strides = array<i32>} : memref<128x64xbf16, #tpu.memory_space<vmem>>, vector<128x64xbf16>,
    return
  }
  func.func @transform_0(%arg0: i32) -> (i32, i32) {
    %c0_i32 = arith.constant 0 : i32
    %c0_i32_0 = arith.constant 0 : i32
    %c0_i32_1 = arith.constant 0 : i32
    return %c0_i32, %c0_i32_0 : i32, i32
  }
  func.func @transform_1(%arg0: i32) -> (i32, i32) {
    %c0_i32 = arith.constant 0 : i32
    %c0_i32_0 = arith.constant 0 : i32
    %c0_i32_1 = arith.constant 0 : i32
    return %c0_i32, %c0_i32_0 : i32, i32
  }
  func.func @transform_2(%arg0: i32) -> (i32, i32) {
    %c0_i32 = arith.constant 0 : i32
    %c0_i32_0 = arith.constant 0 : i32
    %c0_i32_1 = arith.constant 0 : i32
    return %c0_i32, %c0_i32_0 : i32, i32
  }
  func.func @transform_3(%arg0: i32) -> (i32, i32) {
    %c0_i32 = arith.constant 0 : i32
    %c0_i32_0 = arith.constant 0 : i32
    %c0_i32_1 = arith.constant 0 : i32
    return %c0_i32, %c0_i32_0 : i32, i32
  }
  func.func @transform_4(%arg0: i32) -> (i32, i32) {
    %c0_i32 = arith.constant 0 : i32
    %c0_i32_0 = arith.constant 0 : i32
    %c0_i32_1 = arith.constant 0 : i32
    return %c0_i32, %c0_i32_0 : i32, i32
  }
  func.func @transform_5(%arg0: i32) -> (i32, i32) {
    %c0_i32 = arith.constant 0 : i32
    %c0_i32_0 = arith.constant 0 : i32
    %c0_i32_1 = arith.constant 0 : i32
    return %c0_i32, %c0_i32_0 : i32, i32
  }
}

module attributes {stable_mosaic.version = 11 : i64} {
  func.func @_tail_kernel(%arg0: i32, %arg1: memref<2x4096xbf16, #tpu.memory_space<vmem>>, %arg2: memref<4096x64xbf16, #tpu.memory_space<vmem>>, %arg3: memref<1x64xf32, #tpu.memory_space<vmem>>, %arg4: memref<1x64xf32, #tpu.memory_space<vmem>>, %arg5: memref<1x1xf32, #tpu.memory_space<vmem>>, %arg6: memref<2x1xf32, #tpu.memory_space<vmem>>) attributes {dimension_semantics = [#tpu.dimension_semantics<arbitrary>], iteration_bounds = array<i64: 1>, scalar_prefetch = 0 : i64, scratch_operands = 0 : i64, tpu.core_type = #tpu.core_type<tc>, window_params = [{pipeline_mode = #tpu.pipeline_mode<synchronous>, transform_indices = @transform_0, window_bounds = array<i64: 2, 4096>}, {pipeline_mode = #tpu.pipeline_mode<synchronous>, transform_indices = @transform_1, window_bounds = array<i64: 4096, 64>}, {pipeline_mode = #tpu.pipeline_mode<synchronous>, transform_indices = @transform_2, window_bounds = array<i64: 1, 64>}, {pipeline_mode = #tpu.pipeline_mode<synchronous>, transform_indices = @transform_3, window_bounds = array<i64: 1, 64>}, {pipeline_mode = #tpu.pipeline_mode<synchronous>, transform_indices = @transform_4, window_bounds = array<i64: 1, 1>}, {pipeline_mode = #tpu.pipeline_mode<synchronous>, transform_indices = @transform_5, window_bounds = array<i64: 2, 1>}]} {
    %c0 = arith.constant 0 : index
    %c0_0 = arith.constant 0 : index
    %0 = vector.load %arg1[%c0, %c0_0] : memref<2x4096xbf16, #tpu.memory_space<vmem>>, vector<2x4096xbf16>
    %c0_1 = arith.constant 0 : index
    %c0_2 = arith.constant 0 : index
    %1 = vector.load %arg2[%c0_1, %c0_2] : memref<4096x64xbf16, #tpu.memory_space<vmem>>, vector<4096x64xbf16>
    %cst = arith.constant dense<0.000000e+00> : vector<2x64xf32>
    %2 = tpu.matmul %0, %1, %cst {dimension_numbers = #tpu.dot_dimension_numbers<[1], [0], [0], [1], [0, 0, 1, 1], [], []>} : vector<2x4096xbf16>, vector<4096x64xbf16>, vector<2x64xf32> -> vector<2x64xf32>
    %c0_3 = arith.constant 0 : index
    %c0_4 = arith.constant 0 : index
    %3 = vector.load %arg3[%c0_3, %c0_4] : memref<1x64xf32, #tpu.memory_space<vmem>>, vector<1x64xf32>
    %4 = vector.broadcast %3 : vector<1x64xf32> to vector<2x64xf32>
    %5 = arith.addf %2, %4 : vector<2x64xf32>
    %cst_5 = arith.constant 0.000000e+00 : f32
    %6 = vector.broadcast %cst_5 : f32 to vector<2x64xf32>
    %7 = arith.maximumf %5, %6 : vector<2x64xf32>
    %c0_6 = arith.constant 0 : index
    %c0_7 = arith.constant 0 : index
    %8 = vector.load %arg4[%c0_6, %c0_7] : memref<1x64xf32, #tpu.memory_space<vmem>>, vector<1x64xf32>
    %9 = vector.broadcast %8 : vector<1x64xf32> to vector<2x64xf32>
    %10 = arith.mulf %7, %9 : vector<2x64xf32>
    %cst_8 = arith.constant dense<0.000000e+00> : vector<2xf32>
    %11 = vector.multi_reduction <add>, %10, %cst_8 [1] : vector<2x64xf32> to vector<2xf32>
    %12 = vector.shape_cast %11 : vector<2xf32> to vector<2x1xf32>
    %c0_9 = arith.constant 0 : index
    %c0_10 = arith.constant 0 : index
    %13 = vector.load %arg5[%c0_9, %c0_10] : memref<1x1xf32, #tpu.memory_space<vmem>>, vector<1x1xf32>
    %14 = vector.broadcast %13 : vector<1x1xf32> to vector<2x1xf32>
    %15 = arith.addf %12, %14 : vector<2x1xf32>
    %c0_11 = arith.constant 0 : index
    %c0_12 = arith.constant 0 : index
    %16 = vector.load %arg6[%c0_11, %c0_12] : memref<2x1xf32, #tpu.memory_space<vmem>>, vector<2x1xf32>
    tpu.vector_store %arg6[%c0_11, %c0_12], %15 {strides = array<i32>} : memref<2x1xf32, #tpu.memory_space<vmem>>, vector<2x1xf32>,
    return
  }
  func.func @transform_0(%arg0: i32) -> (i32, i32) {
    %c0_i32 = arith.constant 0 : i32
    %c0_i32_0 = arith.constant 0 : i32
    %c0_i32_1 = arith.constant 0 : i32
    return %c0_i32, %c0_i32_0 : i32, i32
  }
  func.func @transform_1(%arg0: i32) -> (i32, i32) {
    %c0_i32 = arith.constant 0 : i32
    %c0_i32_0 = arith.constant 0 : i32
    %c0_i32_1 = arith.constant 0 : i32
    return %c0_i32, %c0_i32_0 : i32, i32
  }
  func.func @transform_2(%arg0: i32) -> (i32, i32) {
    %c0_i32 = arith.constant 0 : i32
    %c0_i32_0 = arith.constant 0 : i32
    %c0_i32_1 = arith.constant 0 : i32
    return %c0_i32, %c0_i32_0 : i32, i32
  }
  func.func @transform_3(%arg0: i32) -> (i32, i32) {
    %c0_i32 = arith.constant 0 : i32
    %c0_i32_0 = arith.constant 0 : i32
    %c0_i32_1 = arith.constant 0 : i32
    return %c0_i32, %c0_i32_0 : i32, i32
  }
  func.func @transform_4(%arg0: i32) -> (i32, i32) {
    %c0_i32 = arith.constant 0 : i32
    %c0_i32_0 = arith.constant 0 : i32
    %c0_i32_1 = arith.constant 0 : i32
    return %c0_i32, %c0_i32_0 : i32, i32
  }
  func.func @transform_5(%arg0: i32) -> (i32, i32) {
    %c0_i32 = arith.constant 0 : i32
    %c0_i32_0 = arith.constant 0 : i32
    %c0_i32_1 = arith.constant 0 : i32
    return %c0_i32, %c0_i32_0 : i32, i32
  }
}

</mosaic_0001>

<bundles_post_ra>
// kernel: base_model_forward.6
= control target key start
LH: loop header
LB: loop body
LE: loop exit
PB: predicated region body
PF: predicated region fallthrough
CT: control target
= control target key end

     0   :  { %v2134_v0 = vmov 0   ;;  %vm446_vm0 = vcmask 154624   ;;  %vm543_vm1 = vcmask 1040384   ;;  %vm544_vm2 = vcmask 1041408   ;;  %s4155_s1 = inlined_call_operand.vmem [shape: bf16[147,64], index: 1, kind: input, shape index: {}]   ;;  %s4156_s0 = inlined_call_operand.vmem [shape: bf16[512,147], index: 0, kind: input, shape index: {}]   ;;  %s4157_s2 = inlined_call_operand.vmem [shape: f32[1,64], index: 2, kind: input, shape index: {}]   ;;  %s4158_s3 = inlined_call_operand.vmem [shape: f32[1,64], index: 3, kind: input, shape index: {}]   ;;  %s4159_s4 = inlined_call_operand.vmem [shape: bf16[512,64], index: 4, kind: output, shape index: {}]  }
   0x1   :  { %550 = vmatprep.subr.bf16.mxu0 %v2134_v0  ;;  %v2026_v1 = vld [vmem:[%s4155_s1] sm:$0xff]   ;;  %2004 = vmatprep.subr.bf16.mxu1 %v2134_v0  ;;  %v2027_v2 = vld [vmem:[%s4155_s1 + $0x8] sm:$0xff]   ;;  %v2028_v3 = vld [vmem:[%s4155_s1 + $0x10] sm:$0xff]   ;;  %v2135_v11 = vmov 65535   ;;  %vm839_vm3 = vcmask 523264   ;;  %vm1700_vm4 = vcmask 519168  }
   0x2   :  { %551 = vmatpush1.bf16.msra.mxu0 %v2026_v1  ;;  %2014 = vmatpush1.bf16.msra.mxu1 %v2026_v1  ;;  %v2029_v4 = vld [vmem:[%s4155_s1 + $0x18] sm:$0xff]   ;;  %v2038_v5 = vld [vmem:[%s4156_s0 + $0x4] ss:$8 sps:$4 sm:$0xff]   ;;  %v2032_v9 = vld [vmem:[%s4155_s1 + $0x30] sm:$0xff]   ;;  %v545_v12 = vsel %vm543_vm1, 4294967295, %v2135_v11 }
   0x3   :  { %552 = vmatprep.subr.bf16.mxu0 %v2134_v0  ;;  %2005 = vmatprep.subr.bf16.mxu1 %v2134_v0  ;;  %v2030_v6 = vld [vmem:[%s4155_s1 + $0x20] sm:$0xff]   ;;  %v2031_v7 = vld [vmem:[%s4155_s1 + $0x28] sm:$0xff]   ;;  %v2033_v10 = vld [vmem:[%s4155_s1 + $0x38] sm:$0xff]   ;;  %v546_v15 = vsel %vm544_vm2, %v545_v12, 0 }
   0x4   :  { %1843 = vmatprep.mubr.msk.bf16.mxu0 %vm446_vm0, %v2038_v5  ;;  %v2062_v8 = vld [vmem:[%s4156_s0 + $0x104] ss:$8 sps:$4 sm:$0xff]   ;;  %v2035_v14 = vld [vmem:[%s4155_s1 + $0x48] ss:$0 sps:$4 sm:$0x33]  }
   0x5   :  { %1859 = vmatprep.mubr.msk.bf16.mxu1 %vm446_vm0, %v2062_v8  ;;  %v2034_v13 = vld [vmem:[%s4155_s1 + $0x40] sm:$0xff]   ;;  %v548_v16 = vand.u32 %v2035_v14, %v546_v15  ;;  %v2039_v19 = vld [vmem:[%s4156_s0 + $0x14] ss:$8 sps:$4 sm:$0xff]   ;;  %v2041_v21 = vld [vmem:[%s4156_s0 + $0x10] ss:$8 sps:$4 sm:$0xff]  }
   0x6   :  { %553 = vmatpush1.bf16.msra.mxu0 %v2027_v2  ;;  %2015 = vmatpush1.bf16.msra.mxu1 %v2027_v2  ;;  %v2036_v17 = vld [vmem:[%s4156_s0] ss:$8 sps:$4 sm:$0xff]   ;;  %v2066_v20 = vld [vmem:[%s4156_s0 + $0x114] ss:$8 sps:$4 sm:$0xff]   ;;  %v2068_v22 = vld [vmem:[%s4156_s0 + $0x110] ss:$8 sps:$4 sm:$0xff]  }
   0x7   :  { %554 = vmatprep.subr.bf16.mxu0 %v2134_v0  ;;  %2006 = vmatprep.subr.bf16.mxu1 %v2134_v0  ;;  %v2060_v18 = vld [vmem:[%s4156_s0 + $0x100] ss:$8 sps:$4 sm:$0xff]   ;;  %v2042_v23 = vld [vmem:[%s4156_s0 + $0x24] ss:$8 sps:$4 sm:$0xff]   ;;  %v2045_v27 = vld [vmem:[%s4156_s0 + $0x34] ss:$8 sps:$4 sm:$0xff]  }
   0x8   :  { %v2072_v24 = vld [vmem:[%s4156_s0 + $0x124] ss:$8 sps:$4 sm:$0xff]   ;;  %v2044_v25 = vld [vmem:[%s4156_s0 + $0x20] ss:$8 sps:$4 sm:$0xff]   ;;  %v2078_v28 = vld [vmem:[%s4156_s0 + $0x134] ss:$8 sps:$4 sm:$0xff]  }
   0x9   :  { %v2074_v26 = vld [vmem:[%s4156_s0 + $0x120] ss:$8 sps:$4 sm:$0xff]   ;;  %v2047_v29 = vld [vmem:[%s4156_s0 + $0x30] ss:$8 sps:$4 sm:$0xff]   ;;  %v2048_v31 = vld [vmem:[%s4156_s0 + $0x44] ss:$8 sps:$4 sm:$0xff]  }
   0xa   :  { %555 = vmatpush1.bf16.msra.mxu0 %v2028_v3  ;;  %2016 = vmatpush1.bf16.msra.mxu1 %v2028_v3  ;;  %v2080_v30 = vld [vmem:[%s4156_s0 + $0x130] ss:$8 sps:$4 sm:$0xff]   ;;  %v2084_v32 = vld [vmem:[%s4156_s0 + $0x144] ss:$8 sps:$4 sm:$0xff]   ;;  %v2050_v33 = vld [vmem:[%s4156_s0 + $0x40] ss:$8 sps:$4 sm:$0xff]  }
   0xb   :  { %556 = vmatprep.subr.bf16.mxu0 %v2134_v0  ;;  %2007 = vmatprep.subr.bf16.mxu1 %v2134_v0  ;;  %v2086_v34 = vld [vmem:[%s4156_s0 + $0x140] ss:$8 sps:$4 sm:$0xff]   ;;  %v2051_v35 = vld [vmem:[%s4156_s0 + $0x54] ss:$8 sps:$4 sm:$0xff]   ;;  %v2053_v37 = vld [vmem:[%s4156_s0 + $0x50] ss:$8 sps:$4 sm:$0xff]  }
   0xc   :  { %v2090_v36 = vld [vmem:[%s4156_s0 + $0x154] ss:$8 sps:$4 sm:$0xff]   ;;  %v2092_v38 = vld [vmem:[%s4156_s0 + $0x150] ss:$8 sps:$4 sm:$0xff]   ;;  %v2054_v39 = vld [vmem:[%s4156_s0 + $0x64] ss:$8 sps:$4 sm:$0xff]  }
   0xd   :  { %v2096_v40 = vld [vmem:[%s4156_s0 + $0x164] ss:$8 sps:$4 sm:$0xff]   ;;  %v2056_v41 = vld [vmem:[%s4156_s0 + $0x60] ss:$8 sps:$4 sm:$0xff]   ;;  %v2057_v43 = vld [vmem:[%s4156_s0 + $0x74] ss:$8 sps:$4 sm:$0xff]  }
   0xe   :  { %557 = vmatpush1.bf16.msra.mxu0 %v2029_v4  ;;  %2017 = vmatpush1.bf16.msra.mxu1 %v2029_v4  ;;  %v2098_v42 = vld [vmem:[%s4156_s0 + $0x160] ss:$8 sps:$4 sm:$0xff]   ;;  %v2102_v44 = vld [vmem:[%s4156_s0 + $0x174] ss:$8 sps:$4 sm:$0xff]   ;;  %v2059_v45 = vld [vmem:[%s4156_s0 + $0x70] ss:$8 sps:$4 sm:$0xff]  }
   0xf   :  { %558 = vmatprep.subr.bf16.mxu0 %v2134_v0  ;;  %2008 = vmatprep.subr.bf16.mxu1 %v2134_v0  ;;  %v2104_v46 = vld [vmem:[%s4156_s0 + $0x170] ss:$8 sps:$4 sm:$0xff]   ;;  %v2063_v47 = vld [vmem:[%s4156_s0 + $0x84] ss:$8 sps:$4 sm:$0xff]   ;;  %v2065_v49 = vld [vmem:[%s4156_s0 + $0x80] ss:$8 sps:$4 sm:$0xff]  }
  0x10   :  { %v2108_v48 = vld [vmem:[%s4156_s0 + $0x184] ss:$8 sps:$4 sm:$0xff]   ;;  %v2110_v50 = vld [vmem:[%s4156_s0 + $0x180] ss:$8 sps:$4 sm:$0xff]   ;;  %v2069_v51 = vld [vmem:[%s4156_s0 + $0x94] ss:$8 sps:$4 sm:$0xff]  }
  0x11   :  { %v2111_v52 = vld [vmem:[%s4156_s0 + $0x194] ss:$8 sps:$4 sm:$0xff]   ;;  %v2071_v53 = vld [vmem:[%s4156_s0 + $0x90] ss:$8 sps:$4 sm:$0xff]   ;;  %v2075_v55 = vld [vmem:[%s4156_s0 + $0xa4] ss:$8 sps:$4 sm:$0xff]  }
  0x12   :  { %559 = vmatpush1.bf16.msra.mxu0 %v2030_v6  ;;  %2018 = vmatpush1.bf16.msra.mxu1 %v2030_v6  ;;  %v2113_v54 = vld [vmem:[%s4156_s0 + $0x190] ss:$8 sps:$4 sm:$0xff]   ;;  %v2114_v56 = vld [vmem:[%s4156_s0 + $0x1a4] ss:$8 sps:$4 sm:$0xff]   ;;  %v2077_v57 = vld [vmem:[%s4156_s0 + $0xa0] ss:$8 sps:$4 sm:$0xff]  }
  0x13   :  { %560 = vmatprep.subr.bf16.mxu0 %v2134_v0  ;;  %2009 = vmatprep.subr.bf16.mxu1 %v2134_v0  ;;  %v2116_v58 = vld [vmem:[%s4156_s0 + $0x1a0] ss:$8 sps:$4 sm:$0xff]   ;;  %v2081_v59 = vld [vmem:[%s4156_s0 + $0xb4] ss:$8 sps:$4 sm:$0xff]   ;;  %v2083_v61 = vld [vmem:[%s4156_s0 + $0xb0] ss:$8 sps:$4 sm:$0xff]  }
  0x14   :  { %v2117_v60 = vld [vmem:[%s4156_s0 + $0x1b4] ss:$8 sps:$4 sm:$0xff]   ;;  %v2119_v62 = vld [vmem:[%s4156_s0 + $0x1b0] ss:$8 sps:$4 sm:$0xff]   ;;  %v2087_v63 = vld [vmem:[%s4156_s0 + $0xc4] ss:$8 sps:$4 sm:$0xff]  }
  0x15   :  { %v2089_v1 = vld [vmem:[%s4156_s0 + $0xc0] ss:$8 sps:$4 sm:$0xff]   ;;  %v2093_v3 = vld [vmem:[%s4156_s0 + $0xd4] ss:$8 sps:$4 sm:$0xff]   ;;  %v2095_v5 = vld [vmem:[%s4156_s0 + $0xd0] ss:$8 sps:$4 sm:$0xff]  }
  0x16   :  { %561 = vmatpush1.bf16.msra.mxu0 %v2031_v7  ;;  %2019 = vmatpush1.bf16.msra.mxu1 %v2031_v7  ;;  %v2122_v2 = vld [vmem:[%s4156_s0 + $0x1c0] ss:$8 sps:$4 sm:$0xff]   ;;  %v2123_v4 = vld [vmem:[%s4156_s0 + $0x1d4] ss:$8 sps:$4 sm:$0xff]   ;;  %v2125_v6 = vld [vmem:[%s4156_s0 + $0x1d0] ss:$8 sps:$4 sm:$0xff]  }
  0x17   :  { %562 = vmatprep.subr.bf16.mxu0 %v2134_v0  ;;  %2010 = vmatprep.subr.bf16.mxu1 %v2134_v0  ;;  %v2099_v7 = vld [vmem:[%s4156_s0 + $0xe4] ss:$8 sps:$4 sm:$0xff]   ;;  %v2105_v11 = vld [vmem:[%s4156_s0 + $0xf4] ss:$8 sps:$4 sm:$0xff]   ;;  %v2131_v14 = vld [vmem:[%s4156_s0 + $0x1f0] ss:$8 sps:$4 sm:$0xff]  }
  0x18   :  { %v2126_v8 = vld [vmem:[%s4156_s0 + $0x1e4] ss:$8 sps:$4 sm:$0xff]   ;;  %v2129_v12 = vld [vmem:[%s4156_s0 + $0x1f4] ss:$8 sps:$4 sm:$0xff]  }
  0x1a   :  { %563 = vmatpush1.bf16.msra.mxu0 %v2032_v9  ;;  %2020 = vmatpush1.bf16.msra.mxu1 %v2032_v9  ;;  %v2101_v9 = vld [vmem:[%s4156_s0 + $0xe0] ss:$8 sps:$4 sm:$0xff]  }
  0x1b   :  { %564 = vmatprep.subr.bf16.mxu0 %v2134_v0  ;;  %2011 = vmatprep.subr.bf16.mxu1 %v2134_v0 }
  0x1e   :  { %565 = vmatpush1.bf16.msra.mxu0 %v2033_v10  ;;  %2021 = vmatpush1.bf16.msra.mxu1 %v2033_v10  ;;  %v2128_v10 = vld [vmem:[%s4156_s0 + $0x1e0] ss:$8 sps:$4 sm:$0xff]  }
  0x1f   :  { %566 = vmatprep.subr.bf16.mxu0 %v2134_v0  ;;  %2012 = vmatprep.subr.bf16.mxu1 %v2134_v0 }
  0x22   :  { %567 = vmatpush1.bf16.msra.mxu0 %v2034_v13  ;;  %2022 = vmatpush1.bf16.msra.mxu1 %v2034_v13  ;;  %v2107_v13 = vld [vmem:[%s4156_s0 + $0xf0] ss:$8 sps:$4 sm:$0xff]  }
  0x23   :  { %568 = vmatprep.subr.bf16.mxu0 %v2134_v0  ;;  %2013 = vmatprep.subr.bf16.mxu1 %v2134_v0  ;;  %v2120_v0 = vld [vmem:[%s4156_s0 + $0x1c4] ss:$8 sps:$4 sm:$0xff]  }
  0x26   :  { %569 = vmatpush1.bf16.msra.mxu0 %v548_v16  ;;  %2023 = vmatpush1.bf16.msra.mxu1 %v548_v16 }
  0x29   :  { %583 = vmatmul.mubr.bf16.vlgmr.msra.gmra.mrb[0].mxu0 %v2036_v17  ;;  %711 = vmatmul.mubr.bf16.vlgmr.msra.gmra.mrb[0].mxu1 %v2060_v18 }
  0x2a   :  { %1844 = vmatprep.mubr.msk.bf16.mxu0 %vm446_vm0, %v2039_v19  ;;  %1860 = vmatprep.mubr.msk.bf16.mxu1 %vm446_vm0, %v2066_v20 }
  0x31   :  { %591 = vmatmul.mubr.bf16.gmra.mrb[4].mxu0 %v2041_v21  ;;  %719 = vmatmul.mubr.bf16.gmra.mrb[4].mxu1 %v2068_v22 }
  0x32   :  { %1845 = vmatprep.mubr.msk.bf16.mxu0 %vm446_vm0, %v2042_v23  ;;  %1861 = vmatprep.mubr.msk.bf16.mxu1 %vm446_vm0, %v2072_v24 }
  0x39   :  { %599 = vmatmul.mubr.bf16.gmra.mrb[8].mxu0 %v2044_v25  ;;  %727 = vmatmul.mubr.bf16.gmra.mrb[8].mxu1 %v2074_v26 }
  0x3a   :  { %1846 = vmatprep.mubr.msk.bf16.mxu0 %vm446_vm0, %v2045_v27  ;;  %1862 = vmatprep.mubr.msk.bf16.mxu1 %vm446_vm0, %v2078_v28 }
  0x41   :  { %607 = vmatmul.mubr.bf16.gmra.mrb[12].mxu0 %v2047_v29  ;;  %735 = vmatmul.mubr.bf16.gmra.mrb[12].mxu1 %v2080_v30 }
  0x42   :  { %1847 = vmatprep.mubr.msk.bf16.mxu0 %vm446_vm0, %v2048_v31  ;;  %1863 = vmatprep.mubr.msk.bf16.mxu1 %vm446_vm0, %v2084_v32 }
  0x49   :  { %615 = vmatmul.mubr.bf16.gmra.mrb[16].mxu0 %v2050_v33  ;;  %743 = vmatmul.mubr.bf16.gmra.mrb[16].mxu1 %v2086_v34 }
  0x4a   :  { %1848 = vmatprep.mubr.msk.bf16.mxu0 %vm446_vm0, %v2051_v35  ;;  %1864 = vmatprep.mubr.msk.bf16.mxu1 %vm446_vm0, %v2090_v36 }
  0x51   :  { %623 = vmatmul.mubr.bf16.gmra.mrb[20].mxu0 %v2053_v37  ;;  %751 = vmatmul.mubr.bf16.gmra.mrb[20].mxu1 %v2092_v38 }
  0x52   :  { %1849 = vmatprep.mubr.msk.bf16.mxu0 %vm446_vm0, %v2054_v39  ;;  %1865 = vmatprep.mubr.msk.bf16.mxu1 %vm446_vm0, %v2096_v40 }
  0x59   :  { %631 = vmatmul.mubr.bf16.gmra.mrb[24].mxu0 %v2056_v41  ;;  %759 = vmatmul.mubr.bf16.gmra.mrb[24].mxu1 %v2098_v42 }
  0x5a   :  { %1850 = vmatprep.mubr.msk.bf16.mxu0 %vm446_vm0, %v2057_v43  ;;  %1866 = vmatprep.mubr.msk.bf16.mxu1 %vm446_vm0, %v2102_v44 }
  0x61   :  { %639 = vmatmul.mubr.bf16.gmra.mrb[28].mxu0 %v2059_v45  ;;  %767 = vmatmul.mubr.bf16.gmra.mrb[28].mxu1 %v2104_v46 }
  0x62   :  { %1851 = vmatprep.mubr.msk.bf16.mxu0 %vm446_vm0, %v2063_v47  ;;  %1867 = vmatprep.mubr.msk.bf16.mxu1 %vm446_vm0, %v2108_v48 }
  0x69   :  { %647 = vmatmul.mubr.bf16.gmra.mrb[32].mxu0 %v2065_v49  ;;  %775 = vmatmul.mubr.bf16.gmra.mrb[32].mxu1 %v2110_v50 }
  0x6a   :  { %1852 = vmatprep.mubr.msk.bf16.mxu0 %vm446_vm0, %v2069_v51  ;;  %1868 = vmatprep.mubr.msk.bf16.mxu1 %vm446_vm0, %v2111_v52 }
  0x71   :  { %655 = vmatmul.mubr.bf16.gmra.mrb[36].mxu0 %v2071_v53  ;;  %783 = vmatmul.mubr.bf16.gmra.mrb[36].mxu1 %v2113_v54 }
  0x72   :  { %1853 = vmatprep.mubr.msk.bf16.mxu0 %vm446_vm0, %v2075_v55  ;;  %1869 = vmatprep.mubr.msk.bf16.mxu1 %vm446_vm0, %v2114_v56 }
  0x79   :  { %663 = vmatmul.mubr.bf16.gmra.mrb[40].mxu0 %v2077_v57  ;;  %791 = vmatmul.mubr.bf16.gmra.mrb[40].mxu1 %v2116_v58 }
  0x7a   :  { %1854 = vmatprep.mubr.msk.bf16.mxu0 %vm446_vm0, %v2081_v59  ;;  %1870 = vmatprep.mubr.msk.bf16.mxu1 %vm446_vm0, %v2117_v60 }
  0x81   :  { %671 = vmatmul.mubr.bf16.gmra.mrb[44].mxu0 %v2083_v61  ;;  %799 = vmatmul.mubr.bf16.gmra.mrb[44].mxu1 %v2119_v62 }
  0x82   :  { %1855 = vmatprep.mubr.msk.bf16.mxu0 %vm446_vm0, %v2087_v63  ;;  %1871 = vmatprep.mubr.msk.bf16.mxu1 %vm446_vm0, %v2120_v0 }
  0x89   :  { %679 = vmatmul.mubr.bf16.gmra.mrb[48].mxu0 %v2089_v1  ;;  %807 = vmatmul.mubr.bf16.gmra.mrb[48].mxu1 %v2122_v2 }
  0x8a   :  { %1856 = vmatprep.mubr.msk.bf16.mxu0 %vm446_vm0, %v2093_v3  ;;  %1872 = vmatprep.mubr.msk.bf16.mxu1 %vm446_vm0, %v2123_v4 }
  0x91   :  { %687 = vmatmul.mubr.bf16.gmra.mrb[52].mxu0 %v2095_v5  ;;  %815 = vmatmul.mubr.bf16.gmra.mrb[52].mxu1 %v2125_v6 }
  0x92   :  { %1857 = vmatprep.mubr.msk.bf16.mxu0 %vm446_vm0, %v2099_v7  ;;  %1873 = vmatprep.mubr.msk.bf16.mxu1 %vm446_vm0, %v2126_v8 }
  0x99   :  { %695 = vmatmul.mubr.bf16.gmra.mrb[56].mxu0 %v2101_v9  ;;  %823 = vmatmul.mubr.bf16.gmra.mrb[56].mxu1 %v2128_v10 }
  0x9a   :  { %1858 = vmatprep.mubr.msk.bf16.mxu0 %vm446_vm0, %v2105_v11  ;;  %1874 = vmatprep.mubr.msk.bf16.mxu1 %vm446_vm0, %v2129_v12 }
  0xa1   :  { %703 = vmatmul.mubr.bf16.gmra.mrb[60].mxu0 %v2107_v13  ;;  %831 = vmatmul.mubr.bf16.gmra.mrb[60].mxu1 %v2131_v14 }
  0xfc   :  { %v2415_v15 = vpop.f32.mrb[0].mxu0  ;;  %v2417_v16 = vpop.f32.mrb[0].mxu1 }
  0xfd   :  { %v586_v17 = vpop.f32.mrb[1].mxu0  ;;  %v714_v18 = vpop.f32.mrb[1].mxu1  ;;  %v840_v21 = vsel %vm839_vm3, %v2415_v15, 0.0 }
  0xfe   :  { %v2419_v19 = vpop.f32.mrb[2].mxu0  ;;  %v2421_v20 = vpop.f32.mrb[2].mxu1 }
  0xff   :  { %v841_v22 = vsel %vm839_vm3, %v2419_v19, 0.0  ;;  %v589_v23 = vpop.f32.mrb[3].mxu0  ;;  %v717_v24 = vpop.f32.mrb[3].mxu1 }
 0x100   :  { %v842_v25 = vadd.f32 %v841_v22, %v840_v21 }
 0x104   :  { %v2427_v26 = vpop.f32.mrb[4].mxu0  ;;  %v2429_v27 = vpop.f32.mrb[4].mxu1 }
 0x105   :  { %v843_v28 = vsel %vm839_vm3, %v2427_v26, 0.0  ;;  %v594_v29 = vpop.f32.mrb[5].mxu0  ;;  %v722_v30 = vpop.f32.mrb[5].mxu1 }
 0x106   :  { %v844_v31 = vadd.f32 %v843_v28, %v842_v25  ;;  %v2433_v32 = vpop.f32.mrb[6].mxu0  ;;  %v2435_v33 = vpop.f32.mrb[6].mxu1 }
 0x107   :  { %v845_v34 = vsel %vm839_vm3, %v2433_v32, 0.0  ;;  %v597_v35 = vpop.f32.mrb[7].mxu0  ;;  %v725_v36 = vpop.f32.mrb[7].mxu1 }
 0x108   :  { %v846_v37 = vadd.f32 %v845_v34, %v844_v31 }
 0x10c   :  { %v2439_v38 = vpop.f32.mrb[8].mxu0  ;;  %v2441_v39 = vpop.f32.mrb[8].mxu1 }
 0x10d   :  { %v847_v40 = vsel %vm839_vm3, %v2439_v38, 0.0  ;;  %v602_v41 = vpop.f32.mrb[9].mxu0  ;;  %v730_v42 = vpop.f32.mrb[9].mxu1 }
 0x10e   :  { %v848_v43 = vadd.f32 %v847_v40, %v846_v37  ;;  %v2445_v44 = vpop.f32.mrb[10].mxu0  ;;  %v2447_v45 = vpop.f32.mrb[10].mxu1 }
 0x10f   :  { %v849_v46 = vsel %vm839_vm3, %v2445_v44, 0.0  ;;  %v605_v47 = vpop.f32.mrb[11].mxu0  ;;  %v733_v48 = vpop.f32.mrb[11].mxu1 }
 0x110   :  { %v850_v49 = vadd.f32 %v849_v46, %v848_v43 }
 0x114   :  { %v2451_v50 = vpop.f32.mrb[12].mxu0  ;;  %v2453_v51 = vpop.f32.mrb[12].mxu1 }
 0x115   :  { %v851_v52 = vsel %vm839_vm3, %v2451_v50, 0.0  ;;  %v610_v53 = vpop.f32.mrb[13].mxu0  ;;  %v738_v54 = vpop.f32.mrb[13].mxu1 }
 0x116   :  { %v852_v55 = vadd.f32 %v851_v52, %v850_v49  ;;  %v2457_v56 = vpop.f32.mrb[14].mxu0  ;;  %v2459_v57 = vpop.f32.mrb[14].mxu1 }
 0x117   :  { %v853_v58 = vsel %vm839_vm3, %v2457_v56, 0.0  ;;  %v613_v59 = vpop.f32.mrb[15].mxu0  ;;  %v741_v60 = vpop.f32.mrb[15].mxu1 }
 0x118   :  { %v854_v61 = vadd.f32 %v853_v58, %v852_v55 }
 0x11c   :  { %v2463_v62 = vpop.f32.mrb[16].mxu0  ;;  %v2465_v63 = vpop.f32.mrb[16].mxu1 }
 0x11d   :  { %v855_v0 = vsel %vm839_vm3, %v2463_v62, 0.0  ;;  %v618_v1 = vpop.f32.mrb[17].mxu0  ;;  %v746_v2 = vpop.f32.mrb[17].mxu1 }
 0x11e   :  { %v856_v3 = vadd.f32 %v855_v0, %v854_v61  ;;  %v2469_v4 = vpop.f32.mrb[18].mxu0  ;;  %v2471_v5 = vpop.f32.mrb[18].mxu1 }
 0x11f   :  { %v857_v6 = vsel %vm839_vm3, %v2469_v4, 0.0  ;;  %v621_v7 = vpop.f32.mrb[19].mxu0  ;;  %v749_v8 = vpop.f32.mrb[19].mxu1 }
 0x120   :  { %v858_v9 = vadd.f32 %v857_v6, %v856_v3 }
 0x124   :  { %v2475_v10 = vpop.f32.mrb[20].mxu0  ;;  %v2477_v11 = vpop.f32.mrb[20].mxu1 }
 0x125   :  { %v859_v12 = vsel %vm839_vm3, %v2475_v10, 0.0  ;;  %v626_v13 = vpop.f32.mrb[21].mxu0  ;;  %v754_v14 = vpop.f32.mrb[21].mxu1 }
 0x126   :  { %v860_v17 = vadd.f32 %v859_v12, %v858_v9  ;;  %v2481_v18 = vpop.f32.mrb[22].mxu0  ;;  %v2483_v21 = vpop.f32.mrb[22].mxu1 }
 0x127   :  { %v861_v22 = vsel %vm839_vm3, %v2481_v18, 0.0  ;;  %v629_v23 = vpop.f32.mrb[23].mxu0  ;;  %v757_v24 = vpop.f32.mrb[23].mxu1 }
 0x128   :  { %v862_v25 = vadd.f32 %v861_v22, %v860_v17 }
 0x12c   :  { %v2487_v28 = vpop.f32.mrb[24].mxu0  ;;  %v2489_v29 = vpop.f32.mrb[24].mxu1 }
 0x12d   :  { %v863_v30 = vsel %vm839_vm3, %v2487_v28, 0.0  ;;  %v634_v31 = vpop.f32.mrb[25].mxu0  ;;  %v762_v34 = vpop.f32.mrb[25].mxu1 }
 0x12e   :  { %v864_v35 = vadd.f32 %v863_v30, %v862_v25  ;;  %v2493_v36 = vpop.f32.mrb[26].mxu0  ;;  %v2495_v37 = vpop.f32.mrb[26].mxu1 }
 0x12f   :  { %v865_v40 = vsel %vm839_vm3, %v2493_v36, 0.0  ;;  %v637_v41 = vpop.f32.mrb[27].mxu0  ;;  %v765_v42 = vpop.f32.mrb[27].mxu1 }
 0x130   :  { %v866_v43 = vadd.f32 %v865_v40, %v864_v35 }
 0x134   :  { %v2499_v46 = vpop.f32.mrb[28].mxu0  ;;  %v2501_v47 = vpop.f32.mrb[28].mxu1 }
 0x135   :  { %v867_v48 = vsel %vm839_vm3, %v2499_v46, 0.0  ;;  %v642_v49 = vpop.f32.mrb[29].mxu0  ;;  %v770_v52 = vpop.f32.mrb[29].mxu1 }
 0x136   :  { %v868_v53 = vadd.f32 %v867_v48, %v866_v43  ;;  %v2505_v54 = vpop.f32.mrb[30].mxu0  ;;  %v2507_v55 = vpop.f32.mrb[30].mxu1 }
 0x137   :  { %v869_v58 = vsel %vm839_vm3, %v2505_v54, 0.0  ;;  %v645_v59 = vpop.f32.mrb[31].mxu0  ;;  %v773_v60 = vpop.f32.mrb[31].mxu1 }
 0x138   :  { %v870_v61 = vadd.f32 %v869_v58, %v868_v53 }
 0x13c   :  { %v2511_v0 = vpop.f32.mrb[32].mxu0  ;;  %v2513_v1 = vpop.f32.mrb[32].mxu1 }
 0x13d   :  { %v871_v2 = vsel %vm839_vm3, %v2511_v0, 0.0  ;;  %v650_v3 = vpop.f32.mrb[33].mxu0  ;;  %v778_v6 = vpop.f32.mrb[33].mxu1 }
 0x13e   :  { %v872_v7 = vadd.f32 %v871_v2, %v870_v61  ;;  %v2517_v8 = vpop.f32.mrb[34].mxu0  ;;  %v2519_v9 = vpop.f32.mrb[34].mxu1 }
 0x13f   :  { %v873_v12 = vsel %vm839_vm3, %v2517_v8, 0.0  ;;  %v653_v13 = vpop.f32.mrb[35].mxu0  ;;  %v781_v14 = vpop.f32.mrb[35].mxu1 }
 0x140   :  { %v874_v17 = vadd.f32 %v873_v12, %v872_v7 }
 0x144   :  { %v2523_v22 = vpop.f32.mrb[36].mxu0  ;;  %v2525_v23 = vpop.f32.mrb[36].mxu1 }
 0x145   :  { %4217 = vst [vmem:[#allocation2_spill] sm:$0xff] %v2523_v22  ;;  %v875_v24 = vsel %vm839_vm3, %v2523_v22, 0.0  ;;  %v658_v25 = vpop.f32.mrb[37].mxu0  ;;  %v786_v30 = vpop.f32.mrb[37].mxu1 }
 0x146   :  { %v876_v31 = vadd.f32 %v875_v24, %v874_v17  ;;  %v2529_v34 = vpop.f32.mrb[38].mxu0  ;;  %v2531_v35 = vpop.f32.mrb[38].mxu1 }
 0x147   :  { %4218 = vst [vmem:[#allocation3_spill] sm:$0xff] %v2529_v34  ;;  %v877_v40 = vsel %vm839_vm3, %v2529_v34, 0.0  ;;  %v661_v41 = vpop.f32.mrb[39].mxu0  ;;  %v789_v42 = vpop.f32.mrb[39].mxu1 }
 0x148   :  { %v878_v43 = vadd.f32 %v877_v40, %v876_v31 }
 0x14c   :  { %v2535_v48 = vpop.f32.mrb[40].mxu0  ;;  %v2537_v49 = vpop.f32.mrb[40].mxu1 }
 0x14d   :  { %4219 = vst [vmem:[#allocation4_spill] sm:$0xff] %v2535_v48  ;;  %v879_v52 = vsel %vm839_vm3, %v2535_v48, 0.0  ;;  %v666_v53 = vpop.f32.mrb[41].mxu0  ;;  %v794_v58 = vpop.f32.mrb[41].mxu1 }
 0x14e   :  { %v880_v59 = vadd.f32 %v879_v52, %v878_v43  ;;  %v2541_v60 = vpop.f32.mrb[42].mxu0  ;;  %v2543_v61 = vpop.f32.mrb[42].mxu1 }
 0x14f   :  { %4220 = vst [vmem:[#allocation5_spill] sm:$0xff] %v2541_v60  ;;  %v881_v2 = vsel %vm839_vm3, %v2541_v60, 0.0  ;;  %v669_v3 = vpop.f32.mrb[43].mxu0  ;;  %v797_v6 = vpop.f32.mrb[43].mxu1 }
 0x150   :  { %v882_v7 = vadd.f32 %v881_v2, %v880_v59 }
 0x154   :  { %v2547_v12 = vpop.f32.mrb[44].mxu0  ;;  %v2549_v13 = vpop.f32.mrb[44].mxu1 }
 0x155   :  { %4221 = vst [vmem:[#allocation6_spill] sm:$0xff] %v2547_v12  ;;  %v883_v14 = vsel %vm839_vm3, %v2547_v12, 0.0  ;;  %v674_v17 = vpop.f32.mrb[45].mxu0  ;;  %v802_v24 = vpop.f32.mrb[45].mxu1 }
 0x156   :  { %v884_v25 = vadd.f32 %v883_v14, %v882_v7  ;;  %v2553_v30 = vpop.f32.mrb[46].mxu0  ;;  %v2555_v31 = vpop.f32.mrb[46].mxu1 }
 0x157   :  { %4222 = vst [vmem:[#allocation7_spill] sm:$0xff] %v2553_v30  ;;  %v885_v40 = vsel %vm839_vm3, %v2553_v30, 0.0  ;;  %v677_v41 = vpop.f32.mrb[47].mxu0  ;;  %v805_v42 = vpop.f32.mrb[47].mxu1 }
 0x158   :  { %v886_v43 = vadd.f32 %v885_v40, %v884_v25 }
 0x15c   :  { %v2559_v52 = vpop.f32.mrb[48].mxu0  ;;  %v2561_v53 = vpop.f32.mrb[48].mxu1 }
 0x15d   :  { %4223 = vst [vmem:[#allocation8_spill] sm:$0xff] %v2559_v52  ;;  %v887_v58 = vsel %vm839_vm3, %v2559_v52, 0.0  ;;  %v682_v59 = vpop.f32.mrb[49].mxu0  ;;  %v810_v2 = vpop.f32.mrb[49].mxu1 }
 0x15e   :  { %v888_v3 = vadd.f32 %v887_v58, %v886_v43  ;;  %v2565_v6 = vpop.f32.mrb[50].mxu0  ;;  %v2567_v7 = vpop.f32.mrb[50].mxu1 }
 0x15f   :  { %4224 = vst [vmem:[#allocation9_spill] sm:$0xff] %v2565_v6  ;;  %v889_v14 = vsel %vm839_vm3, %v2565_v6, 0.0  ;;  %v685_v17 = vpop.f32.mrb[51].mxu0  ;;  %v813_v24 = vpop.f32.mrb[51].mxu1 }
 0x160   :  { %v890_v25 = vadd.f32 %v889_v14, %v888_v3 }
 0x164   :  { %v2571_v40 = vpop.f32.mrb[52].mxu0  ;;  %v2573_v41 = vpop.f32.mrb[52].mxu1 }
 0x165   :  { %4225 = vst [vmem:[#allocation10_spill] sm:$0xff] %v2571_v40  ;;  %4226 = vst [vmem:[#allocation11_spill] sm:$0xff] %v2573_v41  ;;  %v891_v42 = vsel %vm839_vm3, %v2571_v40, 0.0  ;;  %v690_v59 = vpop.f32.mrb[53].mxu0  ;;  %v818_v2 = vpop.f32.mrb[53].mxu1 }
 0x166   :  { %v892_v43 = vadd.f32 %v891_v42, %v890_v25  ;;  %v2577_v58 = vpop.f32.mrb[54].mxu0  ;;  %v2579_v52 = vpop.f32.mrb[54].mxu1 }
 0x167   :  { %4227 = vst [vmem:[#allocation12_spill] sm:$0xff] %v2577_v58  ;;  %4228 = vst [vmem:[#allocation13_spill] sm:$0xff] %v2579_v52  ;;  %v893_v6 = vsel %vm839_vm3, %v2577_v58, 0.0  ;;  %v693_v17 = vpop.f32.mrb[55].mxu0  ;;  %v821_v24 = vpop.f32.mrb[55].mxu1 }
 0x168   :  { %v894_v3 = vadd.f32 %v893_v6, %v892_v43 }
 0x16c   :  { %v2583_v14 = vpop.f32.mrb[56].mxu0  ;;  %v2585_v30 = vpop.f32.mrb[56].mxu1 }
 0x16d   :  { %4229 = vst [vmem:[#allocation14_spill] sm:$0xff] %v2583_v14  ;;  %4230 = vst [vmem:[#allocation15_spill] sm:$0xff] %v2585_v30  ;;  %v895_v40 = vsel %vm839_vm3, %v2583_v14, 0.0  ;;  %v698_v59 = vpop.f32.mrb[57].mxu0  ;;  %v826_v2 = vpop.f32.mrb[57].mxu1 }
 0x16e   :  { %v896_v25 = vadd.f32 %v895_v40, %v894_v3  ;;  %v2589_v42 = vpop.f32.mrb[58].mxu0  ;;  %v2591_v12 = vpop.f32.mrb[58].mxu1 }
 0x16f   :  { %4231 = vst [vmem:[#allocation16_spill] sm:$0xff] %v2589_v42  ;;  %v897_v58 = vsel %vm839_vm3, %v2589_v42, 0.0  ;;  %v701_v17 = vpop.f32.mrb[59].mxu0  ;;  %v829_v24 = vpop.f32.mrb[59].mxu1 }
 0x170   :  { %v898_v6 = vadd.f32 %v897_v58, %v896_v25  ;;  %v903_v25 = vsel %vm839_vm3, %v2417_v16, 0.0 }
 0x174   :  { %v2595_v43 = vpop.f32.mrb[60].mxu0  ;;  %v2597_v60 = vpop.f32.mrb[60].mxu1 }
 0x175   :  { %4232 = vst [vmem:[#allocation17_spill] sm:$0xff] %v2595_v43  ;;  %v899_v14 = vsel %vm839_vm3, %v2595_v43, 0.0  ;;  %v706_v59 = vpop.f32.mrb[61].mxu0  ;;  %v834_v2 = vpop.f32.mrb[61].mxu1  ;;  %v905_v43 = vsel %vm839_vm3, %v2421_v20, 0.0 }
 0x176   :  { %v900_v40 = vadd.f32 %v899_v14, %v898_v6  ;;  %v2601_v3 = vpop.f32.mrb[62].mxu0  ;;  %v2603_v48 = vpop.f32.mrb[62].mxu1  ;;  %v907_v14 = vsel %vm839_vm3, %v2429_v27, 0.0  ;;  %v909_v2 = vsel %vm839_vm3, %v2435_v33, 0.0 }
 0x177   :  { %v901_v42 = vsel %vm839_vm3, %v2601_v3, 0.0  ;;  %v709_v17 = vpop.f32.mrb[63].mxu0  ;;  %v837_v24 = vpop.f32.mrb[63].mxu1 }
 0x178   :  { %v902_v58 = vadd.f32 %v901_v42, %v900_v40  ;;  %v911_v17 = vsel %vm839_vm3, %v2441_v39, 0.0  ;;  %v913_v40 = vsel %vm839_vm3, %v2447_v45, 0.0 }
 0x17a   :  { %v904_v34 = vadd.f32 %v903_v25, %v902_v58  ;;  %v915_v58 = vsel %vm839_vm3, %v2453_v51, 0.0 }
 0x17c   :  { %v906_v59 = vadd.f32 %v905_v43, %v904_v34  ;;  %v917_v43 = vsel %vm839_vm3, %v2459_v57, 0.0 }
 0x17e   :  { %v908_v6 = vadd.f32 %v907_v14, %v906_v59  ;;  %v919_v59 = vsel %vm839_vm3, %v2465_v63, 0.0 }
 0x180   :  { %v910_v22 = vadd.f32 %v909_v2, %v908_v6  ;;  %v921_v6 = vsel %vm839_vm3, %v2471_v5, 0.0  ;;  %v923_v2 = vsel %vm839_vm3, %v2477_v11, 0.0 }
 0x182   :  { %v912_v42 = vadd.f32 %v911_v17, %v910_v22 }
 0x184   :  { %v914_v24 = vadd.f32 %v913_v40, %v912_v42  ;;  %v925_v42 = vsel %vm839_vm3, %v2483_v21, 0.0 }
 0x186   :  { %v916_v34 = vadd.f32 %v915_v58, %v914_v24  ;;  %v927_v24 = vsel %vm839_vm3, %v2489_v29, 0.0 }
 0x188   :  { %v918_v25 = vadd.f32 %v917_v43, %v916_v34  ;;  %v929_v34 = vsel %vm839_vm3, %v2495_v37, 0.0 }
 0x18a   :  { %v920_v14 = vadd.f32 %v919_v59, %v918_v25  ;;  %v931_v25 = vsel %vm839_vm3, %v2501_v47, 0.0 }
 0x18c   :  { %v922_v22 = vadd.f32 %v921_v6, %v920_v14  ;;  %v933_v14 = vsel %vm839_vm3, %v2507_v55, 0.0 }
 0x18e   :  { %v924_v17 = vadd.f32 %v923_v2, %v922_v22  ;;  %v935_v22 = vsel %vm839_vm3, %v2513_v1, 0.0 }
 0x190   :  { %v926_v40 = vadd.f32 %v925_v42, %v924_v17  ;;  %v937_v17 = vsel %vm839_vm3, %v2519_v9, 0.0 }
 0x192   :  { %v928_v58 = vadd.f32 %v927_v24, %v926_v40  ;;  %v939_v40 = vsel %vm839_vm3, %v2525_v23, 0.0 }
 0x194   :  { %v930_v43 = vadd.f32 %v929_v34, %v928_v58  ;;  %v941_v58 = vsel %vm839_vm3, %v2531_v35, 0.0 }
 0x196   :  { %v932_v59 = vadd.f32 %v931_v25, %v930_v43  ;;  %v943_v43 = vsel %vm839_vm3, %v2537_v49, 0.0 }
 0x198   :  { %v934_v6 = vadd.f32 %v933_v14, %v932_v59  ;;  %v945_v59 = vsel %vm839_vm3, %v2543_v61, 0.0 }
 0x19a   :  { %v936_v2 = vadd.f32 %v935_v22, %v934_v6  ;;  %v947_v6 = vsel %vm839_vm3, %v2549_v13, 0.0 }
 0x19c   :  { %v938_v42 = vadd.f32 %v937_v17, %v936_v2  ;;  %v949_v2 = vsel %vm839_vm3, %v2555_v31, 0.0 }
 0x19e   :  { %v940_v24 = vadd.f32 %v939_v40, %v938_v42  ;;  %v951_v42 = vsel %vm839_vm3, %v2561_v53, 0.0 }
 0x1a0   :  { %v942_v34 = vadd.f32 %v941_v58, %v940_v24  ;;  %v953_v24 = vsel %vm839_vm3, %v2567_v7, 0.0 }
 0x1a2   :  { %v944_v25 = vadd.f32 %v943_v43, %v942_v34  ;;  %v955_v34 = vsel %vm839_vm3, %v2573_v41, 0.0 }
 0x1a4   :  { %v946_v14 = vadd.f32 %v945_v59, %v944_v25  ;;  %v957_v25 = vsel %vm839_vm3, %v2579_v52, 0.0 }
 0x1a6   :  { %v948_v22 = vadd.f32 %v947_v6, %v946_v14  ;;  %v959_v14 = vsel %vm839_vm3, %v2585_v30, 0.0 }
 0x1a8   :  { %v950_v17 = vadd.f32 %v949_v2, %v948_v22  ;;  %v961_v22 = vsel %vm839_vm3, %v2591_v12, 0.0  ;;  %v963_v2 = vsel %vm839_vm3, %v2597_v60, 0.0 }
 0x1aa   :  { %v952_v40 = vadd.f32 %v951_v42, %v950_v17 }
 0x1ac   :  { %v954_v58 = vadd.f32 %v953_v24, %v952_v40  ;;  %v965_v40 = vsel %vm839_vm3, %v2603_v48, 0.0 }
 0x1ae   :  { %v956_v43 = vadd.f32 %v955_v34, %v954_v58 }
 0x1b0   :  { %v958_v59 = vadd.f32 %v957_v25, %v956_v43 }
 0x1b2   :  { %v960_v6 = vadd.f32 %v959_v14, %v958_v59 }
 0x1b4   :  { %v962_v17 = vadd.f32 %v961_v22, %v960_v6 }
 0x1b6   :  { %v964_v42 = vadd.f32 %v963_v2, %v962_v17  ;;  %v4238_v2 = vld [vmem:[#allocation3_spill] sm:$0xff]  ;;  %v4240_v17 = vld [vmem:[#allocation4_spill] sm:$0xff] }
 0x1b8   :  { %v966_v24 = vadd.f32 %v965_v40, %v964_v42  ;;  %v4242_v42 = vld [vmem:[#allocation5_spill] sm:$0xff]  ;;  %v4244_v40 = vld [vmem:[#allocation6_spill] sm:$0xff] }
 0x1ba   :  { %v967_v58 = vrot.slane %v966_v24, 4 }
 0x1bc   :  { %v968_v34 = vadd.f32 %v967_v58, %v966_v24  ;;  %v4246_v24 = vld [vmem:[#allocation7_spill] sm:$0xff] }
 0x1be   :  { %v969_v52 = vrot.slane %v968_v34, 2 }
 0x1c0   :  { %v970_v43 = vadd.f32 %v969_v52, %v968_v34  ;;  %v4248_v34 = vld [vmem:[#allocation8_spill] sm:$0xff] }
 0x1c2   :  { %v971_v25 = vrot.slane %v970_v43, 1 }
 0x1c4   :  { %v972_v41 = vadd.f32 %v971_v25, %v970_v43  ;;  %v4250_v25 = vld [vmem:[#allocation9_spill] sm:$0xff] }
 0x1c6   :  { %v2671_v30 = vmul.f32 0.001953125, %v972_v41  ;;  %v4237_v41 = vld [vmem:[#allocation2_spill] sm:$0xff] }
 0x1c8   :  { %v2675_v59 = vsub.f32 %v2415_v15, %v2671_v30  ;;  %v2679_v14 = vsub.f32 %v2419_v19, %v2671_v30  ;;  %v2683_v6 = vsub.f32 %v2427_v26, %v2671_v30  ;;  %v2687_v22 = vsub.f32 %v2433_v32, %v2671_v30 }
 0x1c9   :  { %v2691_v52 = vsub.f32 %v2439_v38, %v2671_v30  ;;  %v2695_v15 = vsub.f32 %v2445_v44, %v2671_v30  ;;  %v2699_v19 = vsub.f32 %v2451_v50, %v2671_v30  ;;  %v2703_v26 = vsub.f32 %v2457_v56, %v2671_v30 }
 0x1ca   :  { %4233 = vst [vmem:[#allocation18_spill] sm:$0xff] %v2675_v59  ;;  %4234 = vst [vmem:[#allocation19_spill] sm:$0xff] %v2679_v14  ;;  %v2707_v32 = vsub.f32 %v2463_v62, %v2671_v30  ;;  %v2711_v38 = vsub.f32 %v2469_v4, %v2671_v30  ;;  %v2715_v44 = vsub.f32 %v2475_v10, %v2671_v30 }
 0x1cb   :  { %4235 = vst [vmem:[#allocation20_spill] sm:$0xff] %v2683_v6  ;;  %4236 = vst [vmem:[#allocation21_spill] sm:$0xff] %v2687_v22  ;;  %v2719_v50 = vsub.f32 %v2481_v18, %v2671_v30  ;;  %v2723_v56 = vsub.f32 %v2487_v28, %v2671_v30  ;;  %v2727_v62 = vsub.f32 %v2493_v36, %v2671_v30 }
 0x1cc   :  { %v2731_v4 = vsub.f32 %v2499_v46, %v2671_v30  ;;  %v2735_v10 = vsub.f32 %v2505_v54, %v2671_v30  ;;  %v2739_v18 = vsub.f32 %v2511_v0, %v2671_v30  ;;  %v2743_v28 = vsub.f32 %v2517_v8, %v2671_v30 }
 0x1cd   :  { %v2747_v36 = vsub.f32 %v4237_v41, %v2671_v30  ;;  %v2751_v46 = vsub.f32 %v4238_v2, %v2671_v30  ;;  %v2755_v54 = vsub.f32 %v4240_v17, %v2671_v30  ;;  %v2759_v0 = vsub.f32 %v4242_v42, %v2671_v30  ;;  %v4251_v2 = vld [vmem:[#allocation10_spill] sm:$0xff]  ;;  %v4252_v42 = vld [vmem:[#allocation12_spill] sm:$0xff] }
 0x1ce   :  { %v2763_v8 = vsub.f32 %v4244_v40, %v2671_v30  ;;  %v2767_v58 = vsub.f32 %v4246_v24, %v2671_v30  ;;  %v2771_v43 = vsub.f32 %v4248_v34, %v2671_v30  ;;  %v2775_v41 = vsub.f32 %v4250_v25, %v2671_v30 }
 0x1cf   :  { %4239 = vst [vmem:[#allocation2_spill] sm:$0xff] %v2751_v46  ;;  %4241 = vst [vmem:[#allocation3_spill] sm:$0xff] %v2755_v54  ;;  %v2779_v17 = vsub.f32 %v4251_v2, %v2671_v30  ;;  %v2783_v40 = vsub.f32 %v4252_v42, %v2671_v30  ;;  %v2799_v2 = vsub.f32 %v2601_v3, %v2671_v30 }
 0x1d0   :  { %4243 = vst [vmem:[#allocation4_spill] sm:$0xff] %v2759_v0  ;;  %4245 = vst [vmem:[#allocation5_spill] sm:$0xff] %v2763_v8  ;;  %v4253_v8 = vld [vmem:[#allocation14_spill] sm:$0xff]  ;;  %v2803_v42 = vsub.f32 %v2417_v16, %v2671_v30  ;;  %v2819_v3 = vsub.f32 %v2441_v39, %v2671_v30  ;;  %v2823_v16 = vsub.f32 %v2447_v45, %v2671_v30 }
 0x1d1   :  { %4247 = vst [vmem:[#allocation6_spill] sm:$0xff] %v2767_v58  ;;  %4249 = vst [vmem:[#allocation7_spill] sm:$0xff] %v2771_v43  ;;  %v2787_v24 = vsub.f32 %v4253_v8, %v2671_v30  ;;  %v4254_v58 = vld [vmem:[#allocation16_spill] sm:$0xff]  ;;  %v4255_v43 = vld [vmem:[#allocation17_spill] sm:$0xff]  ;;  %v2807_v8 = vsub.f32 %v2421_v20, %v2671_v30  ;;  %v2827_v20 = vsub.f32 %v2453_v51, %v2671_v30 }
 0x1d2   :  { %v2791_v34 = vsub.f32 %v4254_v58, %v2671_v30  ;;  %v2795_v25 = vsub.f32 %v4255_v43, %v2671_v30  ;;  %v2811_v58 = vsub.f32 %v2429_v27, %v2671_v30  ;;  %v2815_v43 = vsub.f32 %v2435_v33, %v2671_v30 }
 0x1d3   :  { %v2831_v27 = vsub.f32 %v2459_v57, %v2671_v30  ;;  %v2835_v33 = vsub.f32 %v2465_v63, %v2671_v30  ;;  %v2839_v39 = vsub.f32 %v2471_v5, %v2671_v30  ;;  %v2843_v45 = vsub.f32 %v2477_v11, %v2671_v30 }
 0x1d4   :  { %v2847_v51 = vsub.f32 %v2483_v21, %v2671_v30  ;;  %v2851_v57 = vsub.f32 %v2489_v29, %v2671_v30  ;;  %v2855_v63 = vsub.f32 %v2495_v37, %v2671_v30  ;;  %v2859_v5 = vsub.f32 %v2501_v47, %v2671_v30 }
 0x1d5   :  { %v2863_v11 = vsub.f32 %v2507_v55, %v2671_v30  ;;  %v2867_v21 = vsub.f32 %v2513_v1, %v2671_v30  ;;  %v2871_v29 = vsub.f32 %v2519_v9, %v2671_v30  ;;  %v2875_v37 = vsub.f32 %v2525_v23, %v2671_v30 }
 0x1d6   :  { %v2879_v47 = vsub.f32 %v2531_v35, %v2671_v30  ;;  %v2883_v55 = vsub.f32 %v2537_v49, %v2671_v30  ;;  %v2887_v1 = vsub.f32 %v2543_v61, %v2671_v30  ;;  %v2891_v9 = vsub.f32 %v2549_v13, %v2671_v30 }
 0x1d7   :  { %4256 = vst [vmem:[#allocation8_spill] sm:$0xff] %v2871_v29  ;;  %4257 = vst [vmem:[#allocation9_spill] sm:$0xff] %v2875_v37  ;;  %v2895_v23 = vsub.f32 %v2555_v31, %v2671_v30  ;;  %v2899_v35 = vsub.f32 %v2561_v53, %v2671_v30  ;;  %v2903_v49 = vsub.f32 %v2567_v7, %v2671_v30 }
 0x1d8   :  { %4258 = vst [vmem:[#allocation10_spill] sm:$0xff] %v2879_v47  ;;  %4259 = vst [vmem:[#allocation12_spill] sm:$0xff] %v2883_v55  ;;  %v4265_v55 = vld [vmem:[#allocation11_spill] sm:$0xff]  ;;  %v2919_v53 = vsub.f32 %v2591_v12, %v2671_v30  ;;  %v2923_v7 = vsub.f32 %v2597_v60, %v2671_v30  ;;  %v1042_v12 = vmul.f32 %v2687_v22, %v2687_v22 }
 0x1d9   :  { %4260 = vst [vmem:[#allocation14_spill] sm:$0xff] %v2887_v1  ;;  %4261 = vst [vmem:[#allocation16_spill] sm:$0xff] %v2891_v9  ;;  %v2907_v61 = vsub.f32 %v4265_v55, %v2671_v30  ;;  %v4267_v1 = vld [vmem:[#allocation13_spill] sm:$0xff]  ;;  %v4269_v9 = vld [vmem:[#allocation15_spill] sm:$0xff]  ;;  %v2927_v55 = vsub.f32 %v2603_v48, %v2671_v30  ;;  %v1043_v48 = vmul.f32 %v2691_v52, %v2691_v52 }
 0x1da   :  { %4262 = vst [vmem:[#allocation17_spill] sm:$0xff] %v2895_v23  ;;  %4263 = vst [vmem:[#allocation22_spill] sm:$0xff] %v2899_v35  ;;  %v2911_v13 = vsub.f32 %v4267_v1, %v2671_v30  ;;  %v2915_v31 = vsub.f32 %v4269_v9, %v2671_v30  ;;  %v1039_v1 = vmul.f32 %v2675_v59, %v2675_v59 }
 0x1db   :  { %4264 = vst [vmem:[#allocation23_spill] sm:$0xff] %v2903_v49  ;;  %4266 = vst [vmem:[#allocation11_spill] sm:$0xff] %v2907_v61  ;;  %v1041_v9 = vmul.f32 %v2683_v6, %v2683_v6  ;;  %v1045_v22 = vmul.f32 %v2699_v19, %v2699_v19 }
 0x1dc   :  { %4268 = vst [vmem:[#allocation13_spill] sm:$0xff] %v2911_v13  ;;  %4270 = vst [vmem:[#allocation15_spill] sm:$0xff] %v2915_v31  ;;  %v1040_v13 = vmul.f32 %v2679_v14, %v2679_v14  ;;  %v1044_v14 = vmul.f32 %v2695_v15, %v2695_v15 }
 0x1dd   :  { %4271 = vst [vmem:[#allocation24_spill] sm:$0xff] %v2919_v53  ;;  %4272 = vst [vmem:[#allocation25_spill] sm:$0xff] %v2923_v7  ;;  %v1103_v53 = vsel %vm839_vm3, %v1039_v1, 0.0  ;;  %v1106_v30 = vsel %vm839_vm3, %v1041_v9, 0.0  ;;  %v1110_v1 = vsel %vm839_vm3, %v1043_v48, 0.0  ;;  %v1114_v9 = vsel %vm839_vm3, %v1045_v22, 0.0 }
 0x1de   :  { %4273 = vst [vmem:[#allocation26_spill] sm:$0xff] %v2927_v55  ;;  %v1104_v60 = vsel %vm839_vm3, %v1040_v13, 0.0  ;;  %v1108_v55 = vsel %vm839_vm3, %v1042_v12, 0.0  ;;  %v1046_v13 = vmul.f32 %v2703_v26, %v2703_v26  ;;  %v1051_v22 = vmul.f32 %v2723_v56, %v2723_v56 }
 0x1df   :  { %v1105_v7 = vadd.f32 %v1104_v60, %v1103_v53  ;;  %v1112_v53 = vsel %vm839_vm3, %v1044_v14, 0.0  ;;  %v1050_v14 = vmul.f32 %v2719_v50, %v2719_v50 }
 0x1e1   :  { %v1107_v59 = vadd.f32 %v1106_v30, %v1105_v7  ;;  %v1047_v7 = vmul.f32 %v2707_v32, %v2707_v32 }
 0x1e3   :  { %v1109_v6 = vadd.f32 %v1108_v55, %v1107_v59  ;;  %v1048_v59 = vmul.f32 %v2711_v38, %v2711_v38  ;;  %v1116_v55 = vsel %vm839_vm3, %v1046_v13, 0.0  ;;  %v1118_v48 = vsel %vm839_vm3, %v1047_v7, 0.0 }
 0x1e4   :  { %v1052_v13 = vmul.f32 %v2727_v62, %v2727_v62  ;;  %v1053_v7 = vmul.f32 %v2731_v4, %v2731_v4 }
 0x1e5   :  { %v1111_v31 = vadd.f32 %v1110_v1, %v1109_v6  ;;  %v1049_v6 = vmul.f32 %v2715_v44, %v2715_v44 }
 0x1e7   :  { %v1113_v60 = vadd.f32 %v1112_v53, %v1111_v31  ;;  %v1120_v31 = vsel %vm839_vm3, %v1048_v59, 0.0  ;;  %v1054_v59 = vmul.f32 %v2735_v10, %v2735_v10 }
 0x1e9   :  { %v1115_v30 = vadd.f32 %v1114_v9, %v1113_v60  ;;  %v1122_v60 = vsel %vm839_vm3, %v1049_v6, 0.0  ;;  %v1055_v6 = vmul.f32 %v2739_v18, %v2739_v18 }
 0x1eb   :  { %v1117_v12 = vadd.f32 %v1116_v55, %v1115_v30  ;;  %v1124_v30 = vsel %vm839_vm3, %v1050_v14, 0.0  ;;  %v1056_v14 = vmul.f32 %v2743_v28, %v2743_v28 }
 0x1ed   :  { %v1119_v1 = vadd.f32 %v1118_v48, %v1117_v12  ;;  %v1126_v12 = vsel %vm839_vm3, %v1051_v22, 0.0  ;;  %v1057_v22 = vmul.f32 %v2747_v36, %v2747_v36 }
 0x1ef   :  { %v1121_v53 = vadd.f32 %v1120_v31, %v1119_v1  ;;  %v1128_v1 = vsel %vm839_vm3, %v1052_v13, 0.0  ;;  %v1058_v13 = vmul.f32 %v2751_v46, %v2751_v46 }
 0x1f1   :  { %v1123_v9 = vadd.f32 %v1122_v60, %v1121_v53  ;;  %v1130_v53 = vsel %vm839_vm3, %v1053_v7, 0.0  ;;  %v1059_v7 = vmul.f32 %v2755_v54, %v2755_v54 }
 0x1f3   :  { %v1125_v55 = vadd.f32 %v1124_v30, %v1123_v9  ;;  %v1132_v9 = vsel %vm839_vm3, %v1054_v59, 0.0  ;;  %v1060_v59 = vmul.f32 %v2759_v0, %v2759_v0 }
 0x1f5   :  { %v1127_v48 = vadd.f32 %v1126_v12, %v1125_v55  ;;  %v1134_v55 = vsel %vm839_vm3, %v1055_v6, 0.0  ;;  %v4274_v6 = vld [vmem:[#allocation5_spill] sm:$0xff] }
 0x1f7   :  { %v1129_v31 = vadd.f32 %v1128_v1, %v1127_v48  ;;  %v1136_v48 = vsel %vm839_vm3, %v1056_v14, 0.0  ;;  %v4275_v14 = vld [vmem:[#allocation6_spill] sm:$0xff] }
 0x1f9   :  { %v1131_v60 = vadd.f32 %v1130_v53, %v1129_v31  ;;  %v1138_v31 = vsel %vm839_vm3, %v1057_v22, 0.0  ;;  %v4276_v22 = vld [vmem:[#allocation7_spill] sm:$0xff] }
 0x1fb   :  { %v1133_v30 = vadd.f32 %v1132_v9, %v1131_v60  ;;  %v1140_v60 = vsel %vm839_vm3, %v1058_v13, 0.0  ;;  %v1064_v13 = vmul.f32 %v2775_v41, %v2775_v41 }
 0x1fd   :  { %v1135_v12 = vadd.f32 %v1134_v55, %v1133_v30  ;;  %v1061_v30 = vmul.f32 %v4274_v6, %v4274_v6  ;;  %v1142_v55 = vsel %vm839_vm3, %v1059_v7, 0.0  ;;  %v1065_v7 = vmul.f32 %v2779_v17, %v2779_v17 }
 0x1ff   :  { %v1137_v1 = vadd.f32 %v1136_v48, %v1135_v12  ;;  %v1062_v12 = vmul.f32 %v4275_v14, %v4275_v14  ;;  %v1144_v48 = vsel %vm839_vm3, %v1060_v59, 0.0  ;;  %v1152_v59 = vsel %vm839_vm3, %v1064_v13, 0.0 }
 0x200   :  { %v1070_v13 = vmul.f32 %v2799_v2, %v2799_v2 }
 0x201   :  { %v1139_v53 = vadd.f32 %v1138_v31, %v1137_v1  ;;  %v1063_v1 = vmul.f32 %v4276_v22, %v4276_v22  ;;  %v1146_v31 = vsel %vm839_vm3, %v1061_v30, 0.0  ;;  %v1154_v30 = vsel %vm839_vm3, %v1065_v7, 0.0 }
 0x202   :  { %v1071_v7 = vmul.f32 %v2803_v42, %v2803_v42 }
 0x203   :  { %v1141_v9 = vadd.f32 %v1140_v60, %v1139_v53  ;;  %v1148_v53 = vsel %vm839_vm3, %v1062_v12, 0.0 }
 0x205   :  { %v1143_v46 = vadd.f32 %v1142_v55, %v1141_v9  ;;  %v1150_v9 = vsel %vm839_vm3, %v1063_v1, 0.0  ;;  %v1069_v1 = vmul.f32 %v2795_v25, %v2795_v25 }
 0x207   :  { %v1145_v54 = vadd.f32 %v1144_v48, %v1143_v46  ;;  %v1066_v46 = vmul.f32 %v2783_v40, %v2783_v40 }
 0x209   :  { %v1147_v0 = vadd.f32 %v1146_v31, %v1145_v54  ;;  %v1067_v54 = vmul.f32 %v2787_v24, %v2787_v24  ;;  %v1156_v12 = vsel %vm839_vm3, %v1066_v46, 0.0  ;;  %v1072_v46 = vmul.f32 %v2807_v8, %v2807_v8 }
 0x20b   :  { %v1149_v60 = vadd.f32 %v1148_v53, %v1147_v0  ;;  %v1068_v0 = vmul.f32 %v2791_v34, %v2791_v34 }
 0x20d   :  { %v1151_v55 = vadd.f32 %v1150_v9, %v1149_v60  ;;  %v1158_v60 = vsel %vm839_vm3, %v1067_v54, 0.0  ;;  %v1073_v54 = vmul.f32 %v2811_v58, %v2811_v58 }
 0x20f   :  { %v1153_v48 = vadd.f32 %v1152_v59, %v1151_v55  ;;  %v1160_v55 = vsel %vm839_vm3, %v1068_v0, 0.0  ;;  %v1074_v0 = vmul.f32 %v2815_v43, %v2815_v43 }
 0x211   :  { %v1155_v31 = vadd.f32 %v1154_v30, %v1153_v48  ;;  %v1162_v48 = vsel %vm839_vm3, %v1069_v1, 0.0  ;;  %v1075_v1 = vmul.f32 %v2819_v3, %v2819_v3 }
 0x213   :  { %v1157_v53 = vadd.f32 %v1156_v12, %v1155_v31  ;;  %v1164_v31 = vsel %vm839_vm3, %v1070_v13, 0.0  ;;  %v1076_v13 = vmul.f32 %v2823_v16, %v2823_v16 }
 0x215   :  { %v1159_v9 = vadd.f32 %v1158_v60, %v1157_v53  ;;  %v1166_v53 = vsel %vm839_vm3, %v1071_v7, 0.0  ;;  %v1077_v7 = vmul.f32 %v2827_v20, %v2827_v20 }
 0x217   :  { %v1161_v59 = vadd.f32 %v1160_v55, %v1159_v9  ;;  %v1168_v9 = vsel %vm839_vm3, %v1072_v46, 0.0  ;;  %v1078_v46 = vmul.f32 %v2831_v27, %v2831_v27 }
 0x219   :  { %v1163_v30 = vadd.f32 %v1162_v48, %v1161_v59  ;;  %v1170_v59 = vsel %vm839_vm3, %v1073_v54, 0.0  ;;  %v1079_v54 = vmul.f32 %v2835_v33, %v2835_v33 }
 0x21b   :  { %v1165_v12 = vadd.f32 %v1164_v31, %v1163_v30  ;;  %v1172_v30 = vsel %vm839_vm3, %v1074_v0, 0.0  ;;  %v1080_v0 = vmul.f32 %v2839_v39, %v2839_v39 }
 0x21d   :  { %v1167_v60 = vadd.f32 %v1166_v53, %v1165_v12  ;;  %v1174_v12 = vsel %vm839_vm3, %v1075_v1, 0.0  ;;  %v1081_v1 = vmul.f32 %v2843_v45, %v2843_v45 }
 0x21f   :  { %v1169_v55 = vadd.f32 %v1168_v9, %v1167_v60  ;;  %v1176_v60 = vsel %vm839_vm3, %v1076_v13, 0.0  ;;  %v1082_v13 = vmul.f32 %v2847_v51, %v2847_v51 }
 0x221   :  { %v1171_v48 = vadd.f32 %v1170_v59, %v1169_v55  ;;  %v1178_v55 = vsel %vm839_vm3, %v1077_v7, 0.0  ;;  %v1083_v7 = vmul.f32 %v2851_v57, %v2851_v57 }
 0x223   :  { %v1173_v31 = vadd.f32 %v1172_v30, %v1171_v48  ;;  %v1180_v48 = vsel %vm839_vm3, %v1078_v46, 0.0  ;;  %v1084_v46 = vmul.f32 %v2855_v63, %v2855_v63 }
 0x225   :  { %v1175_v53 = vadd.f32 %v1174_v12, %v1173_v31  ;;  %v1182_v31 = vsel %vm839_vm3, %v1079_v54, 0.0  ;;  %v1085_v54 = vmul.f32 %v2859_v5, %v2859_v5 }
 0x227   :  { %v1177_v9 = vadd.f32 %v1176_v60, %v1175_v53  ;;  %v1184_v53 = vsel %vm839_vm3, %v1080_v0, 0.0  ;;  %v1086_v0 = vmul.f32 %v2863_v11, %v2863_v11 }
 0x229   :  { %v1179_v59 = vadd.f32 %v1178_v55, %v1177_v9  ;;  %v1186_v9 = vsel %vm839_vm3, %v1081_v1, 0.0  ;;  %v1087_v1 = vmul.f32 %v2867_v21, %v2867_v21 }
 0x22b   :  { %v1181_v30 = vadd.f32 %v1180_v48, %v1179_v59  ;;  %v1188_v59 = vsel %vm839_vm3, %v1082_v13, 0.0  ;;  %v1088_v13 = vmul.f32 %v2871_v29, %v2871_v29 }
 0x22d   :  { %v1183_v12 = vadd.f32 %v1182_v31, %v1181_v30  ;;  %v1190_v30 = vsel %vm839_vm3, %v1083_v7, 0.0  ;;  %v1089_v7 = vmul.f32 %v2875_v37, %v2875_v37 }
 0x22f   :  { %v1185_v60 = vadd.f32 %v1184_v53, %v1183_v12  ;;  %v1192_v12 = vsel %vm839_vm3, %v1084_v46, 0.0  ;;  %v1090_v46 = vmul.f32 %v2879_v47, %v2879_v47 }
 0x231   :  { %v1187_v55 = vadd.f32 %v1186_v9, %v1185_v60  ;;  %v1194_v60 = vsel %vm839_vm3, %v1085_v54, 0.0  ;;  %v4277_v54 = vld [vmem:[#allocation12_spill] sm:$0xff] }
 0x233   :  { %v1189_v48 = vadd.f32 %v1188_v59, %v1187_v55  ;;  %v1196_v55 = vsel %vm839_vm3, %v1086_v0, 0.0  ;;  %v4278_v0 = vld [vmem:[#allocation14_spill] sm:$0xff] }
 0x235   :  { %v1191_v31 = vadd.f32 %v1190_v30, %v1189_v48  ;;  %v1198_v48 = vsel %vm839_vm3, %v1087_v1, 0.0  ;;  %v4279_v1 = vld [vmem:[#allocation16_spill] sm:$0xff] }
 0x237   :  { %v1193_v53 = vadd.f32 %v1192_v12, %v1191_v31  ;;  %v1200_v31 = vsel %vm839_vm3, %v1088_v13, 0.0  ;;  %v1094_v13 = vmul.f32 %v2895_v23, %v2895_v23 }
 0x239   :  { %v1195_v9 = vadd.f32 %v1194_v60, %v1193_v53  ;;  %v1091_v53 = vmul.f32 %v4277_v54, %v4277_v54  ;;  %v1202_v60 = vsel %vm839_vm3, %v1089_v7, 0.0  ;;  %v1095_v7 = vmul.f32 %v2899_v35, %v2899_v35 }
 0x23b   :  { %v1197_v59 = vadd.f32 %v1196_v55, %v1195_v9  ;;  %v1092_v9 = vmul.f32 %v4278_v0, %v4278_v0  ;;  %v1204_v55 = vsel %vm839_vm3, %v1090_v46, 0.0  ;;  %v1212_v46 = vsel %vm839_vm3, %v1094_v13, 0.0  ;;  %v4282_v13 = vld [vmem:[#allocation24_spill] sm:$0xff] }
 0x23d   :  { %v1199_v30 = vadd.f32 %v1198_v48, %v1197_v59  ;;  %v1093_v59 = vmul.f32 %v4279_v1, %v4279_v1  ;;  %v1206_v48 = vsel %vm839_vm3, %v1091_v53, 0.0  ;;  %v1214_v53 = vsel %vm839_vm3, %v1095_v7, 0.0  ;;  %v4283_v7 = vld [vmem:[#allocation25_spill] sm:$0xff] }
 0x23f   :  { %v1201_v12 = vadd.f32 %v1200_v31, %v1199_v30  ;;  %v1208_v30 = vsel %vm839_vm3, %v1092_v9, 0.0  ;;  %v4280_v9 = vld [vmem:[#allocation13_spill] sm:$0xff] }
 0x241   :  { %v1203_v29 = vadd.f32 %v1202_v60, %v1201_v12  ;;  %v1210_v12 = vsel %vm839_vm3, %v1093_v59, 0.0  ;;  %v4281_v59 = vld [vmem:[#allocation15_spill] sm:$0xff] }
 0x243   :  { %v1205_v37 = vadd.f32 %v1204_v55, %v1203_v29  ;;  %v1096_v29 = vmul.f32 %v2903_v49, %v2903_v49 }
 0x245   :  { %v1207_v47 = vadd.f32 %v1206_v48, %v1205_v37  ;;  %v1097_v37 = vmul.f32 %v2907_v61, %v2907_v61 }
 0x247   :  { %v1209_v31 = vadd.f32 %v1208_v30, %v1207_v47  ;;  %v1098_v47 = vmul.f32 %v4280_v9, %v4280_v9  ;;  %v1216_v30 = vsel %vm839_vm3, %v1096_v29, 0.0  ;;  %v4284_v29 = vld [vmem:[#allocation26_spill] sm:$0xff] }
 0x249   :  { %v1211_v60 = vadd.f32 %v1210_v12, %v1209_v31  ;;  %v1099_v31 = vmul.f32 %v4281_v59, %v4281_v59  ;;  %v1218_v12 = vsel %vm839_vm3, %v1097_v37, 0.0 }
 0x24b   :  { %v1213_v55 = vadd.f32 %v1212_v46, %v1211_v60  ;;  %v1100_v60 = vmul.f32 %v4282_v13, %v4282_v13  ;;  %v1220_v46 = vsel %vm839_vm3, %v1098_v47, 0.0 }
 0x24d   :  { %v1215_v48 = vadd.f32 %v1214_v53, %v1213_v55  ;;  %v1101_v55 = vmul.f32 %v4283_v7, %v4283_v7  ;;  %v1222_v53 = vsel %vm839_vm3, %v1099_v31, 0.0 }
 0x24f   :  { %v1217_v35 = vadd.f32 %v1216_v30, %v1215_v48  ;;  %v1102_v48 = vmul.f32 %v4284_v29, %v4284_v29  ;;  %v1224_v30 = vsel %vm839_vm3, %v1100_v60, 0.0 }
 0x251   :  { %v1219_v49 = vadd.f32 %v1218_v12, %v1217_v35  ;;  %v1226_v35 = vsel %vm839_vm3, %v1101_v55, 0.0  ;;  %v1228_v12 = vsel %vm839_vm3, %v1102_v48, 0.0 }
 0x253   :  { %v1221_v61 = vadd.f32 %v1220_v46, %v1219_v49 }
 0x255   :  { %v1223_v9 = vadd.f32 %v1222_v53, %v1221_v61  ;;  %v1241_v53 = vlaneseq }
 0x257   :  { %v1225_v59 = vadd.f32 %v1224_v30, %v1223_v9  ;;  %v1242_v29 = vshrl.u32 %v1241_v53, 7  ;;  %v1239_v9 = vld [vmem:[%s4157_s2] sm:$0x1]  ;;  %v4290_v53 = vld [vmem:[#allocation3_spill] sm:$0xff] }
 0x258   :  { %v4285_v30 = vld [vmem:[#allocation18_spill] sm:$0xff] }
 0x259   :  { %v1227_v37 = vadd.f32 %v1226_v35, %v1225_v59  ;;  %v1243_v60 = vsub.s32 0, %v1242_v29  ;;  %v4286_v35 = vld [vmem:[#allocation19_spill] sm:$0xff] }
 0x25b   :  { %v1229_v13 = vadd.f32 %v1228_v12, %v1227_v37  ;;  %v4288_v37 = vld [vmem:[#allocation21_spill] sm:$0xff] }
 0x25d   :  { %v1230_v47 = vrot.slane %v1229_v13, 4 }
 0x25f   :  { %v1231_v49 = vadd.f32 %v1230_v47, %v1229_v13 }
 0x261   :  { %v1232_v46 = vrot.slane %v1231_v49, 2 }
 0x263   :  { %v1233_v23 = vadd.f32 %v1232_v46, %v1231_v49 }
 0x265   :  { %v1234_v7 = vrot.slane %v1233_v23, 1 }
 0x267   :  { %v1235_v1 = vadd.f32 %v1234_v7, %v1233_v23 }
 0x269   :  { %v1236_v31 = vmul.f32 0.001953125, %v1235_v1  ;;  %v4287_v1 = vld [vmem:[#allocation20_spill] sm:$0xff] }
 0x26b   :  { %v1237_v61 = vadd.f32 1e-05, %v1236_v31 }
 0x26d   :  { %2132 = vrsqrt.f32 %v1237_v61  ;;  %v4289_v61 = vld [vmem:[#allocation2_spill] sm:$0xff] }
 0x277   :  { %v2133_v59 = vpop.eup %2132 }
 0x278   :  { %v1240_v55 = vmul.f32 %v2133_v59, %v1239_v9  ;;  %v4291_v9 = vld [vmem:[#allocation4_spill] sm:$0xff] }
 0x27a   :  { %v3124_v48 = vrot.slane %v1240_v55, %v1243_v60 }
 0x27c   :  { %v3128_v13 = vmul.f32 %v3124_v48, %v4285_v30  ;;  %v3132_v23 = vmul.f32 %v3124_v48, %v4286_v35  ;;  %v3136_v7 = vmul.f32 %v3124_v48, %v4287_v1  ;;  %v3140_v12 = vmul.f32 %v3124_v48, %v4288_v37  ;;  %v4292_v30 = vld [vmem:[#allocation8_spill] sm:$0xff]  ;;  %v4293_v35 = vld [vmem:[#allocation9_spill] sm:$0xff]  ;;  %v4294_v1 = vld [vmem:[#allocation10_spill] sm:$0xff] }
 0x27d   :  { %v3144_v29 = vmul.f32 %v3124_v48, %v2691_v52  ;;  %v3148_v47 = vmul.f32 %v3124_v48, %v2695_v15  ;;  %v3152_v49 = vmul.f32 %v3124_v48, %v2699_v19  ;;  %v3156_v46 = vmul.f32 %v3124_v48, %v2703_v26  ;;  %v4298_v37 = vld [vmem:[#allocation16_spill] sm:$0xff] }
 0x27e   :  { %v3160_v31 = vmul.f32 %v3124_v48, %v2707_v32  ;;  %v3164_v52 = vmul.f32 %v3124_v48, %v2711_v38  ;;  %v3168_v15 = vmul.f32 %v3124_v48, %v2715_v44  ;;  %v3172_v19 = vmul.f32 %v3124_v48, %v2719_v50 }
 0x27f   :  { %v3176_v26 = vmul.f32 %v3124_v48, %v2723_v56  ;;  %v3180_v32 = vmul.f32 %v3124_v48, %v2727_v62  ;;  %v3184_v38 = vmul.f32 %v3124_v48, %v2731_v4  ;;  %v3188_v44 = vmul.f32 %v3124_v48, %v2735_v10 }
 0x280   :  { %v3192_v50 = vmul.f32 %v3124_v48, %v2739_v18  ;;  %v3196_v56 = vmul.f32 %v3124_v48, %v2743_v28  ;;  %v3200_v62 = vmul.f32 %v3124_v48, %v2747_v36  ;;  %v3204_v4 = vmul.f32 %v3124_v48, %v4289_v61 }
 0x281   :  { %v3208_v10 = vmul.f32 %v3124_v48, %v4290_v53  ;;  %v3212_v18 = vmul.f32 %v3124_v48, %v4291_v9  ;;  %v3216_v28 = vmul.f32 %v3124_v48, %v4274_v6  ;;  %v3220_v36 = vmul.f32 %v3124_v48, %v4275_v14  ;;  %v4300_v53 = vld [vmem:[#allocation17_spill] sm:$0xff] }
 0x282   :  { %v3224_v60 = vmul.f32 %v3124_v48, %v4276_v22  ;;  %v3228_v59 = vmul.f32 %v3124_v48, %v2775_v41  ;;  %v3232_v55 = vmul.f32 %v3124_v48, %v2779_v17  ;;  %v3236_v6 = vmul.f32 %v3124_v48, %v2783_v40 }
 0x283   :  { %v3240_v14 = vmul.f32 %v3124_v48, %v2787_v24  ;;  %v3244_v22 = vmul.f32 %v3124_v48, %v2791_v34  ;;  %v3248_v41 = vmul.f32 %v3124_v48, %v2795_v25  ;;  %v3252_v17 = vmul.f32 %v3124_v48, %v2799_v2 }
 0x284   :  { %v3256_v40 = vmul.f32 %v3124_v48, %v2803_v42  ;;  %v3260_v24 = vmul.f32 %v3124_v48, %v2807_v8  ;;  %v3264_v34 = vmul.f32 %v3124_v48, %v2811_v58  ;;  %v3268_v25 = vmul.f32 %v3124_v48, %v2815_v43 }
 0x285   :  { %v3272_v2 = vmul.f32 %v3124_v48, %v2819_v3  ;;  %v3276_v42 = vmul.f32 %v3124_v48, %v2823_v16  ;;  %v3280_v8 = vmul.f32 %v3124_v48, %v2827_v20  ;;  %v3284_v58 = vmul.f32 %v3124_v48, %v2831_v27 }
 0x286   :  { %v3288_v43 = vmul.f32 %v3124_v48, %v2835_v33  ;;  %v3292_v3 = vmul.f32 %v3124_v48, %v2839_v39  ;;  %v3296_v16 = vmul.f32 %v3124_v48, %v2843_v45  ;;  %v3300_v20 = vmul.f32 %v3124_v48, %v2847_v51 }
 0x287   :  { %v3304_v27 = vmul.f32 %v3124_v48, %v2851_v57  ;;  %v3308_v33 = vmul.f32 %v3124_v48, %v2855_v63  ;;  %v3312_v39 = vmul.f32 %v3124_v48, %v2859_v5  ;;  %v3316_v45 = vmul.f32 %v3124_v48, %v2863_v11 }
 0x288   :  { %v3320_v51 = vmul.f32 %v3124_v48, %v2867_v21  ;;  %v3324_v57 = vmul.f32 %v3124_v48, %v4292_v30  ;;  %v3328_v63 = vmul.f32 %v3124_v48, %v4293_v35  ;;  %v3332_v5 = vmul.f32 %v3124_v48, %v4294_v1  ;;  %v3353_v30 = vld [vmem:[%s4158_s3] ss:$0 sm:$0xff]  ;;  %v4304_v1 = vld [vmem:[#allocation23_spill] sm:$0xff] }
 0x289   :  { %v3336_v11 = vmul.f32 %v3124_v48, %v4277_v54  ;;  %v3340_v21 = vmul.f32 %v3124_v48, %v4278_v0  ;;  %v3344_v61 = vmul.f32 %v3124_v48, %v4298_v37  ;;  %v3348_v9 = vmul.f32 %v3124_v48, %v4300_v53  ;;  %v4302_v35 = vld [vmem:[#allocation22_spill] sm:$0xff] }
 0x28a   :  { %4295 = vst [vmem:[#allocation5_spill] sm:$0xff] %v3332_v5  ;;  %v3357_v54 = vmul.f32 %v3124_v48, %v4302_v35  ;;  %v3361_v0 = vmul.f32 %v3124_v48, %v4304_v1  ;;  %v4309_v5 = vld [vmem:[#allocation24_spill] sm:$0xff] }
 0x28b   :  { %4296 = vst [vmem:[#allocation6_spill] sm:$0xff] %v3336_v11  ;;  %4297 = vst [vmem:[#allocation7_spill] sm:$0xff] %v3340_v21  ;;  %v4306_v21 = vld [vmem:[#allocation11_spill] sm:$0xff]  ;;  %v3377_v35 = vmul.f32 %v3124_v48, %v4309_v5  ;;  %v3397_v5 = vadd.f32 %v3353_v30, %v3136_v7  ;;  %v3417_v7 = vadd.f32 %v3353_v30, %v3156_v46 }
 0x28c   :  { %4299 = vst [vmem:[#allocation12_spill] sm:$0xff] %v3344_v61  ;;  %4301 = vst [vmem:[#allocation14_spill] sm:$0xff] %v3348_v9  ;;  %v3365_v37 = vmul.f32 %v3124_v48, %v4306_v21  ;;  %v4307_v61 = vld [vmem:[#allocation13_spill] sm:$0xff]  ;;  %v4308_v9 = vld [vmem:[#allocation15_spill] sm:$0xff]  ;;  %v3437_v46 = vadd.f32 %v3353_v30, %v3176_v26  ;;  %v3457_v26 = vadd.f32 %v3353_v30, %v3196_v56 }
 0x28d   :  { %4303 = vst [vmem:[#allocation18_spill] sm:$0xff] %v3357_v54  ;;  %4305 = vst [vmem:[#allocation19_spill] sm:$0xff] %v3361_v0  ;;  %v3369_v53 = vmul.f32 %v3124_v48, %v4307_v61  ;;  %v3373_v11 = vmul.f32 %v3124_v48, %v4308_v9  ;;  %v4310_v54 = vld [vmem:[#allocation25_spill] sm:$0xff]  ;;  %v4311_v0 = vld [vmem:[#allocation26_spill] sm:$0xff]  ;;  %v3389_v61 = vadd.f32 %v3353_v30, %v3128_v13 }
 0x28e   :  { %v3381_v1 = vmul.f32 %v3124_v48, %v4310_v54  ;;  %v3385_v21 = vmul.f32 %v3124_v48, %v4311_v0  ;;  %v3393_v9 = vadd.f32 %v3353_v30, %v3132_v23  ;;  %v3401_v54 = vadd.f32 %v3353_v30, %v3140_v12 }
 0x28f   :  { %v3405_v48 = vadd.f32 %v3353_v30, %v3144_v29  ;;  %v3409_v13 = vadd.f32 %v3353_v30, %v3148_v47  ;;  %v3413_v23 = vadd.f32 %v3353_v30, %v3152_v49  ;;  %v3421_v12 = vadd.f32 %v3353_v30, %v3160_v31 }
 0x290   :  { %v3425_v29 = vadd.f32 %v3353_v30, %v3164_v52  ;;  %v3429_v47 = vadd.f32 %v3353_v30, %v3168_v15  ;;  %v3433_v49 = vadd.f32 %v3353_v30, %v3172_v19  ;;  %v3441_v31 = vadd.f32 %v3353_v30, %v3180_v32 }
 0x291   :  { %v3445_v52 = vadd.f32 %v3353_v30, %v3184_v38  ;;  %v3449_v15 = vadd.f32 %v3353_v30, %v3188_v44  ;;  %v3453_v19 = vadd.f32 %v3353_v30, %v3192_v50  ;;  %v3461_v32 = vadd.f32 %v3353_v30, %v3200_v62  ;;  %v4322_v0 = vld [vmem:[#allocation5_spill] sm:$0xff] }
 0x292   :  { %v3465_v38 = vadd.f32 %v3353_v30, %v3204_v4  ;;  %v3469_v44 = vadd.f32 %v3353_v30, %v3208_v10  ;;  %v3473_v50 = vadd.f32 %v3353_v30, %v3212_v18  ;;  %v3477_v56 = vadd.f32 %v3353_v30, %v3216_v28 }
 0x293   :  { %v3481_v62 = vadd.f32 %v3353_v30, %v3220_v36  ;;  %v3485_v4 = vadd.f32 %v3353_v30, %v3224_v60  ;;  %v3489_v10 = vadd.f32 %v3353_v30, %v3228_v59  ;;  %v3493_v18 = vadd.f32 %v3353_v30, %v3232_v55 }
 0x294   :  { %v3497_v28 = vadd.f32 %v3353_v30, %v3236_v6  ;;  %v3501_v36 = vadd.f32 %v3353_v30, %v3240_v14  ;;  %v3505_v60 = vadd.f32 %v3353_v30, %v3244_v22  ;;  %v3509_v59 = vadd.f32 %v3353_v30, %v3248_v41 }
 0x295   :  { %v3513_v55 = vadd.f32 %v3353_v30, %v3252_v17  ;;  %v3517_v6 = vadd.f32 %v3353_v30, %v3256_v40  ;;  %v3521_v14 = vadd.f32 %v3353_v30, %v3260_v24  ;;  %v3525_v22 = vadd.f32 %v3353_v30, %v3264_v34 }
 0x296   :  { %v3529_v41 = vadd.f32 %v3353_v30, %v3268_v25  ;;  %v3533_v17 = vadd.f32 %v3353_v30, %v3272_v2  ;;  %v3537_v40 = vadd.f32 %v3353_v30, %v3276_v42  ;;  %v3541_v24 = vadd.f32 %v3353_v30, %v3280_v8 }
 0x297   :  { %v3545_v34 = vadd.f32 %v3353_v30, %v3284_v58  ;;  %v3549_v25 = vadd.f32 %v3353_v30, %v3288_v43  ;;  %v3553_v2 = vadd.f32 %v3353_v30, %v3292_v3  ;;  %v3557_v42 = vadd.f32 %v3353_v30, %v3296_v16 }
 0x298   :  { %4312 = vst [vmem:[#allocation20_spill] sm:$0xff] %v3533_v17  ;;  %4313 = vst [vmem:[#allocation21_spill] sm:$0xff] %v3537_v40  ;;  %v3561_v8 = vadd.f32 %v3353_v30, %v3300_v20  ;;  %v3565_v58 = vadd.f32 %v3353_v30, %v3304_v27  ;;  %v3569_v43 = vadd.f32 %v3353_v30, %v3308_v33 }
 0x299   :  { %4314 = vst [vmem:[#allocation2_spill] sm:$0xff] %v3541_v24  ;;  %4315 = vst [vmem:[#allocation3_spill] sm:$0xff] %v3545_v34  ;;  %v3573_v3 = vadd.f32 %v3353_v30, %v3312_v39  ;;  %v3577_v16 = vadd.f32 %v3353_v30, %v3316_v45  ;;  %v3581_v20 = vadd.f32 %v3353_v30, %v3320_v51 }
 0x29a   :  { %4316 = vst [vmem:[#allocation4_spill] sm:$0xff] %v3549_v25  ;;  %v3585_v27 = vadd.f32 %v3353_v30, %v3324_v57  ;;  %v3589_v33 = vadd.f32 %v3353_v30, %v3328_v63  ;;  %v3593_v39 = vadd.f32 %v3353_v30, %v4322_v0 }
 0x29b   :  { %4317 = vst [vmem:[#allocation8_spill] sm:$0xff] %v3573_v3  ;;  %4318 = vst [vmem:[#allocation9_spill] sm:$0xff] %v3577_v16  ;;  %v4324_v3 = vld [vmem:[#allocation6_spill] sm:$0xff]  ;;  %v4325_v16 = vld [vmem:[#allocation7_spill] sm:$0xff] }
 0x29c   :  { %4319 = vst [vmem:[#allocation10_spill] sm:$0xff] %v3581_v20  ;;  %4320 = vst [vmem:[#allocation16_spill] sm:$0xff] %v3585_v27  ;;  %v3597_v45 = vadd.f32 %v3353_v30, %v4324_v3  ;;  %v3601_v51 = vadd.f32 %v3353_v30, %v4325_v16  ;;  %v4326_v20 = vld [vmem:[#allocation12_spill] sm:$0xff]  ;;  %v4327_v27 = vld [vmem:[#allocation14_spill] sm:$0xff]  ;;  %v3621_v16 = vadd.f32 %v3353_v30, %v3365_v37 }
 0x29d   :  { %4321 = vst [vmem:[#allocation17_spill] sm:$0xff] %v3589_v33  ;;  %4323 = vst [vmem:[#allocation22_spill] sm:$0xff] %v3593_v39  ;;  %v3605_v57 = vadd.f32 %v3353_v30, %v4326_v20  ;;  %v3609_v63 = vadd.f32 %v3353_v30, %v4327_v27  ;;  %v4328_v33 = vld [vmem:[#allocation18_spill] sm:$0xff]  ;;  %v4329_v39 = vld [vmem:[#allocation19_spill] sm:$0xff]  ;;  %v3625_v20 = vadd.f32 %v3353_v30, %v3369_v53 }
 0x29e   :  { %v3613_v0 = vadd.f32 %v3353_v30, %v4328_v33  ;;  %v3617_v3 = vadd.f32 %v3353_v30, %v4329_v39  ;;  %4330 = vst [vmem:[#allocation23_spill] sm:$0xff] %v3621_v16  ;;  %v3629_v27 = vadd.f32 %v3353_v30, %v3373_v11  ;;  %v3633_v33 = vadd.f32 %v3353_v30, %v3377_v35 }
 0x29f   :  { %4331 = vst [vmem:[#allocation11_spill] sm:$0xff] %v3625_v20  ;;  %v3637_v39 = vadd.f32 %v3353_v30, %v3381_v1  ;;  %v3641_v37 = vadd.f32 %v3353_v30, %v3385_v21  ;;  %v4342_v40 = vmov %v3625_v20  ;;  %v4349_v21 = vmax.f32 %v3401_v54, 0.0 }
 0x2a0   :  { %4332 = vst [vmem:[#allocation13_spill] sm:$0xff] %v3629_v27  ;;  %4333 = vst [vmem:[#allocation15_spill] sm:$0xff] %v3633_v33  ;;  %v4343_v24 = vmov %v3629_v27  ;;  %v4344_v34 = vmov %v3633_v33  ;;  %v4346_v27 = vmax.f32 %v3389_v61, 0.0  ;;  %v4347_v33 = vmax.f32 %v3393_v9, 0.0 }
 0x2a1   :  { %4334 = vst [vmem:[#allocation24_spill] sm:$0xff] %v3637_v39  ;;  %v4345_v25 = vmov %v3637_v39  ;;  %v4348_v39 = vmax.f32 %v3397_v5, 0.0  ;;  %v1943_v53 = vpack.c.bf16 %v4349_v21, %v4349_v21  ;;  %v4350_v20 = vmax.f32 %v3405_v48, 0.0 }
 0x2a2   :  { %v4335_v16 = vld [vmem:[#allocation8_spill] sm:$0xff]  ;;  %v1940_v35 = vpack.c.bf16 %v4346_v27, %v4346_v27  ;;  %v1941_v1 = vpack.c.bf16 %v4347_v33, %v4347_v33  ;;  %v4351_v61 = vmax.f32 %v3409_v13, 0.0  ;;  %v4352_v9 = vmax.f32 %v3413_v23, 0.0 }
 0x2a3   :  { %v1942_v30 = vpack.c.bf16 %v4348_v39, %v4348_v39  ;;  %v1944_v11 = vpack.c.bf16 %v4350_v20, %v4350_v20  ;;  %v4353_v5 = vmax.f32 %v3417_v7, 0.0  ;;  %v4354_v54 = vmax.f32 %v3421_v12, 0.0  ;;  %1704 = vst.msk [vmem:[%s4159_s4 + $0xc] sm:$0xf] %vm1700_vm4, %v1943_v53 }
 0x2a4   :  { %v1945_v27 = vpack.c.bf16 %v4351_v61, %v4351_v61  ;;  %v1946_v33 = vpack.c.bf16 %v4352_v9, %v4352_v9  ;;  %v4355_v48 = vmax.f32 %v3425_v29, 0.0  ;;  %v4356_v13 = vmax.f32 %v3429_v47, 0.0  ;;  %1701 = vst.msk [vmem:[%s4159_s4] sm:$0xf] %vm1700_vm4, %v1940_v35  ;;  %1702 = vst.msk [vmem:[%s4159_s4 + $0x4] sm:$0xf] %vm1700_vm4, %v1941_v1 }
 0x2a5   :  { %v4341_v17 = vld [vmem:[#allocation23_spill] sm:$0xff]  ;;  %v1947_v39 = vpack.c.bf16 %v4353_v5, %v4353_v5  ;;  %v1948_v21 = vpack.c.bf16 %v4354_v54, %v4354_v54  ;;  %v4357_v23 = vmax.f32 %v3433_v49, 0.0  ;;  %1703 = vst.msk [vmem:[%s4159_s4 + $0x8] sm:$0xf] %vm1700_vm4, %v1942_v30  ;;  %v4358_v7 = vmax.f32 %v3437_v46, 0.0 }
 0x2a6   :  { %v1949_v20 = vpack.c.bf16 %v4355_v48, %v4355_v48  ;;  %v1950_v61 = vpack.c.bf16 %v4356_v13, %v4356_v13  ;;  %v4359_v29 = vmax.f32 %v3441_v31, 0.0  ;;  %v4360_v49 = vmax.f32 %v3445_v52, 0.0  ;;  %1705 = vst.msk [vmem:[%s4159_s4 + $0x10] sm:$0xf] %vm1700_vm4, %v1944_v11  ;;  %1706 = vst.msk [vmem:[%s4159_s4 + $0x14] sm:$0xf] %vm1700_vm4, %v1945_v27 }
 0x2a7   :  { %v1951_v9 = vpack.c.bf16 %v4357_v23, %v4357_v23  ;;  %v1952_v12 = vpack.c.bf16 %v4358_v7, %v4358_v7  ;;  %v4361_v1 = vmax.f32 %v3449_v15, 0.0  ;;  %1707 = vst.msk [vmem:[%s4159_s4 + $0x18] sm:$0xf] %vm1700_vm4, %v1946_v33  ;;  %1708 = vst.msk [vmem:[%s4159_s4 + $0x1c] sm:$0xf] %vm1700_vm4, %v1947_v39  ;;  %v4362_v46 = vmax.f32 %v3453_v19, 0.0 }
 0x2a8   :  { %v1953_v47 = vpack.c.bf16 %v4359_v29, %v4359_v29  ;;  %v1954_v35 = vpack.c.bf16 %v4360_v49, %v4360_v49  ;;  %v4363_v52 = vmax.f32 %v3457_v26, 0.0  ;;  %v4364_v53 = vmax.f32 %v3461_v32, 0.0  ;;  %1709 = vst.msk [vmem:[%s4159_s4 + $0x20] sm:$0xf] %vm1700_vm4, %v1948_v21  ;;  %1710 = vst.msk [vmem:[%s4159_s4 + $0x24] sm:$0xf] %vm1700_vm4, %v1949_v20 }
 0x2a9   :  { %v1955_v30 = vpack.c.bf16 %v4361_v1, %v4361_v1  ;;  %v1956_v31 = vpack.c.bf16 %v4362_v46, %v4362_v46  ;;  %v4365_v27 = vmax.f32 %v3465_v38, 0.0  ;;  %1711 = vst.msk [vmem:[%s4159_s4 + $0x28] sm:$0xf] %vm1700_vm4, %v1950_v61  ;;  %1712 = vst.msk [vmem:[%s4159_s4 + $0x2c] sm:$0xf] %vm1700_vm4, %v1951_v9  ;;  %v4366_v19 = vmax.f32 %v3469_v44, 0.0 }
 0x2aa   :  { %v1957_v15 = vpack.c.bf16 %v4363_v52, %v4363_v52  ;;  %v1958_v11 = vpack.c.bf16 %v4364_v53, %v4364_v53  ;;  %v4367_v32 = vmax.f32 %v3473_v50, 0.0  ;;  %v4368_v5 = vmax.f32 %v3477_v56, 0.0  ;;  %1713 = vst.msk [vmem:[%s4159_s4 + $0x30] sm:$0xf] %vm1700_vm4, %v1952_v12  ;;  %1714 = vst.msk [vmem:[%s4159_s4 + $0x34] sm:$0xf] %vm1700_vm4, %v1953_v47 }
 0x2ab   :  { %v1959_v33 = vpack.c.bf16 %v4365_v27, %v4365_v27  ;;  %v1960_v26 = vpack.c.bf16 %v4366_v19, %v4366_v19  ;;  %v4369_v54 = vmax.f32 %v3481_v62, 0.0  ;;  %1715 = vst.msk [vmem:[%s4159_s4 + $0x38] sm:$0xf] %vm1700_vm4, %v1954_v35  ;;  %1716 = vst.msk [vmem:[%s4159_s4 + $0x3c] sm:$0xf] %vm1700_vm4, %v1955_v30  ;;  %v4370_v44 = vmax.f32 %v3485_v4, 0.0 }
 0x2ac   :  { %v1961_v38 = vpack.c.bf16 %v4367_v32, %v4367_v32  ;;  %v1962_v39 = vpack.c.bf16 %v4368_v5, %v4368_v5  ;;  %v4371_v56 = vmax.f32 %v3489_v10, 0.0  ;;  %v4372_v48 = vmax.f32 %v3493_v18, 0.0  ;;  %1717 = vst.msk [vmem:[%s4159_s4 + $0x40] sm:$0xf] %vm1700_vm4, %v1956_v31  ;;  %1718 = vst.msk [vmem:[%s4159_s4 + $0x44] sm:$0xf] %vm1700_vm4, %v1957_v15 }
 0x2ad   :  { %v1963_v21 = vpack.c.bf16 %v4369_v54, %v4369_v54  ;;  %v1964_v50 = vpack.c.bf16 %v4370_v44, %v4370_v44  ;;  %v4373_v13 = vmax.f32 %v3497_v28, 0.0  ;;  %1719 = vst.msk [vmem:[%s4159_s4 + $0x48] sm:$0xf] %vm1700_vm4, %v1958_v11  ;;  %1720 = vst.msk [vmem:[%s4159_s4 + $0x4c] sm:$0xf] %vm1700_vm4, %v1959_v33  ;;  %v4374_v4 = vmax.f32 %v3501_v36, 0.0 }
 0x2ae   :  { %v1965_v62 = vpack.c.bf16 %v4371_v56, %v4371_v56  ;;  %v1966_v20 = vpack.c.bf16 %v4372_v48, %v4372_v48  ;;  %v4375_v18 = vmax.f32 %v3505_v60, 0.0  ;;  %v4376_v23 = vmax.f32 %v3509_v59, 0.0  ;;  %1721 = vst.msk [vmem:[%s4159_s4 + $0x50] sm:$0xf] %vm1700_vm4, %v1960_v26  ;;  %1722 = vst.msk [vmem:[%s4159_s4 + $0x54] sm:$0xf] %vm1700_vm4, %v1961_v38 }
 0x2af   :  { %v1967_v61 = vpack.c.bf16 %v4373_v13, %v4373_v13  ;;  %v1968_v10 = vpack.c.bf16 %v4374_v4, %v4374_v4  ;;  %v4377_v7 = vmax.f32 %v3513_v55, 0.0  ;;  %1723 = vst.msk [vmem:[%s4159_s4 + $0x58] sm:$0xf] %vm1700_vm4, %v1962_v39  ;;  %1724 = vst.msk [vmem:[%s4159_s4 + $0x5c] sm:$0xf] %vm1700_vm4, %v1963_v21  ;;  %v4378_v36 = vmax.f32 %v3517_v6, 0.0 }
 0x2b0   :  { %v1969_v28 = vpack.c.bf16 %v4375_v18, %v4375_v18  ;;  %v1970_v9 = vpack.c.bf16 %v4376_v23, %v4376_v23  ;;  %v4379_v59 = vmax.f32 %v3521_v14, 0.0  ;;  %v4380_v29 = vmax.f32 %v3525_v22, 0.0  ;;  %1725 = vst.msk [vmem:[%s4159_s4 + $0x60] sm:$0xf] %vm1700_vm4, %v1964_v50  ;;  %1726 = vst.msk [vmem:[%s4159_s4 + $0x64] sm:$0xf] %vm1700_vm4, %v1965_v62 }
 0x2b1   :  { %v1971_v12 = vpack.c.bf16 %v4377_v7, %v4377_v7  ;;  %v1972_v60 = vpack.c.bf16 %v4378_v36, %v4378_v36  ;;  %v4381_v49 = vmax.f32 %v3529_v41, 0.0  ;;  %1727 = vst.msk [vmem:[%s4159_s4 + $0x68] sm:$0xf] %vm1700_vm4, %v1966_v20  ;;  %1728 = vst.msk [vmem:[%s4159_s4 + $0x6c] sm:$0xf] %vm1700_vm4, %v1967_v61  ;;  %v4382_v6 = vld [vmem:[#allocation20_spill] sm:$0xff] }
 0x2b2   :  { %v1973_v55 = vpack.c.bf16 %v4379_v59, %v4379_v59  ;;  %v1974_v47 = vpack.c.bf16 %v4380_v29, %v4380_v29  ;;  %v4383_v14 = vmax.f32 %v4382_v6, 0.0  ;;  %v4384_v41 = vld [vmem:[#allocation21_spill] sm:$0xff]  ;;  %v4386_v46 = vld [vmem:[#allocation2_spill] sm:$0xff]  ;;  %v4388_v15 = vld [vmem:[#allocation3_spill] sm:$0xff]  ;;  %1729 = vst.msk [vmem:[%s4159_s4 + $0x70] sm:$0xf] %vm1700_vm4, %v1968_v10 }
 0x2b3   :  { %v1975_v35 = vpack.c.bf16 %v4381_v49, %v4381_v49  ;;  %v4385_v1 = vmax.f32 %v4384_v41, 0.0  ;;  %v4387_v31 = vmax.f32 %v4386_v46, 0.0  ;;  %v4389_v53 = vmax.f32 %v4388_v15, 0.0  ;;  %1730 = vst.msk [vmem:[%s4159_s4 + $0x74] sm:$0xf] %vm1700_vm4, %v1969_v28  ;;  %v4390_v27 = vld [vmem:[#allocation4_spill] sm:$0xff] }
 0x2b4   :  { %v1976_v22 = vpack.c.bf16 %v4383_v14, %v4383_v14  ;;  %1731 = vst.msk [vmem:[%s4159_s4 + $0x78] sm:$0xf] %vm1700_vm4, %v1970_v9  ;;  %1732 = vst.msk [vmem:[%s4159_s4 + $0x7c] sm:$0xf] %vm1700_vm4, %v1971_v12  ;;  %v4391_v33 = vmax.f32 %v4390_v27, 0.0  ;;  %v4392_v26 = vmax.f32 %v3553_v2, 0.0 }
 0x2b5   :  { %v1977_v30 = vpack.c.bf16 %v4385_v1, %v4385_v1  ;;  %v1978_v52 = vpack.c.bf16 %v4387_v31, %v4387_v31  ;;  %v1979_v11 = vpack.c.bf16 %v4389_v53, %v4389_v53  ;;  %v4393_v38 = vmax.f32 %v3557_v42, 0.0  ;;  %1733 = vst.msk [vmem:[%s4159_s4 + $0x80] sm:$0xf] %vm1700_vm4, %v1972_v60  ;;  %1734 = vst.msk [vmem:[%s4159_s4 + $0x84] sm:$0xf] %vm1700_vm4, %v1973_v55  ;;  %v4398_v56 = vld [vmem:[#allocation9_spill] sm:$0xff] }
 0x2b6   :  { %v1980_v19 = vpack.c.bf16 %v4391_v33, %v4391_v33  ;;  %v1981_v32 = vpack.c.bf16 %v4392_v26, %v4392_v26  ;;  %v4394_v39 = vmax.f32 %v3561_v8, 0.0  ;;  %1735 = vst.msk [vmem:[%s4159_s4 + $0x88] sm:$0xf] %vm1700_vm4, %v1974_v47  ;;  %1736 = vst.msk [vmem:[%s4159_s4 + $0x8c] sm:$0xf] %vm1700_vm4, %v1975_v35  ;;  %v4395_v2 = vmax.f32 %v3565_v58, 0.0 }
 0x2b7   :  { %v1982_v5 = vpack.c.bf16 %v4393_v38, %v4393_v38  ;;  %v4396_v8 = vmax.f32 %v3569_v43, 0.0  ;;  %v4397_v44 = vmax.f32 %v4335_v16, 0.0  ;;  %v4399_v62 = vmax.f32 %v4398_v56, 0.0  ;;  %1737 = vst.msk [vmem:[%s4159_s4 + $0x90] sm:$0xf] %vm1700_vm4, %v1976_v22  ;;  %v4400_v58 = vld [vmem:[#allocation10_spill] sm:$0xff] }
 0x2b8   :  { %v1983_v54 = vpack.c.bf16 %v4394_v39, %v4394_v39  ;;  %v1984_v42 = vpack.c.bf16 %v4395_v2, %v4395_v2  ;;  %1738 = vst.msk [vmem:[%s4159_s4 + $0x94] sm:$0xf] %vm1700_vm4, %v1977_v30  ;;  %1739 = vst.msk [vmem:[%s4159_s4 + $0x98] sm:$0xf] %vm1700_vm4, %v1978_v52  ;;  %v4401_v43 = vmax.f32 %v4400_v58, 0.0  ;;  %v4402_v20 = vld [vmem:[#allocation16_spill] sm:$0xff] }
 0x2b9   :  { %v1985_v21 = vpack.c.bf16 %v4396_v8, %v4396_v8  ;;  %v1986_v50 = vpack.c.bf16 %v4397_v44, %v4397_v44  ;;  %v1987_v48 = vpack.c.bf16 %v4399_v62, %v4399_v62  ;;  %1740 = vst.msk [vmem:[%s4159_s4 + $0x9c] sm:$0xf] %vm1700_vm4, %v1979_v11  ;;  %v4403_v13 = vmax.f32 %v4402_v20, 0.0  ;;  %v4404_v4 = vld [vmem:[#allocation17_spill] sm:$0xff]  ;;  %v4406_v28 = vld [vmem:[#allocation22_spill] sm:$0xff] }
 0x2ba   :  { %v1988_v16 = vpack.c.bf16 %v4401_v43, %v4401_v43  ;;  %v4405_v10 = vmax.f32 %v4404_v4, 0.0  ;;  %v4407_v23 = vmax.f32 %v4406_v28, 0.0  ;;  %1741 = vst.msk [vmem:[%s4159_s4 + $0xa0] sm:$0xf] %vm1700_vm4, %v1980_v19  ;;  %1742 = vst.msk [vmem:[%s4159_s4 + $0xa4] sm:$0xf] %vm1700_vm4, %v1981_v32 }
 0x2bb   :  { %v1989_v61 = vpack.c.bf16 %v4403_v13, %v4403_v13  ;;  %1743 = vst.msk [vmem:[%s4159_s4 + $0xa8] sm:$0xf] %vm1700_vm4, %v1982_v5  ;;  %1744 = vst.msk [vmem:[%s4159_s4 + $0xac] sm:$0xf] %vm1700_vm4, %v1983_v54  ;;  %v4408_v7 = vmax.f32 %v3597_v45, 0.0  ;;  %v4409_v36 = vmax.f32 %v3601_v51, 0.0 }
 0x2bc   :  { %v1990_v18 = vpack.c.bf16 %v4405_v10, %v4405_v10  ;;  %v1991_v9 = vpack.c.bf16 %v4407_v23, %v4407_v23  ;;  %v4410_v59 = vmax.f32 %v3605_v57, 0.0  ;;  %v4411_v29 = vmax.f32 %v3609_v63, 0.0  ;;  %1745 = vst.msk [vmem:[%s4159_s4 + $0xb0] sm:$0xf] %vm1700_vm4, %v1984_v42  ;;  %1746 = vst.msk [vmem:[%s4159_s4 + $0xb4] sm:$0xf] %vm1700_vm4, %v1985_v21 }
 0x2bd   :  { %v1992_v12 = vpack.c.bf16 %v4408_v7, %v4408_v7  ;;  %v1993_v60 = vpack.c.bf16 %v4409_v36, %v4409_v36  ;;  %1747 = vst.msk [vmem:[%s4159_s4 + $0xb8] sm:$0xf] %vm1700_vm4, %v1986_v50  ;;  %1748 = vst.msk [vmem:[%s4159_s4 + $0xbc] sm:$0xf] %vm1700_vm4, %v1987_v48  ;;  %v4412_v45 = vmax.f32 %v3613_v0, 0.0  ;;  %v4413_v57 = vmax.f32 %v3617_v3, 0.0 }
 0x2be   :  { %v1994_v55 = vpack.c.bf16 %v4410_v59, %v4410_v59  ;;  %v1995_v47 = vpack.c.bf16 %v4411_v29, %v4411_v29  ;;  %v4414_v49 = vmax.f32 %v4341_v17, 0.0  ;;  %v4415_v6 = vmax.f32 %v4342_v40, 0.0  ;;  %1749 = vst.msk [vmem:[%s4159_s4 + $0xc0] sm:$0xf] %vm1700_vm4, %v1988_v16  ;;  %1750 = vst.msk [vmem:[%s4159_s4 + $0xc4] sm:$0xf] %vm1700_vm4, %v1989_v61 }
 0x2bf   :  { %v1996_v51 = vpack.c.bf16 %v4412_v45, %v4412_v45  ;;  %v1997_v63 = vpack.c.bf16 %v4413_v57, %v4413_v57  ;;  %1751 = vst.msk [vmem:[%s4159_s4 + $0xc8] sm:$0xf] %vm1700_vm4, %v1990_v18  ;;  %1752 = vst.msk [vmem:[%s4159_s4 + $0xcc] sm:$0xf] %vm1700_vm4, %v1991_v9  ;;  %v4416_v17 = vmax.f32 %v4343_v24, 0.0  ;;  %v4417_v0 = vmax.f32 %v4344_v34, 0.0 }
 0x2c0   :  { %v1998_v35 = vpack.c.bf16 %v4414_v49, %v4414_v49  ;;  %v1999_v14 = vpack.c.bf16 %v4415_v6, %v4415_v6  ;;  %v4418_v22 = vmax.f32 %v4345_v25, 0.0  ;;  %v4419_v1 = vmax.f32 %v3641_v37, 0.0  ;;  %1753 = vst.msk [vmem:[%s4159_s4 + $0xd0] sm:$0xf] %vm1700_vm4, %v1992_v12  ;;  %1754 = vst.msk [vmem:[%s4159_s4 + $0xd4] sm:$0xf] %vm1700_vm4, %v1993_v60 }
 0x2c1   :  { %v2000_v40 = vpack.c.bf16 %v4416_v17, %v4416_v17  ;;  %v2001_v3 = vpack.c.bf16 %v4417_v0, %v4417_v0  ;;  %1755 = vst.msk [vmem:[%s4159_s4 + $0xd8] sm:$0xf] %vm1700_vm4, %v1994_v55  ;;  %1756 = vst.msk [vmem:[%s4159_s4 + $0xdc] sm:$0xf] %vm1700_vm4, %v1995_v47 }
 0x2c2   :  { %v2002_v41 = vpack.c.bf16 %v4418_v22, %v4418_v22  ;;  %v2003_v30 = vpack.c.bf16 %v4419_v1, %v4419_v1  ;;  %1757 = vst.msk [vmem:[%s4159_s4 + $0xe0] sm:$0xf] %vm1700_vm4, %v1996_v51  ;;  %1758 = vst.msk [vmem:[%s4159_s4 + $0xe4] sm:$0xf] %vm1700_vm4, %v1997_v63 }
 0x2c3   :  { %1759 = vst.msk [vmem:[%s4159_s4 + $0xe8] sm:$0xf] %vm1700_vm4, %v1998_v35  ;;  %1760 = vst.msk [vmem:[%s4159_s4 + $0xec] sm:$0xf] %vm1700_vm4, %v1999_v14 }
 0x2c4   :  { %1761 = vst.msk [vmem:[%s4159_s4 + $0xf0] sm:$0xf] %vm1700_vm4, %v2000_v40  ;;  %1762 = vst.msk [vmem:[%s4159_s4 + $0xf4] sm:$0xf] %vm1700_vm4, %v2001_v3 }
 0x2c5   :  { %1763 = vst.msk [vmem:[%s4159_s4 + $0xf8] sm:$0xf] %vm1700_vm4, %v2002_v41  ;;  %1764 = vst.msk [vmem:[%s4159_s4 + $0xfc] sm:$0xf] %vm1700_vm4, %v2003_v30 }

// kernel: base_model_forward.7
= control target key start
LH: loop header
LB: loop body
LE: loop exit
PB: predicated region body
PF: predicated region fallthrough
CT: control target
= control target key end

     0   :  { %vm554_vm0 = vcmask 523264   ;;  %vm1106_vm1 = vcmask 519168   ;;  %s2005_s1 = inlined_call_operand.vmem [shape: bf16[576,64], index: 1, kind: input, shape index: {}]   ;;  %s2006_s0 = inlined_call_operand.vmem [shape: bf16[128,576], index: 0, kind: input, shape index: {}]   ;;  %s2007_s2 = inlined_call_operand.vmem [shape: f32[1,64], index: 2, kind: input, shape index: {}]   ;;  %s2008_s3 = inlined_call_operand.vmem [shape: f32[1,64], index: 3, kind: input, shape index: {}]   ;;  %s2009_s4 = inlined_call_operand.vmem [shape: bf16[128,64], index: 4, kind: output, shape index: {}]  }
   0x1   :  { %v1416_v0 = vld [vmem:[%s2005_s1 + $0x40] sm:$0xff]   ;;  %v1420_v4 = vld [vmem:[%s2005_s1 + $0x48] sm:$0xff]   ;;  %v1424_v8 = vld [vmem:[%s2005_s1 + $0x50] sm:$0xff]  }
   0x2   :  { %v1417_v1 = vld [vmem:[%s2005_s1 + $0xc0] sm:$0xff]   ;;  %1244 = vmatprep.subr.bf16.mxu0 %v1416_v0  ;;  %v1421_v5 = vld [vmem:[%s2005_s1 + $0xc8] sm:$0xff]   ;;  %v1425_v9 = vld [vmem:[%s2005_s1 + $0xd0] sm:$0xff]  }
   0x3   :  { %v1418_v2 = vld [vmem:[%s2005_s1] sm:$0xff]   ;;  %1308 = vmatprep.subr.bf16.mxu1 %v1417_v1  ;;  %v1422_v6 = vld [vmem:[%s2005_s1 + $0x8] sm:$0xff]   ;;  %v1426_v10 = vld [vmem:[%s2005_s1 + $0x10] sm:$0xff]  }
   0x4   :  { %v1419_v3 = vld [vmem:[%s2005_s1 + $0x80] sm:$0xff]   ;;  %1245 = vmatpush3.bf16.msra.mxu0 %v1418_v2  ;;  %v1423_v7 = vld [vmem:[%s2005_s1 + $0x88] sm:$0xff]   ;;  %v1427_v11 = vld [vmem:[%s2005_s1 + $0x90] sm:$0xff]  }
   0x5   :  { %1309 = vmatpush3.bf16.msra.mxu1 %v1419_v3  ;;  %1246 = vmatprep.subr.bf16.mxu0 %v1420_v4  ;;  %v1428_v12 = vld [vmem:[%s2005_s1 + $0x58] sm:$0xff]   ;;  %v1432_v16 = vld [vmem:[%s2005_s1 + $0x60] sm:$0xff]   ;;  %v1436_v20 = vld [vmem:[%s2005_s1 + $0x68] sm:$0xff]  }
   0x6   :  { %1310 = vmatprep.subr.bf16.mxu1 %v1421_v5  ;;  %v1429_v13 = vld [vmem:[%s2005_s1 + $0xd8] sm:$0xff]   ;;  %v1433_v17 = vld [vmem:[%s2005_s1 + $0xe0] sm:$0xff]   ;;  %v1437_v21 = vld [vmem:[%s2005_s1 + $0xe8] sm:$0xff]  }
   0x7   :  { %v1430_v14 = vld [vmem:[%s2005_s1 + $0x18] sm:$0xff]   ;;  %v1434_v18 = vld [vmem:[%s2005_s1 + $0x20] sm:$0xff]   ;;  %v1438_v22 = vld [vmem:[%s2005_s1 + $0x28] sm:$0xff]  }
   0x8   :  { %1247 = vmatpush3.bf16.msra.mxu0 %v1422_v6  ;;  %v1431_v15 = vld [vmem:[%s2005_s1 + $0x98] sm:$0xff]   ;;  %v1435_v19 = vld [vmem:[%s2005_s1 + $0xa0] sm:$0xff]   ;;  %v1439_v23 = vld [vmem:[%s2005_s1 + $0xa8] sm:$0xff]  }
   0x9   :  { %1311 = vmatpush3.bf16.msra.mxu1 %v1423_v7  ;;  %1248 = vmatprep.subr.bf16.mxu0 %v1424_v8  ;;  %v1440_v24 = vld [vmem:[%s2005_s1 + $0x70] sm:$0xff]   ;;  %v1444_v28 = vld [vmem:[%s2005_s1 + $0x78] sm:$0xff]   ;;  %v1453_v35 = vld [vmem:[%s2006_s0 + $0xc] ss:$20 sps:$4 sm:$0xff]  }
   0xa   :  { %1312 = vmatprep.subr.bf16.mxu1 %v1425_v9  ;;  %v1441_v25 = vld [vmem:[%s2005_s1 + $0xf0] sm:$0xff]   ;;  %v1445_v29 = vld [vmem:[%s2005_s1 + $0xf8] sm:$0xff]   ;;  %v1454_v36 = vld [vmem:[%s2005_s1 + $0x100] sm:$0xff]   ;;  %708 = vmatprep.mubr.bf16.mxu1 %v1453_v35 }
   0xb   :  { %v1442_v26 = vld [vmem:[%s2005_s1 + $0x30] sm:$0xff]   ;;  %v1446_v30 = vld [vmem:[%s2005_s1 + $0x38] sm:$0xff]   ;;  %v1455_v37 = vld [vmem:[%s2006_s0 + $0x2c] ss:$20 sps:$4 sm:$0xff]  }
   0xc   :  { %1249 = vmatpush3.bf16.msra.mxu0 %v1426_v10  ;;  %v1443_v27 = vld [vmem:[%s2005_s1 + $0xb0] sm:$0xff]   ;;  %v1447_v31 = vld [vmem:[%s2005_s1 + $0xb8] sm:$0xff]   ;;  %v1467_v42 = vld [vmem:[%s2005_s1 + $0x108] sm:$0xff]  }
   0xd   :  { %1313 = vmatpush3.bf16.msra.mxu1 %v1427_v11  ;;  %1250 = vmatprep.subr.bf16.mxu0 %v1428_v12  ;;  %v1448_v32 = vld [vmem:[%s2006_s0] ss:$20 sps:$4 sm:$0xff]   ;;  %v1450_v33 = vld [vmem:[%s2006_s0 + $0x4] ss:$20 sps:$4 sm:$0xff]   ;;  %v1451_v34 = vld [vmem:[%s2006_s0 + $0x8] ss:$20 sps:$4 sm:$0xff]  }
   0xe   :  { %1314 = vmatprep.subr.bf16.mxu1 %v1429_v13  ;;  %611 = vmatprep.mubr.bf16.mxu0 %v1450_v33  ;;  %v1457_v38 = vld [vmem:[%s2006_s0 + $0x34] ss:$20 sps:$4 sm:$0xff]   ;;  %v1460_v40 = vld [vmem:[%s2006_s0 + $0x30] ss:$20 sps:$4 sm:$0xff]   ;;  %v1466_v45 = vld [vmem:[%s2006_s0 + $0x58] ss:$20 sps:$4 sm:$0xff]  }
   0xf   :  { %v1459_v39 = vld [vmem:[%s2006_s0 + $0x28] ss:$20 sps:$4 sm:$0xff]   ;;  %v1465_v44 = vld [vmem:[%s2006_s0 + $0x50] ss:$20 sps:$4 sm:$0xff]   ;;  %v1472_v50 = vld [vmem:[%s2006_s0 + $0x78] ss:$20 sps:$4 sm:$0xff]  }
  0x10   :  { %1251 = vmatpush3.bf16.msra.mxu0 %v1430_v14  ;;  %v1461_v41 = vld [vmem:[%s2006_s0 + $0x54] ss:$20 sps:$4 sm:$0xff]   ;;  %v1463_v43 = vld [vmem:[%s2006_s0 + $0x5c] ss:$20 sps:$4 sm:$0xff]   ;;  %v1470_v48 = vld [vmem:[%s2006_s0 + $0x84] ss:$20 sps:$4 sm:$0xff]  }
  0x11   :  { %1315 = vmatpush3.bf16.msra.mxu1 %v1431_v15  ;;  %1252 = vmatprep.subr.bf16.mxu0 %v1432_v16  ;;  %v1480_v46 = vld [vmem:[%s2005_s1 + $0x110] sm:$0xff]   ;;  %v1493_v49 = vld [vmem:[%s2005_s1 + $0x118] sm:$0xff]   ;;  %v1476_v53 = vld [vmem:[%s2006_s0 + $0xac] ss:$20 sps:$4 sm:$0xff]  }
  0x12   :  { %1316 = vmatprep.subr.bf16.mxu1 %v1433_v17  ;;  %v1468_v47 = vld [vmem:[%s2006_s0 + $0x7c] ss:$20 sps:$4 sm:$0xff]   ;;  %v1473_v51 = vld [vmem:[%s2006_s0 + $0x80] ss:$20 sps:$4 sm:$0xff]   ;;  %v1474_v52 = vld [vmem:[%s2006_s0 + $0xa4] ss:$20 sps:$4 sm:$0xff]  }
  0x13   :  { %v1478_v54 = vld [vmem:[%s2006_s0 + $0xa0] ss:$20 sps:$4 sm:$0xff]   ;;  %v1479_v55 = vld [vmem:[%s2006_s0 + $0xa8] ss:$20 sps:$4 sm:$0xff]   ;;  %v1486_v59 = vld [vmem:[%s2006_s0 + $0xd0] ss:$20 sps:$4 sm:$0xff]  }
  0x14   :  { %1253 = vmatpush3.bf16.msra.mxu0 %v1434_v18  ;;  %v1481_v56 = vld [vmem:[%s2006_s0 + $0xcc] ss:$20 sps:$4 sm:$0xff]   ;;  %v1483_v57 = vld [vmem:[%s2006_s0 + $0xd4] ss:$20 sps:$4 sm:$0xff]   ;;  %v1489_v61 = vld [vmem:[%s2006_s0 + $0xfc] ss:$20 sps:$4 sm:$0xff]  }
  0x15   :  { %1317 = vmatpush3.bf16.msra.mxu1 %v1435_v19  ;;  %1254 = vmatprep.subr.bf16.mxu0 %v1436_v20  ;;  %v1485_v58 = vld [vmem:[%s2006_s0 + $0xc8] ss:$20 sps:$4 sm:$0xff]   ;;  %v1491_v62 = vld [vmem:[%s2006_s0 + $0xf0] ss:$20 sps:$4 sm:$0xff]   ;;  %v1492_v63 = vld [vmem:[%s2006_s0 + $0xf8] ss:$20 sps:$4 sm:$0xff]  }
  0x16   :  { %1318 = vmatprep.subr.bf16.mxu1 %v1437_v21  ;;  %v1487_v60 = vld [vmem:[%s2006_s0 + $0xf4] ss:$20 sps:$4 sm:$0xff]   ;;  %v1494_v0 = vld [vmem:[%s2006_s0 + $0x11c] ss:$20 sps:$4 sm:$0xff]   ;;  %v1496_v1 = vld [vmem:[%s2006_s0 + $0x124] ss:$20 sps:$4 sm:$0xff]  }
  0x17   :  { %v1498_v2 = vld [vmem:[%s2006_s0 + $0x118] ss:$20 sps:$4 sm:$0xff]   ;;  %v1499_v3 = vld [vmem:[%s2006_s0 + $0x120] ss:$20 sps:$4 sm:$0xff]   ;;  %v1500_v4 = vld [vmem:[%s2006_s0 + $0x10] ss:$20 sps:$4 sm:$0xff]  }
  0x18   :  { %1255 = vmatpush3.bf16.msra.mxu0 %v1438_v22  ;;  %v1501_v5 = vld [vmem:[%s2006_s0 + $0xb0] ss:$20 sps:$4 sm:$0xff]   ;;  %v1502_v6 = vld [vmem:[%s2006_s0 + $0x38] ss:$20 sps:$4 sm:$0xff]   ;;  %v1504_v8 = vld [vmem:[%s2006_s0 + $0x60] ss:$20 sps:$4 sm:$0xff]  }
  0x19   :  { %1319 = vmatpush3.bf16.msra.mxu1 %v1439_v23  ;;  %1256 = vmatprep.subr.bf16.mxu0 %v1440_v24  ;;  %v1503_v7 = vld [vmem:[%s2006_s0 + $0xd8] ss:$20 sps:$4 sm:$0xff]   ;;  %v1505_v9 = vld [vmem:[%s2006_s0 + $0x100] ss:$20 sps:$4 sm:$0xff]   ;;  %v1506_v10 = vld [vmem:[%s2006_s0 + $0x88] ss:$20 sps:$4 sm:$0xff]  }
  0x1a   :  { %1320 = vmatprep.subr.bf16.mxu1 %v1441_v25  ;;  %v1507_v11 = vld [vmem:[%s2006_s0 + $0x128] ss:$20 sps:$4 sm:$0xff]  }
  0x1c   :  { %1257 = vmatpush3.bf16.msra.mxu0 %v1442_v26 }
  0x1d   :  { %1321 = vmatpush3.bf16.msra.mxu1 %v1443_v27  ;;  %1258 = vmatprep.subr.bf16.mxu0 %v1444_v28 }
  0x1e   :  { %1322 = vmatprep.subr.bf16.mxu1 %v1445_v29 }
  0x20   :  { %1259 = vmatpush3.bf16.msra.mxu0 %v1446_v30 }
  0x21   :  { %1323 = vmatpush3.bf16.msra.mxu1 %v1447_v31  ;;  %1384 = vmatprep.subr.bf16.mxu0 %v1454_v36 }
  0x22   :  { %1408 = vmatprep.subr.bf16.mxu1 %v1454_v36 }
  0x23   :  { %612 = vmatmul.mubr.bf16.vlgmr.msra.gmra.mrb[0].mxu0 %v1448_v32 }
  0x24   :  { %709 = vmatmul.mubr.bf16.vlgmr.msra.gmra.mrb[0].mxu1 %v1451_v34  ;;  %1385 = vmatpush3.bf16.msra.mxu0 %v1454_v36 }
  0x25   :  { %619 = vmatprep.mubr.bf16.mxu0 %v1455_v37  ;;  %716 = vmatprep.mubr.bf16.mxu1 %v1457_v38 }
  0x26   :  { %1412 = vmatpush3.bf16.msra.mxu1 %v1454_v36  ;;  %1386 = vmatprep.subr.bf16.mxu0 %v1467_v42 }
  0x27   :  { %1409 = vmatprep.subr.bf16.mxu1 %v1467_v42 }
  0x28   :  { %1387 = vmatpush3.bf16.msra.mxu0 %v1467_v42 }
  0x29   :  { %1388 = vmatprep.subr.bf16.mxu0 %v1480_v46 }
  0x2a   :  { %1413 = vmatpush3.bf16.msra.mxu1 %v1467_v42 }
  0x2b   :  { %620 = vmatmul.mubr.bf16.gmra.mrb[4].mxu0 %v1459_v39  ;;  %1410 = vmatprep.subr.bf16.mxu1 %v1480_v46 }
  0x2c   :  { %717 = vmatmul.mubr.bf16.gmra.mrb[4].mxu1 %v1460_v40  ;;  %627 = vmatprep.mubr.bf16.mxu0 %v1461_v41 }
  0x2d   :  { %724 = vmatprep.mubr.bf16.mxu1 %v1463_v43  ;;  %1389 = vmatpush3.bf16.msra.mxu0 %v1480_v46 }
  0x2e   :  { %1414 = vmatpush3.bf16.msra.mxu1 %v1480_v46  ;;  %1390 = vmatprep.subr.bf16.mxu0 %v1493_v49 }
  0x2f   :  { %1411 = vmatprep.subr.bf16.mxu1 %v1493_v49 }
  0x31   :  { %1391 = vmatpush3.bf16.msra.mxu0 %v1493_v49 }
  0x32   :  { %1415 = vmatpush3.bf16.msra.mxu1 %v1493_v49 }
  0x33   :  { %628 = vmatmul.mubr.bf16.gmra.mrb[8].mxu0 %v1465_v44 }
  0x34   :  { %725 = vmatmul.mubr.bf16.gmra.mrb[8].mxu1 %v1466_v45  ;;  %635 = vmatprep.mubr.bf16.mxu0 %v1468_v47 }
  0x35   :  { %732 = vmatprep.mubr.bf16.mxu1 %v1470_v48 }
  0x3b   :  { %636 = vmatmul.mubr.bf16.gmra.mrb[12].mxu0 %v1472_v50 }
  0x3c   :  { %733 = vmatmul.mubr.bf16.gmra.mrb[12].mxu1 %v1473_v51  ;;  %643 = vmatprep.mubr.bf16.mxu0 %v1474_v52 }
  0x3d   :  { %740 = vmatprep.mubr.bf16.mxu1 %v1476_v53 }
  0x43   :  { %644 = vmatmul.mubr.bf16.gmra.mrb[16].mxu0 %v1478_v54 }
  0x44   :  { %741 = vmatmul.mubr.bf16.gmra.mrb[16].mxu1 %v1479_v55  ;;  %651 = vmatprep.mubr.bf16.mxu0 %v1481_v56 }
  0x45   :  { %748 = vmatprep.mubr.bf16.mxu1 %v1483_v57 }
  0x4b   :  { %652 = vmatmul.mubr.bf16.gmra.mrb[20].mxu0 %v1485_v58 }
  0x4c   :  { %749 = vmatmul.mubr.bf16.gmra.mrb[20].mxu1 %v1486_v59  ;;  %659 = vmatprep.mubr.bf16.mxu0 %v1487_v60 }
  0x4d   :  { %756 = vmatprep.mubr.bf16.mxu1 %v1489_v61 }
  0x53   :  { %660 = vmatmul.mubr.bf16.gmra.mrb[24].mxu0 %v1491_v62 }
  0x54   :  { %757 = vmatmul.mubr.bf16.gmra.mrb[24].mxu1 %v1492_v63  ;;  %667 = vmatprep.mubr.bf16.mxu0 %v1494_v0 }
  0x55   :  { %764 = vmatprep.mubr.bf16.mxu1 %v1496_v1 }
  0x5b   :  { %668 = vmatmul.mubr.bf16.gmra.mrb[28].mxu0 %v1498_v2 }
  0x5c   :  { %765 = vmatmul.mubr.bf16.gmra.mrb[28].mxu1 %v1499_v3  ;;  %1392 = vmatprep.mubr.msk.bf16.mxu0 %vm554_vm0, %v1500_v4 }
  0x5d   :  { %1400 = vmatprep.mubr.msk.bf16.mxu1 %vm554_vm0, %v1501_v5 }
  0x63   :  { %1393 = vmatmul.mubr.msk.bf16.vlgmr.msra.gmra.mrb[32].mxu0 %vm554_vm0, %v1502_v6 }
  0x64   :  { %1401 = vmatmul.mubr.msk.bf16.vlgmr.msra.gmra.mrb[32].mxu1 %vm554_vm0, %v1503_v7  ;;  %1396 = vmatprep.mubr.msk.bf16.mxu0 %vm554_vm0, %v1504_v8 }
  0x65   :  { %1404 = vmatprep.mubr.msk.bf16.mxu1 %vm554_vm0, %v1505_v9 }
  0x6b   :  { %1397 = vmatmul.mubr.msk.bf16.gmra.mrb[36].mxu0 %vm554_vm0, %v1506_v10 }
  0x6c   :  { %1405 = vmatmul.mubr.msk.bf16.gmra.mrb[36].mxu1 %vm554_vm0, %v1507_v11 }
  0xf6   :  { %v1260_v12 = vpop.f32.mrb[0].mxu0 }
  0xf7   :  { %v1324_v13 = vpop.f32.mrb[0].mxu1  ;;  %v1261_v14 = vpop.f32.mrb[1].mxu0 }
  0xf8   :  { %v1262_v15 = vadd.f32 %v1261_v14, %v1260_v12  ;;  %v1325_v16 = vpop.f32.mrb[1].mxu1  ;;  %v1263_v17 = vpop.f32.mrb[2].mxu0 }
  0xf9   :  { %v1326_v18 = vadd.f32 %v1325_v16, %v1324_v13  ;;  %v1327_v19 = vpop.f32.mrb[2].mxu1  ;;  %v1264_v20 = vpop.f32.mrb[3].mxu0 }
  0xfa   :  { %v1265_v21 = vadd.f32 %v1264_v20, %v1263_v17  ;;  %v1328_v22 = vpop.f32.mrb[3].mxu1 }
  0xfb   :  { %v1329_v23 = vadd.f32 %v1328_v22, %v1327_v19  ;;  %v1771_v24 = vadd.f32 %v1326_v18, %v1262_v15 }
  0xfd   :  { %v1773_v25 = vadd.f32 %v1329_v23, %v1265_v21 }
  0xfe   :  { %v1266_v26 = vpop.f32.mrb[4].mxu0 }
  0xff   :  { %v1330_v27 = vpop.f32.mrb[4].mxu1  ;;  %v1267_v28 = vpop.f32.mrb[5].mxu0 }
 0x100   :  { %v1268_v29 = vadd.f32 %v1267_v28, %v1266_v26  ;;  %v1331_v30 = vpop.f32.mrb[5].mxu1  ;;  %v1269_v31 = vpop.f32.mrb[6].mxu0 }
 0x101   :  { %v1332_v32 = vadd.f32 %v1331_v30, %v1330_v27  ;;  %v1333_v33 = vpop.f32.mrb[6].mxu1  ;;  %v1270_v34 = vpop.f32.mrb[7].mxu0 }
 0x102   :  { %v1271_v35 = vadd.f32 %v1270_v34, %v1269_v31  ;;  %v1334_v36 = vpop.f32.mrb[7].mxu1 }
 0x103   :  { %v1335_v37 = vadd.f32 %v1334_v36, %v1333_v33  ;;  %v1775_v38 = vadd.f32 %v1332_v32, %v1268_v29 }
 0x105   :  { %v1777_v39 = vadd.f32 %v1335_v37, %v1271_v35 }
 0x106   :  { %v1272_v40 = vpop.f32.mrb[8].mxu0 }
 0x107   :  { %v1336_v41 = vpop.f32.mrb[8].mxu1  ;;  %v1273_v42 = vpop.f32.mrb[9].mxu0 }
 0x108   :  { %v1274_v43 = vadd.f32 %v1273_v42, %v1272_v40  ;;  %v1337_v44 = vpop.f32.mrb[9].mxu1  ;;  %v1275_v45 = vpop.f32.mrb[10].mxu0 }
 0x109   :  { %v1338_v46 = vadd.f32 %v1337_v44, %v1336_v41  ;;  %v1339_v47 = vpop.f32.mrb[10].mxu1  ;;  %v1276_v48 = vpop.f32.mrb[11].mxu0 }
 0x10a   :  { %v1277_v49 = vadd.f32 %v1276_v48, %v1275_v45  ;;  %v1340_v50 = vpop.f32.mrb[11].mxu1 }
 0x10b   :  { %v1341_v51 = vadd.f32 %v1340_v50, %v1339_v47  ;;  %v1779_v52 = vadd.f32 %v1338_v46, %v1274_v43 }
 0x10d   :  { %v1781_v53 = vadd.f32 %v1341_v51, %v1277_v49 }
 0x10e   :  { %v1278_v54 = vpop.f32.mrb[12].mxu0 }
 0x10f   :  { %v1342_v55 = vpop.f32.mrb[12].mxu1  ;;  %v1279_v56 = vpop.f32.mrb[13].mxu0 }
 0x110   :  { %v1280_v57 = vadd.f32 %v1279_v56, %v1278_v54  ;;  %v1343_v58 = vpop.f32.mrb[13].mxu1  ;;  %v1281_v59 = vpop.f32.mrb[14].mxu0 }
 0x111   :  { %v1344_v60 = vadd.f32 %v1343_v58, %v1342_v55  ;;  %v1345_v61 = vpop.f32.mrb[14].mxu1  ;;  %v1282_v62 = vpop.f32.mrb[15].mxu0 }
 0x112   :  { %v1283_v63 = vadd.f32 %v1282_v62, %v1281_v59  ;;  %v1346_v0 = vpop.f32.mrb[15].mxu1 }
 0x113   :  { %v1347_v1 = vadd.f32 %v1346_v0, %v1345_v61  ;;  %v1783_v2 = vadd.f32 %v1344_v60, %v1280_v57 }
 0x115   :  { %v1785_v3 = vadd.f32 %v1347_v1, %v1283_v63 }
 0x116   :  { %v1284_v4 = vpop.f32.mrb[16].mxu0 }
 0x117   :  { %v1348_v5 = vpop.f32.mrb[16].mxu1  ;;  %v1285_v6 = vpop.f32.mrb[17].mxu0 }
 0x118   :  { %v1286_v7 = vadd.f32 %v1285_v6, %v1284_v4  ;;  %v1349_v8 = vpop.f32.mrb[17].mxu1  ;;  %v1287_v9 = vpop.f32.mrb[18].mxu0 }
 0x119   :  { %v1350_v10 = vadd.f32 %v1349_v8, %v1348_v5  ;;  %v1351_v11 = vpop.f32.mrb[18].mxu1  ;;  %v1288_v12 = vpop.f32.mrb[19].mxu0 }
 0x11a   :  { %v1289_v13 = vadd.f32 %v1288_v12, %v1287_v9  ;;  %v1352_v14 = vpop.f32.mrb[19].mxu1 }
 0x11b   :  { %v1353_v15 = vadd.f32 %v1352_v14, %v1351_v11  ;;  %v743_v16 = vadd.f32 %v1350_v10, %v1286_v7 }
 0x11d   :  { %v746_v17 = vadd.f32 %v1353_v15, %v1289_v13 }
 0x11e   :  { %v1290_v18 = vpop.f32.mrb[20].mxu0 }
 0x11f   :  { %v1354_v19 = vpop.f32.mrb[20].mxu1  ;;  %v1291_v20 = vpop.f32.mrb[21].mxu0 }
 0x120   :  { %v1292_v21 = vadd.f32 %v1291_v20, %v1290_v18  ;;  %v1355_v22 = vpop.f32.mrb[21].mxu1  ;;  %v1293_v23 = vpop.f32.mrb[22].mxu0 }
 0x121   :  { %v1356_v26 = vadd.f32 %v1355_v22, %v1354_v19  ;;  %v1357_v27 = vpop.f32.mrb[22].mxu1  ;;  %v1294_v28 = vpop.f32.mrb[23].mxu0 }
 0x122   :  { %v1295_v29 = vadd.f32 %v1294_v28, %v1293_v23  ;;  %v1358_v30 = vpop.f32.mrb[23].mxu1 }
 0x123   :  { %v1359_v31 = vadd.f32 %v1358_v30, %v1357_v27  ;;  %v751_v32 = vadd.f32 %v1356_v26, %v1292_v21 }
 0x125   :  { %v754_v33 = vadd.f32 %v1359_v31, %v1295_v29 }
 0x126   :  { %v1296_v34 = vpop.f32.mrb[24].mxu0 }
 0x127   :  { %v1360_v35 = vpop.f32.mrb[24].mxu1  ;;  %v1297_v36 = vpop.f32.mrb[25].mxu0 }
 0x128   :  { %v1298_v37 = vadd.f32 %v1297_v36, %v1296_v34  ;;  %v1361_v40 = vpop.f32.mrb[25].mxu1  ;;  %v1299_v41 = vpop.f32.mrb[26].mxu0 }
 0x129   :  { %v1362_v42 = vadd.f32 %v1361_v40, %v1360_v35  ;;  %v1363_v43 = vpop.f32.mrb[26].mxu1  ;;  %v1300_v44 = vpop.f32.mrb[27].mxu0 }
 0x12a   :  { %v1301_v45 = vadd.f32 %v1300_v44, %v1299_v41  ;;  %v1364_v46 = vpop.f32.mrb[27].mxu1 }
 0x12b   :  { %v1365_v47 = vadd.f32 %v1364_v46, %v1363_v43  ;;  %v759_v48 = vadd.f32 %v1362_v42, %v1298_v37 }
 0x12d   :  { %v762_v49 = vadd.f32 %v1365_v47, %v1301_v45 }
 0x12e   :  { %v1302_v50 = vpop.f32.mrb[28].mxu0 }
 0x12f   :  { %v1366_v51 = vpop.f32.mrb[28].mxu1  ;;  %v1303_v54 = vpop.f32.mrb[29].mxu0 }
 0x130   :  { %v1304_v55 = vadd.f32 %v1303_v54, %v1302_v50  ;;  %v1367_v56 = vpop.f32.mrb[29].mxu1  ;;  %v1305_v57 = vpop.f32.mrb[30].mxu0 }
 0x131   :  { %v1368_v58 = vadd.f32 %v1367_v56, %v1366_v51  ;;  %v1369_v59 = vpop.f32.mrb[30].mxu1  ;;  %v1306_v60 = vpop.f32.mrb[31].mxu0 }
 0x132   :  { %v1307_v61 = vadd.f32 %v1306_v60, %v1305_v57  ;;  %v1370_v62 = vpop.f32.mrb[31].mxu1 }
 0x133   :  { %v1371_v63 = vadd.f32 %v1370_v62, %v1369_v59  ;;  %v767_v0 = vadd.f32 %v1368_v58, %v1304_v55 }
 0x135   :  { %v770_v1 = vadd.f32 %v1371_v63, %v1307_v61 }
 0x136   :  { %v1394_v4 = vpop.f32.mrb[32].mxu0 }
 0x137   :  { %v1788_v5 = vadd.f32 %v1394_v4, %v1775_v38  ;;  %v1402_v6 = vpop.f32.mrb[32].mxu1  ;;  %v807_v7 = vpop.f32.mrb[33].mxu0 }
 0x138   :  { %v1790_v8 = vadd.f32 %v1402_v6, %v751_v32  ;;  %v1793_v9 = vadd.f32 %v807_v7, %v1771_v24  ;;  %v839_v10 = vpop.f32.mrb[33].mxu1  ;;  %v1395_v11 = vpop.f32.mrb[34].mxu0 }
 0x139   :  { %v1795_v12 = vadd.f32 %v839_v10, %v743_v16  ;;  %v1798_v13 = vadd.f32 %v1395_v11, %v1777_v39  ;;  %v1403_v14 = vpop.f32.mrb[34].mxu1  ;;  %v810_v15 = vpop.f32.mrb[35].mxu0  ;;  %v873_v16 = vsel %vm554_vm0, %v1788_v5, 0.0 }
 0x13a   :  { %v1800_v18 = vadd.f32 %v1403_v14, %v754_v33  ;;  %v811_v38 = vadd.f32 %v810_v15, %v1773_v25  ;;  %v842_v19 = vpop.f32.mrb[35].mxu1  ;;  %v870_v24 = vsel %vm554_vm0, %v1793_v9, 0.0 }
 0x13b   :  { %v1803_v20 = vadd.f32 %v842_v19, %v746_v17  ;;  %v875_v25 = vsel %vm554_vm0, %v1798_v13, 0.0 }
 0x13c   :  { %v871_v21 = vsel %vm554_vm0, %v811_v38, 0.0  ;;  %v891_v55 = vsel %vm554_vm0, %v1800_v18, 0.0 }
 0x13d   :  { %v872_v22 = vadd.f32 %v871_v21, %v870_v24  ;;  %v887_v51 = vsel %vm554_vm0, %v1803_v20, 0.0 }
 0x13e   :  { %v1398_v39 = vpop.f32.mrb[36].mxu0 }
 0x13f   :  { %v874_v23 = vadd.f32 %v873_v16, %v872_v22  ;;  %v832_v26 = vadd.f32 %v1398_v39, %v1783_v2  ;;  %v1406_v27 = vpop.f32.mrb[36].mxu1  ;;  %v823_v28 = vpop.f32.mrb[37].mxu0 }
 0x140   :  { %v864_v17 = vadd.f32 %v1406_v27, %v767_v0  ;;  %v824_v29 = vadd.f32 %v823_v28, %v1779_v52  ;;  %v855_v30 = vpop.f32.mrb[37].mxu1  ;;  %v1399_v31 = vpop.f32.mrb[38].mxu0 }
 0x141   :  { %v876_v32 = vadd.f32 %v875_v25, %v874_v23  ;;  %v856_v33 = vadd.f32 %v855_v30, %v759_v48  ;;  %v835_v34 = vadd.f32 %v1399_v31, %v1785_v3  ;;  %v1407_v35 = vpop.f32.mrb[38].mxu1  ;;  %v826_v36 = vpop.f32.mrb[39].mxu0  ;;  %v881_v52 = vsel %vm554_vm0, %v832_v26, 0.0 }
 0x142   :  { %v877_v37 = vsel %vm554_vm0, %v824_v29, 0.0  ;;  %v867_v40 = vadd.f32 %v1407_v35, %v770_v1  ;;  %v827_v2 = vadd.f32 %v826_v36, %v1781_v53  ;;  %v858_v41 = vpop.f32.mrb[39].mxu1  ;;  %v885_v3 = vsel %vm554_vm0, %v1795_v12, 0.0 }
 0x143   :  { %v878_v42 = vadd.f32 %v877_v37, %v876_v32  ;;  %v859_v43 = vadd.f32 %v858_v41, %v762_v49  ;;  %v883_v47 = vsel %vm554_vm0, %v835_v34, 0.0  ;;  %v889_v49 = vsel %vm554_vm0, %v1790_v8, 0.0 }
 0x144   :  { %v879_v44 = vsel %vm554_vm0, %v827_v2, 0.0  ;;  %v893_v57 = vsel %vm554_vm0, %v856_v33, 0.0  ;;  %v897_v61 = vsel %vm554_vm0, %v864_v17, 0.0  ;;  %v899_v63 = vsel %vm554_vm0, %v867_v40, 0.0 }
 0x145   :  { %v880_v45 = vadd.f32 %v879_v44, %v878_v42  ;;  %v895_v59 = vsel %vm554_vm0, %v859_v43, 0.0 }
 0x147   :  { %v882_v46 = vadd.f32 %v881_v52, %v880_v45 }
 0x149   :  { %v884_v48 = vadd.f32 %v883_v47, %v882_v46 }
 0x14b   :  { %v886_v50 = vadd.f32 %v885_v3, %v884_v48 }
 0x14d   :  { %v888_v53 = vadd.f32 %v887_v51, %v886_v50 }
 0x14f   :  { %v890_v54 = vadd.f32 %v889_v49, %v888_v53 }
 0x151   :  { %v892_v56 = vadd.f32 %v891_v55, %v890_v54 }
 0x153   :  { %v894_v58 = vadd.f32 %v893_v57, %v892_v56 }
 0x155   :  { %v896_v60 = vadd.f32 %v895_v59, %v894_v58 }
 0x157   :  { %v898_v62 = vadd.f32 %v897_v61, %v896_v60 }
 0x159   :  { %v900_v0 = vadd.f32 %v899_v63, %v898_v62 }
 0x15b   :  { %v901_v1 = vrot.slane %v900_v0, 4 }
 0x15d   :  { %v902_v4 = vadd.f32 %v901_v1, %v900_v0 }
 0x15f   :  { %v903_v6 = vrot.slane %v902_v4, 2 }
 0x161   :  { %v904_v7 = vadd.f32 %v903_v6, %v902_v4 }
 0x163   :  { %v905_v10 = vrot.slane %v904_v7, 1 }
 0x165   :  { %v906_v11 = vadd.f32 %v905_v10, %v904_v7 }
 0x167   :  { %v908_v14 = vmul.f32 0.0078125, %v906_v11 }
 0x169   :  { %v1833_v15 = vsub.f32 %v1793_v9, %v908_v14  ;;  %v1835_v19 = vsub.f32 %v811_v38, %v908_v14  ;;  %v1838_v24 = vsub.f32 %v1788_v5, %v908_v14  ;;  %v1841_v21 = vsub.f32 %v1798_v13, %v908_v14 }
 0x16a   :  { %v1843_v22 = vsub.f32 %v824_v29, %v908_v14  ;;  %v1845_v16 = vsub.f32 %v827_v2, %v908_v14  ;;  %v1847_v39 = vsub.f32 %v832_v26, %v908_v14  ;;  %v1849_v23 = vsub.f32 %v835_v34, %v908_v14 }
 0x16b   :  { %v1852_v27 = vsub.f32 %v1795_v12, %v908_v14  ;;  %v1855_v9 = vsub.f32 %v1803_v20, %v908_v14  ;;  %v1858_v5 = vsub.f32 %v1790_v8, %v908_v14  ;;  %v1861_v13 = vsub.f32 %v1800_v18, %v908_v14 }
 0x16c   :  { %v1863_v38 = vsub.f32 %v856_v33, %v908_v14  ;;  %v1865_v28 = vsub.f32 %v859_v43, %v908_v14  ;;  %v1867_v26 = vsub.f32 %v864_v17, %v908_v14  ;;  %v1869_v25 = vsub.f32 %v867_v40, %v908_v14 }
 0x16d   :  { %v925_v12 = vmul.f32 %v1833_v15, %v1833_v15  ;;  %v926_v20 = vmul.f32 %v1835_v19, %v1835_v19  ;;  %v927_v8 = vmul.f32 %v1838_v24, %v1838_v24  ;;  %v928_v18 = vmul.f32 %v1841_v21, %v1841_v21 }
 0x16e   :  { %v929_v31 = vmul.f32 %v1843_v22, %v1843_v22  ;;  %v930_v34 = vmul.f32 %v1845_v16, %v1845_v16  ;;  %v931_v37 = vmul.f32 %v1847_v39, %v1847_v39  ;;  %v932_v41 = vmul.f32 %v1849_v23, %v1849_v23 }
 0x16f   :  { %v941_v29 = vsel %vm554_vm0, %v925_v12, 0.0  ;;  %v942_v30 = vsel %vm554_vm0, %v926_v20, 0.0  ;;  %v944_v32 = vsel %vm554_vm0, %v927_v8, 0.0  ;;  %v946_v35 = vsel %vm554_vm0, %v928_v18, 0.0 }
 0x170   :  { %v943_v17 = vadd.f32 %v942_v30, %v941_v29  ;;  %v948_v40 = vsel %vm554_vm0, %v929_v31, 0.0  ;;  %v950_v42 = vsel %vm554_vm0, %v930_v34, 0.0  ;;  %v933_v44 = vmul.f32 %v1852_v27, %v1852_v27 }
 0x171   :  { %v952_v45 = vsel %vm554_vm0, %v931_v37, 0.0  ;;  %v934_v46 = vmul.f32 %v1855_v9, %v1855_v9  ;;  %v954_v47 = vsel %vm554_vm0, %v932_v41, 0.0  ;;  %v935_v3 = vmul.f32 %v1858_v5, %v1858_v5 }
 0x172   :  { %v945_v33 = vadd.f32 %v944_v32, %v943_v17  ;;  %v956_v50 = vsel %vm554_vm0, %v933_v44, 0.0  ;;  %v936_v53 = vmul.f32 %v1861_v13, %v1861_v13  ;;  %v937_v55 = vmul.f32 %v1863_v38, %v1863_v38 }
 0x173   :  { %v958_v49 = vsel %vm554_vm0, %v934_v46, 0.0  ;;  %v960_v56 = vsel %vm554_vm0, %v935_v3, 0.0  ;;  %v938_v58 = vmul.f32 %v1865_v28, %v1865_v28  ;;  %v939_v61 = vmul.f32 %v1867_v26, %v1867_v26  ;;  %v1211_v46 = vld [vmem:[%s2008_s3] ss:$0 sm:$0xff] }
 0x174   :  { %v947_v36 = vadd.f32 %v946_v35, %v945_v33  ;;  %v962_v59 = vsel %vm554_vm0, %v936_v53, 0.0  ;;  %v964_v62 = vsel %vm554_vm0, %v937_v55, 0.0  ;;  %v940_v0 = vmul.f32 %v1869_v25, %v1869_v25  ;;  %v981_v33 = vld [vmem:[%s2007_s2] sm:$0x1] }
 0x175   :  { %v966_v1 = vsel %vm554_vm0, %v938_v58, 0.0  ;;  %v968_v6 = vsel %vm554_vm0, %v939_v61, 0.0  ;;  %v983_v31 = vlaneseq }
 0x176   :  { %v949_v2 = vadd.f32 %v948_v40, %v947_v36  ;;  %v970_v10 = vsel %vm554_vm0, %v940_v0, 0.0 }
 0x177   :  { %v984_v32 = vshrl.u32 %v983_v31, 7 }
 0x178   :  { %v951_v43 = vadd.f32 %v950_v42, %v949_v2 }
 0x179   :  { %v985_v34 = vsub.s32 0, %v984_v32 }
 0x17a   :  { %v953_v52 = vadd.f32 %v952_v45, %v951_v43 }
 0x17c   :  { %v955_v48 = vadd.f32 %v954_v47, %v953_v52 }
 0x17e   :  { %v957_v51 = vadd.f32 %v956_v50, %v955_v48 }
 0x180   :  { %v959_v54 = vadd.f32 %v958_v49, %v957_v51 }
 0x182   :  { %v961_v57 = vadd.f32 %v960_v56, %v959_v54 }
 0x184   :  { %v963_v60 = vadd.f32 %v962_v59, %v961_v57 }
 0x186   :  { %v965_v63 = vadd.f32 %v964_v62, %v963_v60 }
 0x188   :  { %v967_v4 = vadd.f32 %v966_v1, %v965_v63 }
 0x18a   :  { %v969_v7 = vadd.f32 %v968_v6, %v967_v4 }
 0x18c   :  { %v971_v11 = vadd.f32 %v970_v10, %v969_v7 }
 0x18e   :  { %v972_v14 = vrot.slane %v971_v11, 4 }
 0x190   :  { %v973_v12 = vadd.f32 %v972_v14, %v971_v11 }
 0x192   :  { %v974_v20 = vrot.slane %v973_v12, 2 }
 0x194   :  { %v975_v8 = vadd.f32 %v974_v20, %v973_v12 }
 0x196   :  { %v976_v18 = vrot.slane %v975_v8, 1 }
 0x198   :  { %v977_v29 = vadd.f32 %v976_v18, %v975_v8 }
 0x19a   :  { %v978_v30 = vmul.f32 0.0078125, %v977_v29 }
 0x19c   :  { %v979_v17 = vadd.f32 1e-05, %v978_v30 }
 0x19e   :  { %1508 = vrsqrt.f32 %v979_v17 }
 0x1a8   :  { %v1509_v35 = vpop.eup %1508 }
 0x1a9   :  { %v982_v36 = vmul.f32 %v1509_v35, %v981_v33 }
 0x1ab   :  { %v986_v37 = vrot.slane %v982_v36, %v985_v34 }
 0x1ad   :  { %v987_v40 = vmul.f32 %v986_v37, %v1833_v15  ;;  %v988_v2 = vmul.f32 %v986_v37, %v1835_v19  ;;  %v989_v41 = vmul.f32 %v986_v37, %v1838_v24  ;;  %v990_v42 = vmul.f32 %v986_v37, %v1841_v21 }
 0x1ae   :  { %v991_v43 = vmul.f32 %v986_v37, %v1843_v22  ;;  %v992_v44 = vmul.f32 %v986_v37, %v1845_v16  ;;  %v993_v45 = vmul.f32 %v986_v37, %v1847_v39  ;;  %v994_v52 = vmul.f32 %v986_v37, %v1849_v23 }
 0x1af   :  { %v995_v15 = vmul.f32 %v986_v37, %v1852_v27  ;;  %v996_v19 = vmul.f32 %v986_v37, %v1855_v9  ;;  %v997_v24 = vmul.f32 %v986_v37, %v1858_v5  ;;  %v998_v21 = vmul.f32 %v986_v37, %v1861_v13 }
 0x1b0   :  { %v999_v22 = vmul.f32 %v986_v37, %v1863_v38  ;;  %v1000_v16 = vmul.f32 %v986_v37, %v1865_v28  ;;  %v1001_v39 = vmul.f32 %v986_v37, %v1867_v26  ;;  %v1002_v23 = vmul.f32 %v986_v37, %v1869_v25 }
 0x1b1   :  { %v1010_v47 = vadd.f32 %v1211_v46, %v987_v40  ;;  %v1011_v48 = vadd.f32 %v1211_v46, %v988_v2  ;;  %v1012_v3 = vadd.f32 %v1211_v46, %v989_v41  ;;  %v1013_v50 = vadd.f32 %v1211_v46, %v990_v42 }
 0x1b2   :  { %v1014_v27 = vadd.f32 %v1211_v46, %v991_v43  ;;  %v1015_v51 = vadd.f32 %v1211_v46, %v992_v44  ;;  %v1016_v9 = vadd.f32 %v1211_v46, %v993_v45  ;;  %v1017_v53 = vadd.f32 %v1211_v46, %v994_v52 }
 0x1b3   :  { %v1018_v5 = vadd.f32 %v1211_v46, %v995_v15  ;;  %v1019_v49 = vadd.f32 %v1211_v46, %v996_v19  ;;  %v1020_v13 = vadd.f32 %v1211_v46, %v997_v24  ;;  %v1021_v54 = vadd.f32 %v1211_v46, %v998_v21 }
 0x1b4   :  { %v1022_v38 = vadd.f32 %v1211_v46, %v999_v22  ;;  %v1023_v55 = vadd.f32 %v1211_v46, %v1000_v16  ;;  %v1024_v28 = vadd.f32 %v1211_v46, %v1001_v39  ;;  %v1025_v56 = vadd.f32 %v1211_v46, %v1002_v23 }
 0x1b5   :  { %v1026_v26 = vmax.f32 %v1010_v47, 0.0  ;;  %v1027_v57 = vmax.f32 %v1011_v48, 0.0  ;;  %v1028_v25 = vmax.f32 %v1012_v3, 0.0  ;;  %v1029_v58 = vmax.f32 %v1013_v50, 0.0 }
 0x1b6   :  { %v1030_v59 = vmax.f32 %v1014_v27, 0.0  ;;  %v1031_v60 = vmax.f32 %v1015_v51, 0.0  ;;  %v1032_v61 = vmax.f32 %v1016_v9, 0.0  ;;  %v1033_v62 = vmax.f32 %v1017_v53, 0.0 }
 0x1b7   :  { %v1034_v63 = vmax.f32 %v1018_v5, 0.0  ;;  %v1035_v0 = vmax.f32 %v1019_v49, 0.0  ;;  %v1036_v1 = vmax.f32 %v1020_v13, 0.0  ;;  %v1037_v4 = vmax.f32 %v1021_v54, 0.0 }
 0x1b8   :  { %v1038_v6 = vmax.f32 %v1022_v38, 0.0  ;;  %v1039_v7 = vmax.f32 %v1023_v55, 0.0  ;;  %v1040_v10 = vmax.f32 %v1024_v28, 0.0  ;;  %v1041_v11 = vmax.f32 %v1025_v56, 0.0 }
 0x1b9   :  { %v1228_v14 = vpack.c.bf16 %v1026_v26, %v1026_v26  ;;  %v1229_v12 = vpack.c.bf16 %v1027_v57, %v1027_v57  ;;  %v1230_v20 = vpack.c.bf16 %v1028_v25, %v1028_v25  ;;  %v1231_v8 = vpack.c.bf16 %v1029_v58, %v1029_v58 }
 0x1ba   :  { %v1232_v18 = vpack.c.bf16 %v1030_v59, %v1030_v59  ;;  %v1233_v29 = vpack.c.bf16 %v1031_v60, %v1031_v60  ;;  %v1234_v30 = vpack.c.bf16 %v1032_v61, %v1032_v61  ;;  %v1235_v17 = vpack.c.bf16 %v1033_v62, %v1033_v62 }
 0x1bb   :  { %v1236_v31 = vpack.c.bf16 %v1034_v63, %v1034_v63  ;;  %v1237_v32 = vpack.c.bf16 %v1035_v0, %v1035_v0  ;;  %v1238_v33 = vpack.c.bf16 %v1036_v1, %v1036_v1  ;;  %v1239_v34 = vpack.c.bf16 %v1037_v4, %v1037_v4  ;;  %1107 = vst.msk [vmem:[%s2009_s4] sm:$0xf] %vm1106_vm1, %v1228_v14 }
 0x1bc   :  { %1108 = vst.msk [vmem:[%s2009_s4 + $0x4] sm:$0xf] %vm1106_vm1, %v1229_v12  ;;  %1109 = vst.msk [vmem:[%s2009_s4 + $0x8] sm:$0xf] %vm1106_vm1, %v1230_v20  ;;  %v1240_v35 = vpack.c.bf16 %v1038_v6, %v1038_v6  ;;  %v1241_v36 = vpack.c.bf16 %v1039_v7, %v1039_v7  ;;  %v1242_v37 = vpack.c.bf16 %v1040_v10, %v1040_v10 }
 0x1bd   :  { %1110 = vst.msk [vmem:[%s2009_s4 + $0xc] sm:$0xf] %vm1106_vm1, %v1231_v8  ;;  %v1243_v40 = vpack.c.bf16 %v1041_v11, %v1041_v11  ;;  %1111 = vst.msk [vmem:[%s2009_s4 + $0x10] sm:$0xf] %vm1106_vm1, %v1232_v18 }
 0x1be   :  { %1112 = vst.msk [vmem:[%s2009_s4 + $0x14] sm:$0xf] %vm1106_vm1, %v1233_v29  ;;  %1113 = vst.msk [vmem:[%s2009_s4 + $0x18] sm:$0xf] %vm1106_vm1, %v1234_v30 }
 0x1bf   :  { %1114 = vst.msk [vmem:[%s2009_s4 + $0x1c] sm:$0xf] %vm1106_vm1, %v1235_v17  ;;  %1115 = vst.msk [vmem:[%s2009_s4 + $0x20] sm:$0xf] %vm1106_vm1, %v1236_v31 }
 0x1c0   :  { %1116 = vst.msk [vmem:[%s2009_s4 + $0x24] sm:$0xf] %vm1106_vm1, %v1237_v32  ;;  %1117 = vst.msk [vmem:[%s2009_s4 + $0x28] sm:$0xf] %vm1106_vm1, %v1238_v33 }
 0x1c1   :  { %1118 = vst.msk [vmem:[%s2009_s4 + $0x2c] sm:$0xf] %vm1106_vm1, %v1239_v34  ;;  %1119 = vst.msk [vmem:[%s2009_s4 + $0x30] sm:$0xf] %vm1106_vm1, %v1240_v35 }
 0x1c2   :  { %1120 = vst.msk [vmem:[%s2009_s4 + $0x34] sm:$0xf] %vm1106_vm1, %v1241_v36  ;;  %1121 = vst.msk [vmem:[%s2009_s4 + $0x38] sm:$0xf] %vm1106_vm1, %v1242_v37 }
 0x1c3   :  { %1122 = vst.msk [vmem:[%s2009_s4 + $0x3c] sm:$0xf] %vm1106_vm1, %v1243_v40 }

// kernel: base_model_forward.8
= control target key start
LH: loop header
LB: loop body
LE: loop exit
PB: predicated region body
PF: predicated region fallthrough
CT: control target
= control target key end

     0   :  { %vm557_vm0 = vcmask 523264   ;;  %vm1157_vm1 = vcmask 519168   ;;  %s2156_s1 = inlined_call_operand.vmem [shape: bf16[576,64], index: 1, kind: input, shape index: {}]   ;;  %s2157_s0 = inlined_call_operand.vmem [shape: bf16[128,576], index: 0, kind: input, shape index: {}]   ;;  %s2158_s2 = inlined_call_operand.vmem [shape: bf16[128,64], index: 2, kind: input, shape index: {}]   ;;  %s2159_s3 = inlined_call_operand.vmem [shape: f32[1,64], index: 3, kind: input, shape index: {}]   ;;  %s2160_s4 = inlined_call_operand.vmem [shape: f32[1,64], index: 4, kind: input, shape index: {}]   ;;  %s2161_s5 = inlined_call_operand.vmem [shape: bf16[128,64], index: 5, kind: output, shape index: {}]  }
   0x1   :  { %v1506_v0 = vld [vmem:[%s2156_s1 + $0x40] sm:$0xff]   ;;  %v1510_v4 = vld [vmem:[%s2156_s1 + $0x48] sm:$0xff]   ;;  %v1514_v8 = vld [vmem:[%s2156_s1 + $0x50] sm:$0xff]  }
   0x2   :  { %v1507_v1 = vld [vmem:[%s2156_s1 + $0xc0] sm:$0xff]   ;;  %1334 = vmatprep.subr.bf16.mxu0 %v1506_v0  ;;  %v1511_v5 = vld [vmem:[%s2156_s1 + $0xc8] sm:$0xff]   ;;  %v1515_v9 = vld [vmem:[%s2156_s1 + $0xd0] sm:$0xff]  }
   0x3   :  { %v1508_v2 = vld [vmem:[%s2156_s1] sm:$0xff]   ;;  %1398 = vmatprep.subr.bf16.mxu1 %v1507_v1  ;;  %v1512_v6 = vld [vmem:[%s2156_s1 + $0x8] sm:$0xff]   ;;  %v1516_v10 = vld [vmem:[%s2156_s1 + $0x10] sm:$0xff]  }
   0x4   :  { %v1509_v3 = vld [vmem:[%s2156_s1 + $0x80] sm:$0xff]   ;;  %1335 = vmatpush3.bf16.msra.mxu0 %v1508_v2  ;;  %v1513_v7 = vld [vmem:[%s2156_s1 + $0x88] sm:$0xff]   ;;  %v1517_v11 = vld [vmem:[%s2156_s1 + $0x90] sm:$0xff]  }
   0x5   :  { %1399 = vmatpush3.bf16.msra.mxu1 %v1509_v3  ;;  %1336 = vmatprep.subr.bf16.mxu0 %v1510_v4  ;;  %v1518_v12 = vld [vmem:[%s2156_s1 + $0x58] sm:$0xff]   ;;  %v1522_v16 = vld [vmem:[%s2156_s1 + $0x60] sm:$0xff]   ;;  %v1526_v20 = vld [vmem:[%s2156_s1 + $0x68] sm:$0xff]  }
   0x6   :  { %1400 = vmatprep.subr.bf16.mxu1 %v1511_v5  ;;  %v1519_v13 = vld [vmem:[%s2156_s1 + $0xd8] sm:$0xff]   ;;  %v1523_v17 = vld [vmem:[%s2156_s1 + $0xe0] sm:$0xff]   ;;  %v1527_v21 = vld [vmem:[%s2156_s1 + $0xe8] sm:$0xff]  }
   0x7   :  { %v1520_v14 = vld [vmem:[%s2156_s1 + $0x18] sm:$0xff]   ;;  %v1524_v18 = vld [vmem:[%s2156_s1 + $0x20] sm:$0xff]   ;;  %v1528_v22 = vld [vmem:[%s2156_s1 + $0x28] sm:$0xff]  }
   0x8   :  { %1337 = vmatpush3.bf16.msra.mxu0 %v1512_v6  ;;  %v1521_v15 = vld [vmem:[%s2156_s1 + $0x98] sm:$0xff]   ;;  %v1525_v19 = vld [vmem:[%s2156_s1 + $0xa0] sm:$0xff]   ;;  %v1529_v23 = vld [vmem:[%s2156_s1 + $0xa8] sm:$0xff]  }
   0x9   :  { %1401 = vmatpush3.bf16.msra.mxu1 %v1513_v7  ;;  %1338 = vmatprep.subr.bf16.mxu0 %v1514_v8  ;;  %v1530_v24 = vld [vmem:[%s2156_s1 + $0x70] sm:$0xff]   ;;  %v1534_v28 = vld [vmem:[%s2156_s1 + $0x78] sm:$0xff]   ;;  %v1543_v35 = vld [vmem:[%s2157_s0 + $0xc] ss:$20 sps:$4 sm:$0xff]  }
   0xa   :  { %1402 = vmatprep.subr.bf16.mxu1 %v1515_v9  ;;  %v1531_v25 = vld [vmem:[%s2156_s1 + $0xf0] sm:$0xff]   ;;  %v1535_v29 = vld [vmem:[%s2156_s1 + $0xf8] sm:$0xff]   ;;  %v1544_v36 = vld [vmem:[%s2156_s1 + $0x100] sm:$0xff]   ;;  %711 = vmatprep.mubr.bf16.mxu1 %v1543_v35 }
   0xb   :  { %v1532_v26 = vld [vmem:[%s2156_s1 + $0x30] sm:$0xff]   ;;  %v1536_v30 = vld [vmem:[%s2156_s1 + $0x38] sm:$0xff]   ;;  %v1545_v37 = vld [vmem:[%s2157_s0 + $0x2c] ss:$20 sps:$4 sm:$0xff]  }
   0xc   :  { %1339 = vmatpush3.bf16.msra.mxu0 %v1516_v10  ;;  %v1533_v27 = vld [vmem:[%s2156_s1 + $0xb0] sm:$0xff]   ;;  %v1537_v31 = vld [vmem:[%s2156_s1 + $0xb8] sm:$0xff]   ;;  %v1557_v42 = vld [vmem:[%s2156_s1 + $0x108] sm:$0xff]  }
   0xd   :  { %1403 = vmatpush3.bf16.msra.mxu1 %v1517_v11  ;;  %1340 = vmatprep.subr.bf16.mxu0 %v1518_v12  ;;  %v1538_v32 = vld [vmem:[%s2157_s0] ss:$20 sps:$4 sm:$0xff]   ;;  %v1540_v33 = vld [vmem:[%s2157_s0 + $0x4] ss:$20 sps:$4 sm:$0xff]   ;;  %v1541_v34 = vld [vmem:[%s2157_s0 + $0x8] ss:$20 sps:$4 sm:$0xff]  }
   0xe   :  { %1404 = vmatprep.subr.bf16.mxu1 %v1519_v13  ;;  %614 = vmatprep.mubr.bf16.mxu0 %v1540_v33  ;;  %v1547_v38 = vld [vmem:[%s2157_s0 + $0x34] ss:$20 sps:$4 sm:$0xff]   ;;  %v1550_v40 = vld [vmem:[%s2157_s0 + $0x30] ss:$20 sps:$4 sm:$0xff]   ;;  %v1556_v45 = vld [vmem:[%s2157_s0 + $0x58] ss:$20 sps:$4 sm:$0xff]  }
   0xf   :  { %v1549_v39 = vld [vmem:[%s2157_s0 + $0x28] ss:$20 sps:$4 sm:$0xff]   ;;  %v1555_v44 = vld [vmem:[%s2157_s0 + $0x50] ss:$20 sps:$4 sm:$0xff]   ;;  %v1562_v50 = vld [vmem:[%s2157_s0 + $0x78] ss:$20 sps:$4 sm:$0xff]  }
  0x10   :  { %1341 = vmatpush3.bf16.msra.mxu0 %v1520_v14  ;;  %v1551_v41 = vld [vmem:[%s2157_s0 + $0x54] ss:$20 sps:$4 sm:$0xff]   ;;  %v1553_v43 = vld [vmem:[%s2157_s0 + $0x5c] ss:$20 sps:$4 sm:$0xff]   ;;  %v1560_v48 = vld [vmem:[%s2157_s0 + $0x84] ss:$20 sps:$4 sm:$0xff]  }
  0x11   :  { %1405 = vmatpush3.bf16.msra.mxu1 %v1521_v15  ;;  %1342 = vmatprep.subr.bf16.mxu0 %v1522_v16  ;;  %v1570_v46 = vld [vmem:[%s2156_s1 + $0x110] sm:$0xff]   ;;  %v1583_v49 = vld [vmem:[%s2156_s1 + $0x118] sm:$0xff]   ;;  %v1566_v53 = vld [vmem:[%s2157_s0 + $0xac] ss:$20 sps:$4 sm:$0xff]  }
  0x12   :  { %1406 = vmatprep.subr.bf16.mxu1 %v1523_v17  ;;  %v1558_v47 = vld [vmem:[%s2157_s0 + $0x7c] ss:$20 sps:$4 sm:$0xff]   ;;  %v1563_v51 = vld [vmem:[%s2157_s0 + $0x80] ss:$20 sps:$4 sm:$0xff]   ;;  %v1564_v52 = vld [vmem:[%s2157_s0 + $0xa4] ss:$20 sps:$4 sm:$0xff]  }
  0x13   :  { %v1568_v54 = vld [vmem:[%s2157_s0 + $0xa0] ss:$20 sps:$4 sm:$0xff]   ;;  %v1569_v55 = vld [vmem:[%s2157_s0 + $0xa8] ss:$20 sps:$4 sm:$0xff]   ;;  %v1576_v59 = vld [vmem:[%s2157_s0 + $0xd0] ss:$20 sps:$4 sm:$0xff]  }
  0x14   :  { %1343 = vmatpush3.bf16.msra.mxu0 %v1524_v18  ;;  %v1571_v56 = vld [vmem:[%s2157_s0 + $0xcc] ss:$20 sps:$4 sm:$0xff]   ;;  %v1573_v57 = vld [vmem:[%s2157_s0 + $0xd4] ss:$20 sps:$4 sm:$0xff]   ;;  %v1579_v61 = vld [vmem:[%s2157_s0 + $0xfc] ss:$20 sps:$4 sm:$0xff]  }
  0x15   :  { %1407 = vmatpush3.bf16.msra.mxu1 %v1525_v19  ;;  %1344 = vmatprep.subr.bf16.mxu0 %v1526_v20  ;;  %v1575_v58 = vld [vmem:[%s2157_s0 + $0xc8] ss:$20 sps:$4 sm:$0xff]   ;;  %v1581_v62 = vld [vmem:[%s2157_s0 + $0xf0] ss:$20 sps:$4 sm:$0xff]   ;;  %v1582_v63 = vld [vmem:[%s2157_s0 + $0xf8] ss:$20 sps:$4 sm:$0xff]  }
  0x16   :  { %1408 = vmatprep.subr.bf16.mxu1 %v1527_v21  ;;  %v1577_v60 = vld [vmem:[%s2157_s0 + $0xf4] ss:$20 sps:$4 sm:$0xff]   ;;  %v1584_v0 = vld [vmem:[%s2157_s0 + $0x11c] ss:$20 sps:$4 sm:$0xff]   ;;  %v1586_v1 = vld [vmem:[%s2157_s0 + $0x124] ss:$20 sps:$4 sm:$0xff]  }
  0x17   :  { %v1588_v2 = vld [vmem:[%s2157_s0 + $0x118] ss:$20 sps:$4 sm:$0xff]   ;;  %v1589_v3 = vld [vmem:[%s2157_s0 + $0x120] ss:$20 sps:$4 sm:$0xff]   ;;  %v1590_v4 = vld [vmem:[%s2157_s0 + $0x10] ss:$20 sps:$4 sm:$0xff]  }
  0x18   :  { %1345 = vmatpush3.bf16.msra.mxu0 %v1528_v22  ;;  %v1591_v5 = vld [vmem:[%s2157_s0 + $0xb0] ss:$20 sps:$4 sm:$0xff]   ;;  %v1592_v6 = vld [vmem:[%s2157_s0 + $0x38] ss:$20 sps:$4 sm:$0xff]   ;;  %v1594_v8 = vld [vmem:[%s2157_s0 + $0x60] ss:$20 sps:$4 sm:$0xff]  }
  0x19   :  { %1409 = vmatpush3.bf16.msra.mxu1 %v1529_v23  ;;  %1346 = vmatprep.subr.bf16.mxu0 %v1530_v24  ;;  %v1593_v7 = vld [vmem:[%s2157_s0 + $0xd8] ss:$20 sps:$4 sm:$0xff]   ;;  %v1595_v9 = vld [vmem:[%s2157_s0 + $0x100] ss:$20 sps:$4 sm:$0xff]   ;;  %v1596_v10 = vld [vmem:[%s2157_s0 + $0x88] ss:$20 sps:$4 sm:$0xff]  }
  0x1a   :  { %1410 = vmatprep.subr.bf16.mxu1 %v1531_v25  ;;  %v1597_v11 = vld [vmem:[%s2157_s0 + $0x128] ss:$20 sps:$4 sm:$0xff]  }
  0x1c   :  { %1347 = vmatpush3.bf16.msra.mxu0 %v1532_v26 }
  0x1d   :  { %1411 = vmatpush3.bf16.msra.mxu1 %v1533_v27  ;;  %1348 = vmatprep.subr.bf16.mxu0 %v1534_v28 }
  0x1e   :  { %1412 = vmatprep.subr.bf16.mxu1 %v1535_v29 }
  0x20   :  { %1349 = vmatpush3.bf16.msra.mxu0 %v1536_v30 }
  0x21   :  { %1413 = vmatpush3.bf16.msra.mxu1 %v1537_v31  ;;  %1474 = vmatprep.subr.bf16.mxu0 %v1544_v36 }
  0x22   :  { %1498 = vmatprep.subr.bf16.mxu1 %v1544_v36 }
  0x23   :  { %615 = vmatmul.mubr.bf16.vlgmr.msra.gmra.mrb[0].mxu0 %v1538_v32 }
  0x24   :  { %712 = vmatmul.mubr.bf16.vlgmr.msra.gmra.mrb[0].mxu1 %v1541_v34  ;;  %1475 = vmatpush3.bf16.msra.mxu0 %v1544_v36 }
  0x25   :  { %622 = vmatprep.mubr.bf16.mxu0 %v1545_v37  ;;  %719 = vmatprep.mubr.bf16.mxu1 %v1547_v38 }
  0x26   :  { %1502 = vmatpush3.bf16.msra.mxu1 %v1544_v36  ;;  %1476 = vmatprep.subr.bf16.mxu0 %v1557_v42 }
  0x27   :  { %1499 = vmatprep.subr.bf16.mxu1 %v1557_v42 }
  0x28   :  { %1477 = vmatpush3.bf16.msra.mxu0 %v1557_v42 }
  0x29   :  { %1478 = vmatprep.subr.bf16.mxu0 %v1570_v46 }
  0x2a   :  { %1503 = vmatpush3.bf16.msra.mxu1 %v1557_v42 }
  0x2b   :  { %623 = vmatmul.mubr.bf16.gmra.mrb[4].mxu0 %v1549_v39  ;;  %1500 = vmatprep.subr.bf16.mxu1 %v1570_v46 }
  0x2c   :  { %720 = vmatmul.mubr.bf16.gmra.mrb[4].mxu1 %v1550_v40  ;;  %630 = vmatprep.mubr.bf16.mxu0 %v1551_v41 }
  0x2d   :  { %727 = vmatprep.mubr.bf16.mxu1 %v1553_v43  ;;  %1479 = vmatpush3.bf16.msra.mxu0 %v1570_v46 }
  0x2e   :  { %1504 = vmatpush3.bf16.msra.mxu1 %v1570_v46  ;;  %1480 = vmatprep.subr.bf16.mxu0 %v1583_v49 }
  0x2f   :  { %1501 = vmatprep.subr.bf16.mxu1 %v1583_v49 }
  0x31   :  { %1481 = vmatpush3.bf16.msra.mxu0 %v1583_v49 }
  0x32   :  { %1505 = vmatpush3.bf16.msra.mxu1 %v1583_v49 }
  0x33   :  { %631 = vmatmul.mubr.bf16.gmra.mrb[8].mxu0 %v1555_v44 }
  0x34   :  { %728 = vmatmul.mubr.bf16.gmra.mrb[8].mxu1 %v1556_v45  ;;  %638 = vmatprep.mubr.bf16.mxu0 %v1558_v47 }
  0x35   :  { %735 = vmatprep.mubr.bf16.mxu1 %v1560_v48 }
  0x3b   :  { %639 = vmatmul.mubr.bf16.gmra.mrb[12].mxu0 %v1562_v50 }
  0x3c   :  { %736 = vmatmul.mubr.bf16.gmra.mrb[12].mxu1 %v1563_v51  ;;  %646 = vmatprep.mubr.bf16.mxu0 %v1564_v52 }
  0x3d   :  { %743 = vmatprep.mubr.bf16.mxu1 %v1566_v53 }
  0x43   :  { %647 = vmatmul.mubr.bf16.gmra.mrb[16].mxu0 %v1568_v54 }
  0x44   :  { %744 = vmatmul.mubr.bf16.gmra.mrb[16].mxu1 %v1569_v55  ;;  %654 = vmatprep.mubr.bf16.mxu0 %v1571_v56 }
  0x45   :  { %751 = vmatprep.mubr.bf16.mxu1 %v1573_v57 }
  0x4b   :  { %655 = vmatmul.mubr.bf16.gmra.mrb[20].mxu0 %v1575_v58 }
  0x4c   :  { %752 = vmatmul.mubr.bf16.gmra.mrb[20].mxu1 %v1576_v59  ;;  %662 = vmatprep.mubr.bf16.mxu0 %v1577_v60 }
  0x4d   :  { %759 = vmatprep.mubr.bf16.mxu1 %v1579_v61 }
  0x53   :  { %663 = vmatmul.mubr.bf16.gmra.mrb[24].mxu0 %v1581_v62 }
  0x54   :  { %760 = vmatmul.mubr.bf16.gmra.mrb[24].mxu1 %v1582_v63  ;;  %670 = vmatprep.mubr.bf16.mxu0 %v1584_v0 }
  0x55   :  { %767 = vmatprep.mubr.bf16.mxu1 %v1586_v1 }
  0x5b   :  { %671 = vmatmul.mubr.bf16.gmra.mrb[28].mxu0 %v1588_v2 }
  0x5c   :  { %768 = vmatmul.mubr.bf16.gmra.mrb[28].mxu1 %v1589_v3  ;;  %1482 = vmatprep.mubr.msk.bf16.mxu0 %vm557_vm0, %v1590_v4 }
  0x5d   :  { %1490 = vmatprep.mubr.msk.bf16.mxu1 %vm557_vm0, %v1591_v5 }
  0x63   :  { %1483 = vmatmul.mubr.msk.bf16.vlgmr.msra.gmra.mrb[32].mxu0 %vm557_vm0, %v1592_v6 }
  0x64   :  { %1491 = vmatmul.mubr.msk.bf16.vlgmr.msra.gmra.mrb[32].mxu1 %vm557_vm0, %v1593_v7  ;;  %1486 = vmatprep.mubr.msk.bf16.mxu0 %vm557_vm0, %v1594_v8 }
  0x65   :  { %1494 = vmatprep.mubr.msk.bf16.mxu1 %vm557_vm0, %v1595_v9 }
  0x6b   :  { %1487 = vmatmul.mubr.msk.bf16.gmra.mrb[36].mxu0 %vm557_vm0, %v1596_v10 }
  0x6c   :  { %1495 = vmatmul.mubr.msk.bf16.gmra.mrb[36].mxu1 %vm557_vm0, %v1597_v11 }
  0xf6   :  { %v1350_v12 = vpop.f32.mrb[0].mxu0 }
  0xf7   :  { %v1414_v13 = vpop.f32.mrb[0].mxu1  ;;  %v1351_v14 = vpop.f32.mrb[1].mxu0 }
  0xf8   :  { %v1352_v15 = vadd.f32 %v1351_v14, %v1350_v12  ;;  %v1415_v16 = vpop.f32.mrb[1].mxu1  ;;  %v1353_v17 = vpop.f32.mrb[2].mxu0 }
  0xf9   :  { %v1416_v18 = vadd.f32 %v1415_v16, %v1414_v13  ;;  %v1417_v19 = vpop.f32.mrb[2].mxu1  ;;  %v1354_v20 = vpop.f32.mrb[3].mxu0 }
  0xfa   :  { %v1355_v21 = vadd.f32 %v1354_v20, %v1353_v17  ;;  %v1418_v22 = vpop.f32.mrb[3].mxu1 }
  0xfb   :  { %v1419_v23 = vadd.f32 %v1418_v22, %v1417_v19  ;;  %v1866_v24 = vadd.f32 %v1416_v18, %v1352_v15 }
  0xfd   :  { %v1868_v25 = vadd.f32 %v1419_v23, %v1355_v21 }
  0xfe   :  { %v1356_v26 = vpop.f32.mrb[4].mxu0 }
  0xff   :  { %v1420_v27 = vpop.f32.mrb[4].mxu1  ;;  %v1357_v28 = vpop.f32.mrb[5].mxu0 }
 0x100   :  { %v1358_v29 = vadd.f32 %v1357_v28, %v1356_v26  ;;  %v1421_v30 = vpop.f32.mrb[5].mxu1  ;;  %v1359_v31 = vpop.f32.mrb[6].mxu0 }
 0x101   :  { %v1422_v32 = vadd.f32 %v1421_v30, %v1420_v27  ;;  %v1423_v33 = vpop.f32.mrb[6].mxu1  ;;  %v1360_v34 = vpop.f32.mrb[7].mxu0 }
 0x102   :  { %v1361_v35 = vadd.f32 %v1360_v34, %v1359_v31  ;;  %v1424_v36 = vpop.f32.mrb[7].mxu1 }
 0x103   :  { %v1425_v37 = vadd.f32 %v1424_v36, %v1423_v33  ;;  %v1870_v38 = vadd.f32 %v1422_v32, %v1358_v29 }
 0x105   :  { %v1872_v39 = vadd.f32 %v1425_v37, %v1361_v35 }
 0x106   :  { %v1362_v40 = vpop.f32.mrb[8].mxu0 }
 0x107   :  { %v1426_v41 = vpop.f32.mrb[8].mxu1  ;;  %v1363_v42 = vpop.f32.mrb[9].mxu0 }
 0x108   :  { %v1364_v43 = vadd.f32 %v1363_v42, %v1362_v40  ;;  %v1427_v44 = vpop.f32.mrb[9].mxu1  ;;  %v1365_v45 = vpop.f32.mrb[10].mxu0 }
 0x109   :  { %v1428_v46 = vadd.f32 %v1427_v44, %v1426_v41  ;;  %v1429_v47 = vpop.f32.mrb[10].mxu1  ;;  %v1366_v48 = vpop.f32.mrb[11].mxu0 }
 0x10a   :  { %v1367_v49 = vadd.f32 %v1366_v48, %v1365_v45  ;;  %v1430_v50 = vpop.f32.mrb[11].mxu1 }
 0x10b   :  { %v1431_v51 = vadd.f32 %v1430_v50, %v1429_v47  ;;  %v1874_v52 = vadd.f32 %v1428_v46, %v1364_v43 }
 0x10d   :  { %v1876_v53 = vadd.f32 %v1431_v51, %v1367_v49 }
 0x10e   :  { %v1368_v54 = vpop.f32.mrb[12].mxu0 }
 0x10f   :  { %v1432_v55 = vpop.f32.mrb[12].mxu1  ;;  %v1369_v56 = vpop.f32.mrb[13].mxu0 }
 0x110   :  { %v1370_v57 = vadd.f32 %v1369_v56, %v1368_v54  ;;  %v1433_v58 = vpop.f32.mrb[13].mxu1  ;;  %v1371_v59 = vpop.f32.mrb[14].mxu0 }
 0x111   :  { %v1434_v60 = vadd.f32 %v1433_v58, %v1432_v55  ;;  %v1435_v61 = vpop.f32.mrb[14].mxu1  ;;  %v1372_v62 = vpop.f32.mrb[15].mxu0 }
 0x112   :  { %v1373_v63 = vadd.f32 %v1372_v62, %v1371_v59  ;;  %v1436_v0 = vpop.f32.mrb[15].mxu1 }
 0x113   :  { %v1437_v1 = vadd.f32 %v1436_v0, %v1435_v61  ;;  %v1878_v2 = vadd.f32 %v1434_v60, %v1370_v57 }
 0x115   :  { %v1880_v3 = vadd.f32 %v1437_v1, %v1373_v63 }
 0x116   :  { %v1374_v4 = vpop.f32.mrb[16].mxu0 }
 0x117   :  { %v1438_v5 = vpop.f32.mrb[16].mxu1  ;;  %v1375_v6 = vpop.f32.mrb[17].mxu0 }
 0x118   :  { %v1376_v7 = vadd.f32 %v1375_v6, %v1374_v4  ;;  %v1439_v8 = vpop.f32.mrb[17].mxu1  ;;  %v1377_v9 = vpop.f32.mrb[18].mxu0 }
 0x119   :  { %v1440_v10 = vadd.f32 %v1439_v8, %v1438_v5  ;;  %v1441_v11 = vpop.f32.mrb[18].mxu1  ;;  %v1378_v12 = vpop.f32.mrb[19].mxu0 }
 0x11a   :  { %v1379_v13 = vadd.f32 %v1378_v12, %v1377_v9  ;;  %v1442_v14 = vpop.f32.mrb[19].mxu1 }
 0x11b   :  { %v1443_v15 = vadd.f32 %v1442_v14, %v1441_v11  ;;  %v746_v16 = vadd.f32 %v1440_v10, %v1376_v7 }
 0x11d   :  { %v749_v17 = vadd.f32 %v1443_v15, %v1379_v13 }
 0x11e   :  { %v1380_v18 = vpop.f32.mrb[20].mxu0 }
 0x11f   :  { %v1444_v19 = vpop.f32.mrb[20].mxu1  ;;  %v1381_v20 = vpop.f32.mrb[21].mxu0 }
 0x120   :  { %v1382_v21 = vadd.f32 %v1381_v20, %v1380_v18  ;;  %v1445_v22 = vpop.f32.mrb[21].mxu1  ;;  %v1383_v23 = vpop.f32.mrb[22].mxu0 }
 0x121   :  { %v1446_v26 = vadd.f32 %v1445_v22, %v1444_v19  ;;  %v1447_v27 = vpop.f32.mrb[22].mxu1  ;;  %v1384_v28 = vpop.f32.mrb[23].mxu0 }
 0x122   :  { %v1385_v29 = vadd.f32 %v1384_v28, %v1383_v23  ;;  %v1448_v30 = vpop.f32.mrb[23].mxu1 }
 0x123   :  { %v1449_v31 = vadd.f32 %v1448_v30, %v1447_v27  ;;  %v754_v32 = vadd.f32 %v1446_v26, %v1382_v21 }
 0x125   :  { %v757_v33 = vadd.f32 %v1449_v31, %v1385_v29 }
 0x126   :  { %v1386_v34 = vpop.f32.mrb[24].mxu0 }
 0x127   :  { %v1450_v35 = vpop.f32.mrb[24].mxu1  ;;  %v1387_v36 = vpop.f32.mrb[25].mxu0 }
 0x128   :  { %v1388_v37 = vadd.f32 %v1387_v36, %v1386_v34  ;;  %v1451_v40 = vpop.f32.mrb[25].mxu1  ;;  %v1389_v41 = vpop.f32.mrb[26].mxu0 }
 0x129   :  { %v1452_v42 = vadd.f32 %v1451_v40, %v1450_v35  ;;  %v1453_v43 = vpop.f32.mrb[26].mxu1  ;;  %v1390_v44 = vpop.f32.mrb[27].mxu0 }
 0x12a   :  { %v1391_v45 = vadd.f32 %v1390_v44, %v1389_v41  ;;  %v1454_v46 = vpop.f32.mrb[27].mxu1 }
 0x12b   :  { %v1455_v47 = vadd.f32 %v1454_v46, %v1453_v43  ;;  %v762_v48 = vadd.f32 %v1452_v42, %v1388_v37 }
 0x12d   :  { %v765_v49 = vadd.f32 %v1455_v47, %v1391_v45 }
 0x12e   :  { %v1392_v50 = vpop.f32.mrb[28].mxu0 }
 0x12f   :  { %v1456_v51 = vpop.f32.mrb[28].mxu1  ;;  %v1393_v54 = vpop.f32.mrb[29].mxu0 }
 0x130   :  { %v1394_v55 = vadd.f32 %v1393_v54, %v1392_v50  ;;  %v1457_v56 = vpop.f32.mrb[29].mxu1  ;;  %v1395_v57 = vpop.f32.mrb[30].mxu0 }
 0x131   :  { %v1458_v58 = vadd.f32 %v1457_v56, %v1456_v51  ;;  %v1459_v59 = vpop.f32.mrb[30].mxu1  ;;  %v1396_v60 = vpop.f32.mrb[31].mxu0 }
 0x132   :  { %v1397_v61 = vadd.f32 %v1396_v60, %v1395_v57  ;;  %v1460_v62 = vpop.f32.mrb[31].mxu1 }
 0x133   :  { %v1461_v63 = vadd.f32 %v1460_v62, %v1459_v59  ;;  %v770_v0 = vadd.f32 %v1458_v58, %v1394_v55 }
 0x135   :  { %v773_v1 = vadd.f32 %v1461_v63, %v1397_v61 }
 0x136   :  { %v1484_v4 = vpop.f32.mrb[32].mxu0 }
 0x137   :  { %v1883_v5 = vadd.f32 %v1484_v4, %v1870_v38  ;;  %v1492_v6 = vpop.f32.mrb[32].mxu1  ;;  %v810_v7 = vpop.f32.mrb[33].mxu0 }
 0x138   :  { %v1885_v8 = vadd.f32 %v1492_v6, %v754_v32  ;;  %v1888_v9 = vadd.f32 %v810_v7, %v1866_v24  ;;  %v842_v10 = vpop.f32.mrb[33].mxu1  ;;  %v1485_v11 = vpop.f32.mrb[34].mxu0 }
 0x139   :  { %v1890_v12 = vadd.f32 %v842_v10, %v746_v16  ;;  %v1893_v13 = vadd.f32 %v1485_v11, %v1872_v39  ;;  %v1493_v14 = vpop.f32.mrb[34].mxu1  ;;  %v813_v15 = vpop.f32.mrb[35].mxu0  ;;  %v876_v16 = vsel %vm557_vm0, %v1883_v5, 0.0 }
 0x13a   :  { %v1895_v18 = vadd.f32 %v1493_v14, %v757_v33  ;;  %v814_v38 = vadd.f32 %v813_v15, %v1868_v25  ;;  %v845_v19 = vpop.f32.mrb[35].mxu1  ;;  %v873_v24 = vsel %vm557_vm0, %v1888_v9, 0.0 }
 0x13b   :  { %v1898_v20 = vadd.f32 %v845_v19, %v749_v17  ;;  %v878_v25 = vsel %vm557_vm0, %v1893_v13, 0.0 }
 0x13c   :  { %v874_v21 = vsel %vm557_vm0, %v814_v38, 0.0  ;;  %v894_v55 = vsel %vm557_vm0, %v1895_v18, 0.0 }
 0x13d   :  { %v875_v22 = vadd.f32 %v874_v21, %v873_v24  ;;  %v890_v51 = vsel %vm557_vm0, %v1898_v20, 0.0 }
 0x13e   :  { %v1488_v39 = vpop.f32.mrb[36].mxu0 }
 0x13f   :  { %v877_v23 = vadd.f32 %v876_v16, %v875_v22  ;;  %v835_v26 = vadd.f32 %v1488_v39, %v1878_v2  ;;  %v1496_v27 = vpop.f32.mrb[36].mxu1  ;;  %v826_v28 = vpop.f32.mrb[37].mxu0 }
 0x140   :  { %v867_v17 = vadd.f32 %v1496_v27, %v770_v0  ;;  %v827_v29 = vadd.f32 %v826_v28, %v1874_v52  ;;  %v858_v30 = vpop.f32.mrb[37].mxu1  ;;  %v1489_v31 = vpop.f32.mrb[38].mxu0 }
 0x141   :  { %v879_v32 = vadd.f32 %v878_v25, %v877_v23  ;;  %v859_v33 = vadd.f32 %v858_v30, %v762_v48  ;;  %v838_v34 = vadd.f32 %v1489_v31, %v1880_v3  ;;  %v1497_v35 = vpop.f32.mrb[38].mxu1  ;;  %v829_v36 = vpop.f32.mrb[39].mxu0  ;;  %v884_v52 = vsel %vm557_vm0, %v835_v26, 0.0 }
 0x142   :  { %v880_v37 = vsel %vm557_vm0, %v827_v29, 0.0  ;;  %v870_v40 = vadd.f32 %v1497_v35, %v773_v1  ;;  %v830_v2 = vadd.f32 %v829_v36, %v1876_v53  ;;  %v861_v41 = vpop.f32.mrb[39].mxu1  ;;  %v888_v3 = vsel %vm557_vm0, %v1890_v12, 0.0 }
 0x143   :  { %v881_v42 = vadd.f32 %v880_v37, %v879_v32  ;;  %v862_v43 = vadd.f32 %v861_v41, %v765_v49  ;;  %v886_v47 = vsel %vm557_vm0, %v838_v34, 0.0  ;;  %v892_v49 = vsel %vm557_vm0, %v1885_v8, 0.0 }
 0x144   :  { %v882_v44 = vsel %vm557_vm0, %v830_v2, 0.0  ;;  %v896_v57 = vsel %vm557_vm0, %v859_v33, 0.0  ;;  %v900_v61 = vsel %vm557_vm0, %v867_v17, 0.0  ;;  %v902_v63 = vsel %vm557_vm0, %v870_v40, 0.0 }
 0x145   :  { %v883_v45 = vadd.f32 %v882_v44, %v881_v42  ;;  %v898_v59 = vsel %vm557_vm0, %v862_v43, 0.0 }
 0x147   :  { %v885_v46 = vadd.f32 %v884_v52, %v883_v45 }
 0x149   :  { %v887_v48 = vadd.f32 %v886_v47, %v885_v46 }
 0x14b   :  { %v889_v50 = vadd.f32 %v888_v3, %v887_v48 }
 0x14d   :  { %v891_v53 = vadd.f32 %v890_v51, %v889_v50 }
 0x14f   :  { %v893_v54 = vadd.f32 %v892_v49, %v891_v53 }
 0x151   :  { %v895_v56 = vadd.f32 %v894_v55, %v893_v54 }
 0x153   :  { %v897_v58 = vadd.f32 %v896_v57, %v895_v56 }
 0x155   :  { %v899_v60 = vadd.f32 %v898_v59, %v897_v58 }
 0x157   :  { %v901_v62 = vadd.f32 %v900_v61, %v899_v60 }
 0x159   :  { %v903_v0 = vadd.f32 %v902_v63, %v901_v62 }
 0x15b   :  { %v904_v1 = vrot.slane %v903_v0, 4 }
 0x15d   :  { %v905_v4 = vadd.f32 %v904_v1, %v903_v0 }
 0x15f   :  { %v906_v6 = vrot.slane %v905_v4, 2 }
 0x161   :  { %v907_v7 = vadd.f32 %v906_v6, %v905_v4 }
 0x163   :  { %v908_v10 = vrot.slane %v907_v7, 1 }
 0x165   :  { %v909_v11 = vadd.f32 %v908_v10, %v907_v7 }
 0x167   :  { %v911_v14 = vmul.f32 0.0078125, %v909_v11 }
 0x169   :  { %v1928_v15 = vsub.f32 %v1888_v9, %v911_v14  ;;  %v1930_v19 = vsub.f32 %v814_v38, %v911_v14  ;;  %v1933_v24 = vsub.f32 %v1883_v5, %v911_v14  ;;  %v1936_v21 = vsub.f32 %v1893_v13, %v911_v14 }
 0x16a   :  { %v1938_v22 = vsub.f32 %v827_v29, %v911_v14  ;;  %v1940_v16 = vsub.f32 %v830_v2, %v911_v14  ;;  %v1942_v39 = vsub.f32 %v835_v26, %v911_v14  ;;  %v1944_v23 = vsub.f32 %v838_v34, %v911_v14 }
 0x16b   :  { %v1947_v27 = vsub.f32 %v1890_v12, %v911_v14  ;;  %v1950_v9 = vsub.f32 %v1898_v20, %v911_v14  ;;  %v1953_v5 = vsub.f32 %v1885_v8, %v911_v14  ;;  %v1956_v13 = vsub.f32 %v1895_v18, %v911_v14 }
 0x16c   :  { %v1958_v38 = vsub.f32 %v859_v33, %v911_v14  ;;  %v1960_v28 = vsub.f32 %v862_v43, %v911_v14  ;;  %v1962_v26 = vsub.f32 %v867_v17, %v911_v14  ;;  %v1964_v25 = vsub.f32 %v870_v40, %v911_v14 }
 0x16d   :  { %v928_v12 = vmul.f32 %v1928_v15, %v1928_v15  ;;  %v929_v20 = vmul.f32 %v1930_v19, %v1930_v19  ;;  %v930_v8 = vmul.f32 %v1933_v24, %v1933_v24  ;;  %v931_v18 = vmul.f32 %v1936_v21, %v1936_v21 }
 0x16e   :  { %v932_v31 = vmul.f32 %v1938_v22, %v1938_v22  ;;  %v933_v34 = vmul.f32 %v1940_v16, %v1940_v16  ;;  %v934_v37 = vmul.f32 %v1942_v39, %v1942_v39  ;;  %v935_v41 = vmul.f32 %v1944_v23, %v1944_v23 }
 0x16f   :  { %v944_v29 = vsel %vm557_vm0, %v928_v12, 0.0  ;;  %v945_v30 = vsel %vm557_vm0, %v929_v20, 0.0  ;;  %v947_v32 = vsel %vm557_vm0, %v930_v8, 0.0  ;;  %v949_v35 = vsel %vm557_vm0, %v931_v18, 0.0 }
 0x170   :  { %v946_v17 = vadd.f32 %v945_v30, %v944_v29  ;;  %v951_v40 = vsel %vm557_vm0, %v932_v31, 0.0  ;;  %v953_v42 = vsel %vm557_vm0, %v933_v34, 0.0  ;;  %v936_v44 = vmul.f32 %v1947_v27, %v1947_v27  ;;  %v984_v34 = vld [vmem:[%s2159_s3] sm:$0x1] }
 0x171   :  { %v955_v45 = vsel %vm557_vm0, %v934_v37, 0.0  ;;  %v937_v46 = vmul.f32 %v1950_v9, %v1950_v9  ;;  %v957_v47 = vsel %vm557_vm0, %v935_v41, 0.0  ;;  %v938_v3 = vmul.f32 %v1953_v5, %v1953_v5 }
 0x172   :  { %v948_v33 = vadd.f32 %v947_v32, %v946_v17  ;;  %v959_v50 = vsel %vm557_vm0, %v936_v44, 0.0  ;;  %v939_v53 = vmul.f32 %v1956_v13, %v1956_v13  ;;  %v940_v55 = vmul.f32 %v1958_v38, %v1958_v38  ;;  %v2047_v44 = vld [vmem:[%s2158_s2 + $0x28] sm:$0xff]  }
 0x173   :  { %v961_v49 = vsel %vm557_vm0, %v937_v46, 0.0  ;;  %v963_v56 = vsel %vm557_vm0, %v938_v3, 0.0  ;;  %v941_v58 = vmul.f32 %v1960_v28, %v1960_v28  ;;  %v942_v61 = vmul.f32 %v1962_v26, %v1962_v26  ;;  %v2060_v3 = vld [vmem:[%s2158_s2 + $0x38] sm:$0xff]  }
 0x174   :  { %v950_v36 = vadd.f32 %v949_v35, %v948_v33  ;;  %v965_v59 = vsel %vm557_vm0, %v939_v53, 0.0  ;;  %v967_v62 = vsel %vm557_vm0, %v940_v55, 0.0  ;;  %v943_v0 = vmul.f32 %v1964_v25, %v1964_v25  ;;  %v2017_v33 = vld [vmem:[%s2158_s2] sm:$0xff]   ;;  %v2025_v35 = vld [vmem:[%s2158_s2 + $0x8] sm:$0xff]  }
 0x175   :  { %v969_v1 = vsel %vm557_vm0, %v941_v58, 0.0  ;;  %v971_v6 = vsel %vm557_vm0, %v942_v61, 0.0  ;;  %v986_v31 = vlaneseq  ;;  %v1302_v46 = vunpack.c.h.bf16 %v2025_v35 }
 0x176   :  { %v952_v2 = vadd.f32 %v951_v40, %v950_v36  ;;  %v973_v10 = vsel %vm557_vm0, %v943_v0, 0.0  ;;  %v2030_v36 = vld [vmem:[%s2158_s2 + $0x10] sm:$0xff]   ;;  %v2035_v40 = vld [vmem:[%s2158_s2 + $0x18] sm:$0xff]   ;;  %v1326_v61 = vunpack.c.h.bf16 %v2060_v3 }
 0x177   :  { %v987_v32 = vshrl.u32 %v986_v31, 7  ;;  %v1310_v53 = vunpack.c.h.bf16 %v2035_v40 }
 0x178   :  { %v954_v43 = vadd.f32 %v953_v42, %v952_v2  ;;  %v2040_v2 = vld [vmem:[%s2158_s2 + $0x20] sm:$0xff]   ;;  %v1297_v42 = vunpack.c.l.bf16 %v2017_v33 }
 0x179   :  { %v988_v37 = vsub.s32 0, %v987_v32  ;;  %v1314_v55 = vunpack.c.h.bf16 %v2040_v2 }
 0x17a   :  { %v956_v52 = vadd.f32 %v955_v45, %v954_v43  ;;  %v1298_v43 = vunpack.c.h.bf16 %v2017_v33 }
 0x17c   :  { %v958_v48 = vadd.f32 %v957_v47, %v956_v52  ;;  %v1301_v52 = vunpack.c.l.bf16 %v2025_v35  ;;  %v1305_v47 = vunpack.c.l.bf16 %v2030_v36 }
 0x17e   :  { %v960_v51 = vadd.f32 %v959_v50, %v958_v48  ;;  %v2055_v48 = vld [vmem:[%s2158_s2 + $0x30] sm:$0xff]   ;;  %v1306_v50 = vunpack.c.h.bf16 %v2030_v36 }
 0x17f   :  { %v1321_v58 = vunpack.c.l.bf16 %v2055_v48 }
 0x180   :  { %v962_v54 = vadd.f32 %v961_v49, %v960_v51  ;;  %v1309_v51 = vunpack.c.l.bf16 %v2035_v40  ;;  %v1313_v49 = vunpack.c.l.bf16 %v2040_v2 }
 0x182   :  { %v964_v57 = vadd.f32 %v963_v56, %v962_v54  ;;  %v1317_v56 = vunpack.c.l.bf16 %v2047_v44 }
 0x184   :  { %v966_v60 = vadd.f32 %v965_v59, %v964_v57  ;;  %v1318_v57 = vunpack.c.h.bf16 %v2047_v44  ;;  %v1322_v59 = vunpack.c.h.bf16 %v2055_v48 }
 0x186   :  { %v968_v63 = vadd.f32 %v967_v62, %v966_v60  ;;  %v1325_v60 = vunpack.c.l.bf16 %v2060_v3 }
 0x188   :  { %v970_v4 = vadd.f32 %v969_v1, %v968_v63 }
 0x18a   :  { %v972_v7 = vadd.f32 %v971_v6, %v970_v4 }
 0x18c   :  { %v974_v11 = vadd.f32 %v973_v10, %v972_v7 }
 0x18e   :  { %v975_v14 = vrot.slane %v974_v11, 4 }
 0x190   :  { %v976_v12 = vadd.f32 %v975_v14, %v974_v11  ;;  %v1262_v11 = vld [vmem:[%s2160_s4] ss:$0 sm:$0xff] }
 0x192   :  { %v977_v20 = vrot.slane %v976_v12, 2 }
 0x194   :  { %v978_v8 = vadd.f32 %v977_v20, %v976_v12 }
 0x196   :  { %v979_v18 = vrot.slane %v978_v8, 1 }
 0x198   :  { %v980_v29 = vadd.f32 %v979_v18, %v978_v8 }
 0x19a   :  { %v981_v30 = vmul.f32 0.0078125, %v980_v29 }
 0x19c   :  { %v982_v17 = vadd.f32 1e-05, %v981_v30 }
 0x19e   :  { %1598 = vrsqrt.f32 %v982_v17 }
 0x1a8   :  { %v1599_v41 = vpop.eup %1598 }
 0x1a9   :  { %v985_v45 = vmul.f32 %v1599_v41, %v984_v34 }
 0x1ab   :  { %v989_v54 = vrot.slane %v985_v45, %v988_v37 }
 0x1ad   :  { %v990_v62 = vmul.f32 %v989_v54, %v1928_v15  ;;  %v991_v63 = vmul.f32 %v989_v54, %v1930_v19  ;;  %v992_v0 = vmul.f32 %v989_v54, %v1933_v24  ;;  %v993_v1 = vmul.f32 %v989_v54, %v1936_v21 }
 0x1ae   :  { %v994_v4 = vmul.f32 %v989_v54, %v1938_v22  ;;  %v995_v6 = vmul.f32 %v989_v54, %v1940_v16  ;;  %v996_v7 = vmul.f32 %v989_v54, %v1942_v39  ;;  %v997_v10 = vmul.f32 %v989_v54, %v1944_v23 }
 0x1af   :  { %v998_v15 = vmul.f32 %v989_v54, %v1947_v27  ;;  %v999_v19 = vmul.f32 %v989_v54, %v1950_v9  ;;  %v1000_v24 = vmul.f32 %v989_v54, %v1953_v5  ;;  %v1001_v21 = vmul.f32 %v989_v54, %v1956_v13 }
 0x1b0   :  { %v1002_v22 = vmul.f32 %v989_v54, %v1958_v38  ;;  %v1003_v16 = vmul.f32 %v989_v54, %v1960_v28  ;;  %v1004_v39 = vmul.f32 %v989_v54, %v1962_v26  ;;  %v1005_v23 = vmul.f32 %v989_v54, %v1964_v25 }
 0x1b1   :  { %v1013_v14 = vadd.f32 %v1262_v11, %v990_v62  ;;  %v1014_v12 = vadd.f32 %v1262_v11, %v991_v63  ;;  %v1015_v20 = vadd.f32 %v1262_v11, %v992_v0  ;;  %v1016_v8 = vadd.f32 %v1262_v11, %v993_v1 }
 0x1b2   :  { %v1017_v18 = vadd.f32 %v1262_v11, %v994_v4  ;;  %v1018_v27 = vadd.f32 %v1262_v11, %v995_v6  ;;  %v1019_v29 = vadd.f32 %v1262_v11, %v996_v7  ;;  %v1020_v9 = vadd.f32 %v1262_v11, %v997_v10 }
 0x1b3   :  { %v1021_v30 = vadd.f32 %v1262_v11, %v998_v15  ;;  %v1022_v5 = vadd.f32 %v1262_v11, %v999_v19  ;;  %v1023_v17 = vadd.f32 %v1262_v11, %v1000_v24  ;;  %v1024_v13 = vadd.f32 %v1262_v11, %v1001_v21 }
 0x1b4   :  { %v1025_v31 = vadd.f32 %v1262_v11, %v1002_v22  ;;  %v1026_v38 = vadd.f32 %v1262_v11, %v1003_v16  ;;  %v1027_v32 = vadd.f32 %v1262_v11, %v1004_v39  ;;  %v1028_v28 = vadd.f32 %v1262_v11, %v1005_v23 }
 0x1b5   :  { %v1061_v26 = vadd.f32 %v1297_v42, %v1013_v14  ;;  %v1062_v33 = vadd.f32 %v1298_v43, %v1014_v12  ;;  %v1063_v25 = vadd.f32 %v1301_v52, %v1015_v20  ;;  %v1064_v34 = vadd.f32 %v1302_v46, %v1016_v8 }
 0x1b6   :  { %v1065_v35 = vadd.f32 %v1305_v47, %v1017_v18  ;;  %v1066_v36 = vadd.f32 %v1306_v50, %v1018_v27  ;;  %v1067_v37 = vadd.f32 %v1309_v51, %v1019_v29  ;;  %v1068_v40 = vadd.f32 %v1310_v53, %v1020_v9 }
 0x1b7   :  { %v1069_v2 = vadd.f32 %v1313_v49, %v1021_v30  ;;  %v1070_v41 = vadd.f32 %v1314_v55, %v1022_v5  ;;  %v1071_v44 = vadd.f32 %v1317_v56, %v1023_v17  ;;  %v1072_v45 = vadd.f32 %v1318_v57, %v1024_v13 }
 0x1b8   :  { %v1073_v48 = vadd.f32 %v1321_v58, %v1025_v31  ;;  %v1074_v3 = vadd.f32 %v1322_v59, %v1026_v38  ;;  %v1075_v54 = vadd.f32 %v1325_v60, %v1027_v32  ;;  %v1076_v62 = vadd.f32 %v1326_v61, %v1028_v28 }
 0x1b9   :  { %v1077_v63 = vmax.f32 %v1061_v26, 0.0  ;;  %v1078_v0 = vmax.f32 %v1062_v33, 0.0  ;;  %v1079_v1 = vmax.f32 %v1063_v25, 0.0  ;;  %v1080_v4 = vmax.f32 %v1064_v34, 0.0 }
 0x1ba   :  { %v1081_v42 = vmax.f32 %v1065_v35, 0.0  ;;  %v1082_v43 = vmax.f32 %v1066_v36, 0.0  ;;  %v1083_v52 = vmax.f32 %v1067_v37, 0.0  ;;  %v1084_v46 = vmax.f32 %v1068_v40, 0.0 }
 0x1bb   :  { %v1085_v47 = vmax.f32 %v1069_v2, 0.0  ;;  %v1086_v50 = vmax.f32 %v1070_v41, 0.0  ;;  %v1087_v51 = vmax.f32 %v1071_v44, 0.0  ;;  %v1088_v53 = vmax.f32 %v1072_v45, 0.0 }
 0x1bc   :  { %v1089_v49 = vmax.f32 %v1073_v48, 0.0  ;;  %v1090_v55 = vmax.f32 %v1074_v3, 0.0  ;;  %v1091_v56 = vmax.f32 %v1075_v54, 0.0  ;;  %v1092_v57 = vmax.f32 %v1076_v62, 0.0 }
 0x1bd   :  { %v1279_v58 = vpack.c.bf16 %v1077_v63, %v1077_v63  ;;  %v1280_v59 = vpack.c.bf16 %v1078_v0, %v1078_v0  ;;  %v1281_v60 = vpack.c.bf16 %v1079_v1, %v1079_v1  ;;  %v1282_v61 = vpack.c.bf16 %v1080_v4, %v1080_v4 }
 0x1be   :  { %v1283_v6 = vpack.c.bf16 %v1081_v42, %v1081_v42  ;;  %v1284_v7 = vpack.c.bf16 %v1082_v43, %v1082_v43  ;;  %v1285_v10 = vpack.c.bf16 %v1083_v52, %v1083_v52  ;;  %v1286_v11 = vpack.c.bf16 %v1084_v46, %v1084_v46 }
 0x1bf   :  { %v1287_v15 = vpack.c.bf16 %v1085_v47, %v1085_v47  ;;  %v1288_v19 = vpack.c.bf16 %v1086_v50, %v1086_v50  ;;  %v1289_v24 = vpack.c.bf16 %v1087_v51, %v1087_v51  ;;  %v1290_v21 = vpack.c.bf16 %v1088_v53, %v1088_v53  ;;  %1158 = vst.msk [vmem:[%s2161_s5] sm:$0xf] %vm1157_vm1, %v1279_v58 }
 0x1c0   :  { %1159 = vst.msk [vmem:[%s2161_s5 + $0x4] sm:$0xf] %vm1157_vm1, %v1280_v59  ;;  %1160 = vst.msk [vmem:[%s2161_s5 + $0x8] sm:$0xf] %vm1157_vm1, %v1281_v60  ;;  %v1291_v22 = vpack.c.bf16 %v1089_v49, %v1089_v49  ;;  %v1292_v16 = vpack.c.bf16 %v1090_v55, %v1090_v55  ;;  %v1293_v39 = vpack.c.bf16 %v1091_v56, %v1091_v56 }
 0x1c1   :  { %1161 = vst.msk [vmem:[%s2161_s5 + $0xc] sm:$0xf] %vm1157_vm1, %v1282_v61  ;;  %v1294_v23 = vpack.c.bf16 %v1092_v57, %v1092_v57  ;;  %1162 = vst.msk [vmem:[%s2161_s5 + $0x10] sm:$0xf] %vm1157_vm1, %v1283_v6 }
 0x1c2   :  { %1163 = vst.msk [vmem:[%s2161_s5 + $0x14] sm:$0xf] %vm1157_vm1, %v1284_v7  ;;  %1164 = vst.msk [vmem:[%s2161_s5 + $0x18] sm:$0xf] %vm1157_vm1, %v1285_v10 }
 0x1c3   :  { %1165 = vst.msk [vmem:[%s2161_s5 + $0x1c] sm:$0xf] %vm1157_vm1, %v1286_v11  ;;  %1166 = vst.msk [vmem:[%s2161_s5 + $0x20] sm:$0xf] %vm1157_vm1, %v1287_v15 }
 0x1c4   :  { %1167 = vst.msk [vmem:[%s2161_s5 + $0x24] sm:$0xf] %vm1157_vm1, %v1288_v19  ;;  %1168 = vst.msk [vmem:[%s2161_s5 + $0x28] sm:$0xf] %vm1157_vm1, %v1289_v24 }
 0x1c5   :  { %1169 = vst.msk [vmem:[%s2161_s5 + $0x2c] sm:$0xf] %vm1157_vm1, %v1290_v21  ;;  %1170 = vst.msk [vmem:[%s2161_s5 + $0x30] sm:$0xf] %vm1157_vm1, %v1291_v22 }
 0x1c6   :  { %1171 = vst.msk [vmem:[%s2161_s5 + $0x34] sm:$0xf] %vm1157_vm1, %v1292_v16  ;;  %1172 = vst.msk [vmem:[%s2161_s5 + $0x38] sm:$0xf] %vm1157_vm1, %v1293_v39 }
 0x1c7   :  { %1173 = vst.msk [vmem:[%s2161_s5 + $0x3c] sm:$0xf] %vm1157_vm1, %v1294_v23 }

// kernel: base_model_forward.11
= control target key start
LH: loop header
LB: loop body
LE: loop exit
PB: predicated region body
PF: predicated region fallthrough
CT: control target
= control target key end

     0   :  { %v3853_v22 = vmov 1966171168   ;;  %v554_v24 = vlaneseq  ;;  %vm2963_vm0 = vcmask 517120   ;;  %vm2975_vm1 = vcmask 1024   ;;  %s4722_s1 = inlined_call_operand.vmem [shape: bf16[4096,64], index: 1, kind: input, shape index: {}]   ;;  %s4723_s0 = inlined_call_operand.vmem [shape: bf16[2,4096], index: 0, kind: input, shape index: {}]   ;;  %s4724_s2 = inlined_call_operand.vmem [shape: f32[1,64], index: 2, kind: input, shape index: {}]   ;;  %s4725_s4 = inlined_call_operand.<no memory space> [shape: f32[1,1], index: 4, kind: input, shape index: {}]   ;;  %s4726_s3 = inlined_call_operand.vmem [shape: f32[1,64], index: 3, kind: input, shape index: {}]   ;;  %s4727_s5 = inlined_call_operand.vmem [shape: f32[2,1], index: 5, kind: output, shape index: {}]  }
   0x1   :  { %v3593_v0 = vld [vmem:[%s4722_s1 + $0x40] sm:$0xff]   ;;  %v3597_v4 = vld [vmem:[%s4722_s1 + $0x48] sm:$0xff]   ;;  %v3601_v8 = vld [vmem:[%s4722_s1 + $0x50] sm:$0xff]   ;;  %v552_v23 = vunpack.c.l.s4 %v3853_v22 }
   0x2   :  { %v3594_v1 = vld [vmem:[%s4722_s1 + $0xc0] sm:$0xff]   ;;  %3240 = vmatprep.subr.bf16.mxu0 %v3593_v0  ;;  %v3598_v5 = vld [vmem:[%s4722_s1 + $0xc8] sm:$0xff]   ;;  %v3602_v9 = vld [vmem:[%s4722_s1 + $0xd0] sm:$0xff]   ;;  %v555_v30 = vshrl.u32 %v554_v24, 7 }
   0x3   :  { %v3595_v2 = vld [vmem:[%s4722_s1] sm:$0xff]   ;;  %3262 = vmatprep.subr.bf16.mxu1 %v3594_v1  ;;  %v3599_v6 = vld [vmem:[%s4722_s1 + $0x8] sm:$0xff]   ;;  %v3603_v10 = vld [vmem:[%s4722_s1 + $0x10] sm:$0xff]   ;;  %v553_v29 = vunpack.c.0.s8 %v552_v23 }
   0x4   :  { %v3596_v3 = vld [vmem:[%s4722_s1 + $0x80] sm:$0xff]   ;;  %3241 = vmatpush3.bf16.msra.mxu0 %v3595_v2  ;;  %v3600_v7 = vld [vmem:[%s4722_s1 + $0x88] sm:$0xff]   ;;  %v3604_v11 = vld [vmem:[%s4722_s1 + $0x90] sm:$0xff]  }
   0x5   :  { %3263 = vmatpush3.bf16.msra.mxu1 %v3596_v3  ;;  %3242 = vmatprep.subr.bf16.mxu0 %v3597_v4  ;;  %v3605_v12 = vld [vmem:[%s4722_s1 + $0x58] sm:$0xff]   ;;  %v3609_v16 = vld [vmem:[%s4722_s1 + $0x60] sm:$0xff]   ;;  %v3613_v20 = vld [vmem:[%s4722_s1 + $0x68] sm:$0xff]   ;;  %v3974_v35 = vsub.s32 %v553_v29, %v555_v30 }
   0x6   :  { %3264 = vmatprep.subr.bf16.mxu1 %v3598_v5  ;;  %v3606_v13 = vld [vmem:[%s4722_s1 + $0xd8] sm:$0xff]   ;;  %v3610_v17 = vld [vmem:[%s4722_s1 + $0xe0] sm:$0xff]   ;;  %v3614_v21 = vld [vmem:[%s4722_s1 + $0xe8] sm:$0xff]  }
   0x7   :  { %v3607_v14 = vld [vmem:[%s4722_s1 + $0x18] sm:$0xff]   ;;  %v3611_v18 = vld [vmem:[%s4722_s1 + $0x20] sm:$0xff]   ;;  %v3615_v25 = vld [vmem:[%s4722_s1 + $0x28] sm:$0xff]  }
   0x8   :  { %3243 = vmatpush3.bf16.msra.mxu0 %v3599_v6  ;;  %v3608_v15 = vld [vmem:[%s4722_s1 + $0x98] sm:$0xff]   ;;  %v3612_v19 = vld [vmem:[%s4722_s1 + $0xa0] sm:$0xff]   ;;  %v3616_v26 = vld [vmem:[%s4722_s1 + $0xa8] sm:$0xff]  }
   0x9   :  { %3265 = vmatpush3.bf16.msra.mxu1 %v3600_v7  ;;  %3244 = vmatprep.subr.bf16.mxu0 %v3601_v8  ;;  %v3617_v27 = vld [vmem:[%s4722_s1 + $0x70] sm:$0xff]   ;;  %v3621_v33 = vld [vmem:[%s4722_s1 + $0x78] sm:$0xff]   ;;  %v23_v38 = vld [vmem:[%s4723_s0] sm:$0xff] }
   0xa   :  { %3266 = vmatprep.subr.bf16.mxu1 %v3602_v9  ;;  %v3618_v28 = vld [vmem:[%s4722_s1 + $0xf0] sm:$0xff]   ;;  %v3622_v34 = vld [vmem:[%s4722_s1 + $0xf8] sm:$0xff]   ;;  %v550_v39 = vcombine.high %v23_v38, %v23_v38  ;;  %v557_v40 = vrot.slane %v23_v38, %v3974_v35  ;;  %v3626_v41 = vld [vmem:[%s4722_s1 + $0x140] sm:$0xff]  }
   0xb   :  { %v3619_v31 = vld [vmem:[%s4722_s1 + $0x30] sm:$0xff]   ;;  %v3623_v36 = vld [vmem:[%s4722_s1 + $0x38] sm:$0xff]   ;;  %v3627_v42 = vld [vmem:[%s4722_s1 + $0x1c0] sm:$0xff]  }
   0xc   :  { %3245 = vmatpush3.bf16.msra.mxu0 %v3603_v10  ;;  %v3620_v32 = vld [vmem:[%s4722_s1 + $0xb0] sm:$0xff]   ;;  %v3624_v37 = vld [vmem:[%s4722_s1 + $0xb8] sm:$0xff]   ;;  %v565_v43 = vcombine.high %v557_v40, %v557_v40  ;;  %v573_v44 = vrot.slane %v557_v40, %v3974_v35  ;;  %v3994_v45 = vrot.slane %v550_v39, %v3974_v35  ;;  %v3628_v46 = vld [vmem:[%s4722_s1 + $0x100] sm:$0xff]  }
   0xd   :  { %3267 = vmatpush3.bf16.msra.mxu1 %v3604_v11  ;;  %3246 = vmatprep.subr.bf16.mxu0 %v3605_v12  ;;  %v3629_v48 = vld [vmem:[%s4722_s1 + $0x180] sm:$0xff]   ;;  %v3630_v51 = vld [vmem:[%s4722_s1 + $0x148] sm:$0xff]   ;;  %v3634_v58 = vld [vmem:[%s4722_s1 + $0x150] sm:$0xff]  }
   0xe   :  { %3268 = vmatprep.subr.bf16.mxu1 %v3606_v13  ;;  %v587_v47 = vrot.slane %v565_v43, %v3974_v35  ;;  %v566_v49 = vcombine.high %v3994_v45, %v3994_v45  ;;  %v595_v50 = vcombine.high %v573_v44, %v573_v44  ;;  %v3631_v53 = vld [vmem:[%s4722_s1 + $0x1c8] sm:$0xff]   ;;  %v3635_v59 = vld [vmem:[%s4722_s1 + $0x1d0] sm:$0xff]   ;;  %v3638_v62 = vld [vmem:[%s4722_s1 + $0x158] sm:$0xff]  }
   0xf   :  { %v3632_v55 = vld [vmem:[%s4722_s1 + $0x108] sm:$0xff]   ;;  %v3636_v60 = vld [vmem:[%s4722_s1 + $0x110] sm:$0xff]   ;;  %v3639_v63 = vld [vmem:[%s4722_s1 + $0x1d8] sm:$0xff]  }
  0x10   :  { %3247 = vmatpush3.bf16.msra.mxu0 %v3607_v14  ;;  %2346 = vmatprep.mubr.bf16.mxu0 %v587_v47  ;;  %v597_v52 = vcombine.high %v587_v47, %v587_v47  ;;  %v594_v54 = vrot.slane %v566_v49, %v3974_v35  ;;  %v3633_v56 = vld [vmem:[%s4722_s1 + $0x188] sm:$0xff]   ;;  %v3637_v61 = vld [vmem:[%s4722_s1 + $0x190] sm:$0xff]   ;;  %v3640_v0 = vld [vmem:[%s4722_s1 + $0x118] sm:$0xff]  }
  0x11   :  { %3269 = vmatpush3.bf16.msra.mxu1 %v3608_v15  ;;  %3248 = vmatprep.subr.bf16.mxu0 %v3609_v16  ;;  %v3641_v1 = vld [vmem:[%s4722_s1 + $0x198] sm:$0xff]   ;;  %v3642_v2 = vld [vmem:[%s4722_s1 + $0x160] sm:$0xff]   ;;  %v3646_v6 = vld [vmem:[%s4722_s1 + $0x168] sm:$0xff]  }
  0x12   :  { %3270 = vmatprep.subr.bf16.mxu1 %v3610_v17  ;;  %2386 = vmatprep.mubr.bf16.mxu1 %v597_v52  ;;  %v598_v57 = vcombine.high %v594_v54, %v594_v54  ;;  %v3643_v3 = vld [vmem:[%s4722_s1 + $0x1e0] sm:$0xff]   ;;  %v3647_v7 = vld [vmem:[%s4722_s1 + $0x1e8] sm:$0xff]   ;;  %v3650_v10 = vld [vmem:[%s4722_s1 + $0x170] sm:$0xff]  }
  0x13   :  { %v3644_v4 = vld [vmem:[%s4722_s1 + $0x120] sm:$0xff]   ;;  %v3648_v8 = vld [vmem:[%s4722_s1 + $0x128] sm:$0xff]   ;;  %v3651_v11 = vld [vmem:[%s4722_s1 + $0x1f0] sm:$0xff]  }
  0x14   :  { %3249 = vmatpush3.bf16.msra.mxu0 %v3611_v18  ;;  %v3645_v5 = vld [vmem:[%s4722_s1 + $0x1a0] sm:$0xff]   ;;  %v3649_v9 = vld [vmem:[%s4722_s1 + $0x1a8] sm:$0xff]   ;;  %v3652_v12 = vld [vmem:[%s4722_s1 + $0x130] sm:$0xff]   ;;  %v580_v18 = vrot.slane %v3994_v45, %v3974_v35 }
  0x15   :  { %3271 = vmatpush3.bf16.msra.mxu1 %v3612_v19  ;;  %3250 = vmatprep.subr.bf16.mxu0 %v3613_v20  ;;  %v3653_v13 = vld [vmem:[%s4722_s1 + $0x1b0] sm:$0xff]   ;;  %v3654_v14 = vld [vmem:[%s4722_s1 + $0x178] sm:$0xff]   ;;  %v3658_v19 = vld [vmem:[%s4722_s1 + $0x240] sm:$0xff]  }
  0x16   :  { %3272 = vmatprep.subr.bf16.mxu1 %v3614_v21  ;;  %v3655_v15 = vld [vmem:[%s4722_s1 + $0x1f8] sm:$0xff]   ;;  %v3659_v20 = vld [vmem:[%s4722_s1 + $0x2c0] sm:$0xff]   ;;  %v596_v23 = vcombine.high %v580_v18, %v580_v18  ;;  %v3662_v24 = vld [vmem:[%s4722_s1 + $0x248] sm:$0xff]  }
  0x17   :  { %v3656_v16 = vld [vmem:[%s4722_s1 + $0x138] sm:$0xff]   ;;  %v3660_v21 = vld [vmem:[%s4722_s1 + $0x200] sm:$0xff]   ;;  %v3667_v29 = vld [vmem:[%s4722_s1 + $0x2d0] sm:$0xff]  }
  0x18   :  { %3251 = vmatpush3.bf16.msra.mxu0 %v3615_v25  ;;  %v3657_v17 = vld [vmem:[%s4722_s1 + $0x1b8] sm:$0xff]   ;;  %v3661_v22 = vld [vmem:[%s4722_s1 + $0x280] sm:$0xff]   ;;  %v3663_v25 = vld [vmem:[%s4722_s1 + $0x2c8] sm:$0xff]  }
  0x19   :  { %3273 = vmatpush3.bf16.msra.mxu1 %v3616_v26  ;;  %3252 = vmatprep.subr.bf16.mxu0 %v3617_v27  ;;  %v3664_v26 = vld [vmem:[%s4722_s1 + $0x208] sm:$0xff]   ;;  %v3668_v30 = vld [vmem:[%s4722_s1 + $0x210] sm:$0xff]   ;;  %v3675_v38 = vld [vmem:[%s4722_s1 + $0x2e0] sm:$0xff]  }
  0x1a   :  { %3274 = vmatprep.subr.bf16.mxu1 %v3618_v28  ;;  %v3665_v27 = vld [vmem:[%s4722_s1 + $0x288] sm:$0xff]   ;;  %v3666_v28 = vld [vmem:[%s4722_s1 + $0x250] sm:$0xff]   ;;  %v3676_v39 = vld [vmem:[%s4722_s1 + $0x220] sm:$0xff]  }
  0x1b   :  { %v3677_v40 = vld [vmem:[%s4722_s1 + $0x2a0] sm:$0xff]   ;;  %v3680_v43 = vld [vmem:[%s4722_s1 + $0x228] sm:$0xff]   ;;  %v3682_v45 = vld [vmem:[%s4722_s1 + $0x270] sm:$0xff]  }
  0x1c   :  { %3253 = vmatpush3.bf16.msra.mxu0 %v3619_v31  ;;  %v3669_v31 = vld [vmem:[%s4722_s1 + $0x290] sm:$0xff]   ;;  %v3686_v49 = vld [vmem:[%s4722_s1 + $0x278] sm:$0xff]   ;;  %v24_v52 = vld [vmem:[%s4723_s0 + $0x8] sm:$0xff] }
  0x1d   :  { %3275 = vmatpush3.bf16.msra.mxu1 %v3620_v32  ;;  %3254 = vmatprep.subr.bf16.mxu0 %v3621_v33  ;;  %v3670_v32 = vld [vmem:[%s4722_s1 + $0x258] sm:$0xff]   ;;  %v3684_v47 = vld [vmem:[%s4722_s1 + $0x230] sm:$0xff]  }
  0x1e   :  { %3276 = vmatprep.subr.bf16.mxu1 %v3622_v34  ;;  %v3671_v33 = vld [vmem:[%s4722_s1 + $0x2d8] sm:$0xff]  }
  0x1f   :  { %v3672_v34 = vld [vmem:[%s4722_s1 + $0x218] sm:$0xff]  }
  0x20   :  { %3255 = vmatpush3.bf16.msra.mxu0 %v3623_v36  ;;  %v3673_v36 = vld [vmem:[%s4722_s1 + $0x298] sm:$0xff]  }
  0x21   :  { %3277 = vmatpush3.bf16.msra.mxu1 %v3624_v37  ;;  %3284 = vmatprep.subr.bf16.mxu0 %v3626_v41  ;;  %v3674_v37 = vld [vmem:[%s4722_s1 + $0x260] sm:$0xff]   ;;  %v3678_v41 = vld [vmem:[%s4722_s1 + $0x268] sm:$0xff]  }
  0x22   :  { %3306 = vmatprep.subr.bf16.mxu1 %v3627_v42  ;;  %v3679_v42 = vld [vmem:[%s4722_s1 + $0x2e8] sm:$0xff]  }
  0x23   :  { %2347 = vmatmul.mubr.bf16.vlgmr.msra.gmra.mrb[0].mxu0 %v573_v44  ;;  %v3681_v44 = vld [vmem:[%s4722_s1 + $0x2a8] sm:$0xff]  }
  0x24   :  { %3285 = vmatpush3.bf16.msra.mxu0 %v3628_v46  ;;  %2387 = vmatmul.mubr.bf16.vlgmr.msra.gmra.mrb[0].mxu1 %v595_v50  ;;  %v3683_v46 = vld [vmem:[%s4722_s1 + $0x2f0] sm:$0xff]   ;;  %v3687_v50 = vld [vmem:[%s4722_s1 + $0x2f8] sm:$0xff]  }
  0x25   :  { %3286 = vmatprep.subr.bf16.mxu0 %v3630_v51  ;;  %3307 = vmatpush3.bf16.msra.mxu1 %v3629_v48  ;;  %v3685_v48 = vld [vmem:[%s4722_s1 + $0x2b0] sm:$0xff]   ;;  %v3688_v51 = vld [vmem:[%s4722_s1 + $0x238] sm:$0xff]  }
  0x26   :  { %2426 = vmatprep.mubr.bf16.mxu0 %v594_v54  ;;  %3308 = vmatprep.subr.bf16.mxu1 %v3631_v53  ;;  %v3689_v53 = vld [vmem:[%s4722_s1 + $0x2b8] sm:$0xff]   ;;  %v606_v54 = vrot.slane %v24_v52, %v3974_v35 }
  0x27   :  { %2466 = vmatprep.mubr.bf16.mxu1 %v598_v57 }
  0x28   :  { %3287 = vmatpush3.bf16.msra.mxu0 %v3632_v55  ;;  %v599_v55 = vcombine.high %v24_v52, %v24_v52  ;;  %v614_v57 = vcombine.high %v606_v54, %v606_v54  ;;  %v3739_v52 = vld [vmem:[%s4722_s1 + $0x460] sm:$0xff]  }
  0x29   :  { %3288 = vmatprep.subr.bf16.mxu0 %v3634_v58  ;;  %3309 = vmatpush3.bf16.msra.mxu1 %v3633_v56  ;;  %v3690_v56 = vld [vmem:[%s4722_s1 + $0x340] sm:$0xff]   ;;  %v622_v58 = vrot.slane %v606_v54, %v3974_v35 }
  0x2a   :  { %3310 = vmatprep.subr.bf16.mxu1 %v3635_v59  ;;  %v3691_v59 = vld [vmem:[%s4722_s1 + $0x3c0] sm:$0xff]  }
  0x2b   :  { %v3741_v54 = vld [vmem:[%s4722_s1 + $0x420] sm:$0xff]  }
  0x2c   :  { %3289 = vmatpush3.bf16.msra.mxu0 %v3636_v60  ;;  %v4200_v60 = vrot.slane %v599_v55, %v3974_v35  ;;  %v3742_v55 = vld [vmem:[%s4722_s1 + $0x4a0] sm:$0xff]  }
  0x2d   :  { %3290 = vmatprep.subr.bf16.mxu0 %v3638_v62  ;;  %3311 = vmatpush3.bf16.msra.mxu1 %v3637_v61  ;;  %v3692_v61 = vld [vmem:[%s4722_s1 + $0x300] sm:$0xff]   ;;  %v636_v62 = vrot.slane %v614_v57, %v3974_v35  ;;  %v3744_v57 = vld [vmem:[%s4722_s1 + $0x4e8] sm:$0xff]  }
  0x2e   :  { %3312 = vmatprep.subr.bf16.mxu1 %v3639_v63  ;;  %v3693_v63 = vld [vmem:[%s4722_s1 + $0x380] sm:$0xff]  }
  0x30   :  { %3291 = vmatpush3.bf16.msra.mxu0 %v3640_v0  ;;  %v615_v0 = vcombine.high %v4200_v60, %v4200_v60 }
  0x31   :  { %3292 = vmatprep.subr.bf16.mxu0 %v3642_v2  ;;  %3313 = vmatpush3.bf16.msra.mxu1 %v3641_v1  ;;  %v644_v1 = vcombine.high %v622_v58, %v622_v58  ;;  %v3694_v2 = vld [vmem:[%s4722_s1 + $0x348] sm:$0xff]  }
  0x32   :  { %3314 = vmatprep.subr.bf16.mxu1 %v3643_v3  ;;  %v646_v3 = vcombine.high %v636_v62, %v636_v62 }
  0x34   :  { %3293 = vmatpush3.bf16.msra.mxu0 %v3644_v4  ;;  %v3695_v4 = vld [vmem:[%s4722_s1 + $0x3c8] sm:$0xff]  }
  0x35   :  { %3294 = vmatprep.subr.bf16.mxu0 %v3646_v6  ;;  %3315 = vmatpush3.bf16.msra.mxu1 %v3645_v5  ;;  %v643_v5 = vrot.slane %v615_v0, %v3974_v35  ;;  %v3696_v6 = vld [vmem:[%s4722_s1 + $0x308] sm:$0xff]   ;;  %v3751_v0 = vld [vmem:[%s4722_s1 + $0x478] sm:$0xff]  }
  0x36   :  { %3316 = vmatprep.subr.bf16.mxu1 %v3647_v7  ;;  %v3697_v7 = vld [vmem:[%s4722_s1 + $0x388] sm:$0xff]  }
  0x38   :  { %3295 = vmatpush3.bf16.msra.mxu0 %v3648_v8  ;;  %v647_v8 = vcombine.high %v643_v5, %v643_v5 }
  0x39   :  { %3296 = vmatprep.subr.bf16.mxu0 %v3650_v10  ;;  %3317 = vmatpush3.bf16.msra.mxu1 %v3649_v9  ;;  %v3698_v9 = vld [vmem:[%s4722_s1 + $0x350] sm:$0xff]  }
  0x3a   :  { %3318 = vmatprep.subr.bf16.mxu1 %v3651_v11  ;;  %v3699_v10 = vld [vmem:[%s4722_s1 + $0x3d0] sm:$0xff]  }
  0x3b   :  { %v3700_v11 = vld [vmem:[%s4722_s1 + $0x310] sm:$0xff]  }
  0x3c   :  { %3297 = vmatpush3.bf16.msra.mxu0 %v3652_v12  ;;  %v3701_v12 = vld [vmem:[%s4722_s1 + $0x390] sm:$0xff]  }
  0x3d   :  { %3298 = vmatprep.subr.bf16.mxu0 %v3654_v14  ;;  %3319 = vmatpush3.bf16.msra.mxu1 %v3653_v13  ;;  %v3702_v13 = vld [vmem:[%s4722_s1 + $0x358] sm:$0xff]  }
  0x3e   :  { %3320 = vmatprep.subr.bf16.mxu1 %v3655_v15  ;;  %v3703_v14 = vld [vmem:[%s4722_s1 + $0x3d8] sm:$0xff]  }
  0x3f   :  { %v3704_v15 = vld [vmem:[%s4722_s1 + $0x318] sm:$0xff]  }
  0x40   :  { %3299 = vmatpush3.bf16.msra.mxu0 %v3656_v16  ;;  %v3705_v16 = vld [vmem:[%s4722_s1 + $0x398] sm:$0xff]  }
  0x41   :  { %3328 = vmatprep.subr.bf16.mxu0 %v3658_v19  ;;  %3321 = vmatpush3.bf16.msra.mxu1 %v3657_v17  ;;  %v3706_v17 = vld [vmem:[%s4722_s1 + $0x360] sm:$0xff]  }
  0x42   :  { %3350 = vmatprep.subr.bf16.mxu1 %v3659_v20  ;;  %v3708_v19 = vld [vmem:[%s4722_s1 + $0x320] sm:$0xff]  }
  0x43   :  { %2427 = vmatmul.mubr.bf16.vlgmr.msra.gmra.mrb[4].mxu0 %v580_v18  ;;  %v3707_v18 = vld [vmem:[%s4722_s1 + $0x3e0] sm:$0xff]  }
  0x44   :  { %3329 = vmatpush3.bf16.msra.mxu0 %v3660_v21  ;;  %2467 = vmatmul.mubr.bf16.vlgmr.msra.gmra.mrb[4].mxu1 %v596_v23  ;;  %v3709_v20 = vld [vmem:[%s4722_s1 + $0x3a0] sm:$0xff]   ;;  %v3710_v21 = vld [vmem:[%s4722_s1 + $0x368] sm:$0xff]  }
  0x45   :  { %3330 = vmatprep.subr.bf16.mxu0 %v3662_v24  ;;  %3351 = vmatpush3.bf16.msra.mxu1 %v3661_v22  ;;  %v3711_v22 = vld [vmem:[%s4722_s1 + $0x3e8] sm:$0xff]  }
  0x46   :  { %3352 = vmatprep.subr.bf16.mxu1 %v3663_v25  ;;  %2506 = vmatprep.mubr.bf16.mxu0 %v636_v62  ;;  %v3712_v23 = vld [vmem:[%s4722_s1 + $0x328] sm:$0xff]   ;;  %v3714_v25 = vld [vmem:[%s4722_s1 + $0x370] sm:$0xff]  }
  0x47   :  { %2546 = vmatprep.mubr.bf16.mxu1 %v646_v3  ;;  %v3713_v24 = vld [vmem:[%s4722_s1 + $0x3a8] sm:$0xff]   ;;  %v3749_v62 = vld [vmem:[%s4722_s1 + $0x430] sm:$0xff]  }
  0x48   :  { %3331 = vmatpush3.bf16.msra.mxu0 %v3664_v26  ;;  %v3715_v26 = vld [vmem:[%s4722_s1 + $0x3f0] sm:$0xff]  }
  0x49   :  { %3332 = vmatprep.subr.bf16.mxu0 %v3666_v28  ;;  %3353 = vmatpush3.bf16.msra.mxu1 %v3665_v27  ;;  %v3716_v27 = vld [vmem:[%s4722_s1 + $0x330] sm:$0xff]  }
  0x4a   :  { %3354 = vmatprep.subr.bf16.mxu1 %v3667_v29  ;;  %v3717_v28 = vld [vmem:[%s4722_s1 + $0x3b0] sm:$0xff]   ;;  %v3718_v29 = vld [vmem:[%s4722_s1 + $0x378] sm:$0xff]  }
  0x4b   :  { %v25_v3 = vld [vmem:[%s4723_s0 + $0x10] sm:$0xff] }
  0x4c   :  { %3333 = vmatpush3.bf16.msra.mxu0 %v3668_v30  ;;  %v3719_v30 = vld [vmem:[%s4722_s1 + $0x3f8] sm:$0xff]  }
  0x4d   :  { %3334 = vmatprep.subr.bf16.mxu0 %v3670_v32  ;;  %3355 = vmatpush3.bf16.msra.mxu1 %v3669_v31  ;;  %v3720_v31 = vld [vmem:[%s4722_s1 + $0x338] sm:$0xff]  }
  0x4e   :  { %3356 = vmatprep.subr.bf16.mxu1 %v3671_v33  ;;  %v3721_v32 = vld [vmem:[%s4722_s1 + $0x3b8] sm:$0xff]   ;;  %v629_v33 = vrot.slane %v4200_v60, %v3974_v35  ;;  %v3747_v60 = vld [vmem:[%s4722_s1 + $0x470] sm:$0xff]  }
  0x50   :  { %3335 = vmatpush3.bf16.msra.mxu0 %v3672_v34  ;;  %v3723_v34 = vld [vmem:[%s4722_s1 + $0x440] sm:$0xff]  }
  0x51   :  { %3336 = vmatprep.subr.bf16.mxu0 %v3674_v37  ;;  %3357 = vmatpush3.bf16.msra.mxu1 %v3673_v36  ;;  %v3724_v36 = vld [vmem:[%s4722_s1 + $0x4c0] sm:$0xff]  }
  0x52   :  { %3358 = vmatprep.subr.bf16.mxu1 %v3675_v38  ;;  %v3725_v37 = vld [vmem:[%s4722_s1 + $0x400] sm:$0xff]  }
  0x53   :  { %v3726_v38 = vld [vmem:[%s4722_s1 + $0x480] sm:$0xff]  }
  0x54   :  { %3337 = vmatpush3.bf16.msra.mxu0 %v3676_v39  ;;  %v645_v39 = vcombine.high %v629_v33, %v629_v33 }
  0x55   :  { %3338 = vmatprep.subr.bf16.mxu0 %v3678_v41  ;;  %3359 = vmatpush3.bf16.msra.mxu1 %v3677_v40  ;;  %v3727_v40 = vld [vmem:[%s4722_s1 + $0x448] sm:$0xff]  }
  0x56   :  { %3360 = vmatprep.subr.bf16.mxu1 %v3679_v42  ;;  %v3728_v41 = vld [vmem:[%s4722_s1 + $0x4c8] sm:$0xff]  }
  0x57   :  { %v3729_v42 = vld [vmem:[%s4722_s1 + $0x408] sm:$0xff]  }
  0x58   :  { %3339 = vmatpush3.bf16.msra.mxu0 %v3680_v43  ;;  %v3730_v43 = vld [vmem:[%s4722_s1 + $0x488] sm:$0xff]  }
  0x59   :  { %3340 = vmatprep.subr.bf16.mxu0 %v3682_v45  ;;  %3361 = vmatpush3.bf16.msra.mxu1 %v3681_v44  ;;  %v3731_v44 = vld [vmem:[%s4722_s1 + $0x450] sm:$0xff]  }
  0x5a   :  { %3362 = vmatprep.subr.bf16.mxu1 %v3683_v46  ;;  %v3732_v45 = vld [vmem:[%s4722_s1 + $0x4d0] sm:$0xff]  }
  0x5b   :  { %v3733_v46 = vld [vmem:[%s4722_s1 + $0x410] sm:$0xff]  }
  0x5c   :  { %3341 = vmatpush3.bf16.msra.mxu0 %v3684_v47  ;;  %v3734_v47 = vld [vmem:[%s4722_s1 + $0x490] sm:$0xff]  }
  0x5d   :  { %3342 = vmatprep.subr.bf16.mxu0 %v3686_v49  ;;  %3363 = vmatpush3.bf16.msra.mxu1 %v3685_v48  ;;  %v3735_v48 = vld [vmem:[%s4722_s1 + $0x458] sm:$0xff]  }
  0x5e   :  { %3364 = vmatprep.subr.bf16.mxu1 %v3687_v50  ;;  %v3736_v49 = vld [vmem:[%s4722_s1 + $0x4d8] sm:$0xff]  }
  0x5f   :  { %v3737_v50 = vld [vmem:[%s4722_s1 + $0x418] sm:$0xff]  }
  0x60   :  { %3343 = vmatpush3.bf16.msra.mxu0 %v3688_v51  ;;  %v3738_v51 = vld [vmem:[%s4722_s1 + $0x498] sm:$0xff]  }
  0x61   :  { %3372 = vmatprep.subr.bf16.mxu0 %v3690_v56  ;;  %3365 = vmatpush3.bf16.msra.mxu1 %v3689_v53  ;;  %v3740_v53 = vld [vmem:[%s4722_s1 + $0x4e0] sm:$0xff]   ;;  %v3743_v56 = vld [vmem:[%s4722_s1 + $0x468] sm:$0xff]  }
  0x62   :  { %3394 = vmatprep.subr.bf16.mxu1 %v3691_v59  ;;  %v3746_v59 = vld [vmem:[%s4722_s1 + $0x4a8] sm:$0xff]  }
  0x63   :  { %2507 = vmatmul.mubr.bf16.vlgmr.msra.gmra.mrb[8].mxu0 %v622_v58  ;;  %v3745_v58 = vld [vmem:[%s4722_s1 + $0x428] sm:$0xff]  }
  0x64   :  { %3373 = vmatpush3.bf16.msra.mxu0 %v3692_v61  ;;  %2547 = vmatmul.mubr.bf16.vlgmr.msra.gmra.mrb[8].mxu1 %v644_v1  ;;  %v3748_v61 = vld [vmem:[%s4722_s1 + $0x4f0] sm:$0xff]   ;;  %v3752_v1 = vld [vmem:[%s4722_s1 + $0x4f8] sm:$0xff]  }
  0x65   :  { %3374 = vmatprep.subr.bf16.mxu0 %v3694_v2  ;;  %3395 = vmatpush3.bf16.msra.mxu1 %v3693_v63  ;;  %v3750_v63 = vld [vmem:[%s4722_s1 + $0x4b0] sm:$0xff]   ;;  %v3753_v2 = vld [vmem:[%s4722_s1 + $0x438] sm:$0xff]  }
  0x66   :  { %2586 = vmatprep.mubr.bf16.mxu0 %v643_v5  ;;  %3396 = vmatprep.subr.bf16.mxu1 %v3695_v4  ;;  %v3754_v4 = vld [vmem:[%s4722_s1 + $0x4b8] sm:$0xff]   ;;  %v655_v5 = vrot.slane %v25_v3, %v3974_v35 }
  0x67   :  { %2626 = vmatprep.mubr.bf16.mxu1 %v647_v8 }
  0x68   :  { %3375 = vmatpush3.bf16.msra.mxu0 %v3696_v6  ;;  %v648_v6 = vcombine.high %v25_v3, %v25_v3  ;;  %v663_v8 = vcombine.high %v655_v5, %v655_v5  ;;  %v3804_v3 = vld [vmem:[%s4722_s1 + $0x660] sm:$0xff]  }
  0x69   :  { %3376 = vmatprep.subr.bf16.mxu0 %v3698_v9  ;;  %3397 = vmatpush3.bf16.msra.mxu1 %v3697_v7  ;;  %v3755_v7 = vld [vmem:[%s4722_s1 + $0x540] sm:$0xff]   ;;  %v671_v9 = vrot.slane %v655_v5, %v3974_v35 }
  0x6a   :  { %3398 = vmatprep.subr.bf16.mxu1 %v3699_v10  ;;  %v3756_v10 = vld [vmem:[%s4722_s1 + $0x5c0] sm:$0xff]  }
  0x6b   :  { %v3806_v5 = vld [vmem:[%s4722_s1 + $0x620] sm:$0xff]  }
  0x6c   :  { %3377 = vmatpush3.bf16.msra.mxu0 %v3700_v11  ;;  %v4406_v11 = vrot.slane %v648_v6, %v3974_v35  ;;  %v3807_v6 = vld [vmem:[%s4722_s1 + $0x6a0] sm:$0xff]  }
  0x6d   :  { %3378 = vmatprep.subr.bf16.mxu0 %v3702_v13  ;;  %3399 = vmatpush3.bf16.msra.mxu1 %v3701_v12  ;;  %v3757_v12 = vld [vmem:[%s4722_s1 + $0x500] sm:$0xff]   ;;  %v685_v13 = vrot.slane %v663_v8, %v3974_v35  ;;  %v3809_v8 = vld [vmem:[%s4722_s1 + $0x6e8] sm:$0xff]  }
  0x6e   :  { %3400 = vmatprep.subr.bf16.mxu1 %v3703_v14  ;;  %v3758_v14 = vld [vmem:[%s4722_s1 + $0x580] sm:$0xff]  }
  0x70   :  { %3379 = vmatpush3.bf16.msra.mxu0 %v3704_v15  ;;  %v664_v15 = vcombine.high %v4406_v11, %v4406_v11 }
  0x71   :  { %3380 = vmatprep.subr.bf16.mxu0 %v3706_v17  ;;  %3401 = vmatpush3.bf16.msra.mxu1 %v3705_v16  ;;  %v693_v16 = vcombine.high %v671_v9, %v671_v9  ;;  %v3759_v17 = vld [vmem:[%s4722_s1 + $0x548] sm:$0xff]  }
  0x72   :  { %3402 = vmatprep.subr.bf16.mxu1 %v3707_v18  ;;  %v695_v18 = vcombine.high %v685_v13, %v685_v13 }
  0x74   :  { %3381 = vmatpush3.bf16.msra.mxu0 %v3708_v19  ;;  %v3760_v19 = vld [vmem:[%s4722_s1 + $0x5c8] sm:$0xff]  }
  0x75   :  { %3382 = vmatprep.subr.bf16.mxu0 %v3710_v21  ;;  %3403 = vmatpush3.bf16.msra.mxu1 %v3709_v20  ;;  %v692_v20 = vrot.slane %v664_v15, %v3974_v35  ;;  %v3761_v21 = vld [vmem:[%s4722_s1 + $0x508] sm:$0xff]   ;;  %v3816_v15 = vld [vmem:[%s4722_s1 + $0x678] sm:$0xff]  }
  0x76   :  { %3404 = vmatprep.subr.bf16.mxu1 %v3711_v22  ;;  %v3762_v22 = vld [vmem:[%s4722_s1 + $0x588] sm:$0xff]  }
  0x78   :  { %3383 = vmatpush3.bf16.msra.mxu0 %v3712_v23  ;;  %v696_v23 = vcombine.high %v692_v20, %v692_v20 }
  0x79   :  { %3384 = vmatprep.subr.bf16.mxu0 %v3714_v25  ;;  %3405 = vmatpush3.bf16.msra.mxu1 %v3713_v24  ;;  %v3763_v24 = vld [vmem:[%s4722_s1 + $0x550] sm:$0xff]  }
  0x7a   :  { %3406 = vmatprep.subr.bf16.mxu1 %v3715_v26  ;;  %v3764_v25 = vld [vmem:[%s4722_s1 + $0x5d0] sm:$0xff]  }
  0x7b   :  { %v3765_v26 = vld [vmem:[%s4722_s1 + $0x510] sm:$0xff]  }
  0x7c   :  { %3385 = vmatpush3.bf16.msra.mxu0 %v3716_v27  ;;  %v3766_v27 = vld [vmem:[%s4722_s1 + $0x590] sm:$0xff]  }
  0x7d   :  { %3386 = vmatprep.subr.bf16.mxu0 %v3718_v29  ;;  %3407 = vmatpush3.bf16.msra.mxu1 %v3717_v28  ;;  %v3767_v28 = vld [vmem:[%s4722_s1 + $0x558] sm:$0xff]  }
  0x7e   :  { %3408 = vmatprep.subr.bf16.mxu1 %v3719_v30  ;;  %v3768_v29 = vld [vmem:[%s4722_s1 + $0x5d8] sm:$0xff]  }
  0x7f   :  { %v3769_v30 = vld [vmem:[%s4722_s1 + $0x518] sm:$0xff]  }
  0x80   :  { %3387 = vmatpush3.bf16.msra.mxu0 %v3720_v31  ;;  %v3770_v31 = vld [vmem:[%s4722_s1 + $0x598] sm:$0xff]  }
  0x81   :  { %3416 = vmatprep.subr.bf16.mxu0 %v3723_v34  ;;  %3409 = vmatpush3.bf16.msra.mxu1 %v3721_v32  ;;  %v3771_v32 = vld [vmem:[%s4722_s1 + $0x560] sm:$0xff]  }
  0x82   :  { %3438 = vmatprep.subr.bf16.mxu1 %v3724_v36  ;;  %v3773_v34 = vld [vmem:[%s4722_s1 + $0x520] sm:$0xff]  }
  0x83   :  { %2587 = vmatmul.mubr.bf16.vlgmr.msra.gmra.mrb[12].mxu0 %v629_v33  ;;  %v3772_v33 = vld [vmem:[%s4722_s1 + $0x5e0] sm:$0xff]  }
  0x84   :  { %3417 = vmatpush3.bf16.msra.mxu0 %v3725_v37  ;;  %2627 = vmatmul.mubr.bf16.vlgmr.msra.gmra.mrb[12].mxu1 %v645_v39  ;;  %v3774_v36 = vld [vmem:[%s4722_s1 + $0x5a0] sm:$0xff]   ;;  %v3775_v37 = vld [vmem:[%s4722_s1 + $0x568] sm:$0xff]  }
  0x85   :  { %3418 = vmatprep.subr.bf16.mxu0 %v3727_v40  ;;  %3439 = vmatpush3.bf16.msra.mxu1 %v3726_v38  ;;  %v3776_v38 = vld [vmem:[%s4722_s1 + $0x5e8] sm:$0xff]  }
  0x86   :  { %3440 = vmatprep.subr.bf16.mxu1 %v3728_v41  ;;  %2666 = vmatprep.mubr.bf16.mxu0 %v685_v13  ;;  %v3777_v39 = vld [vmem:[%s4722_s1 + $0x528] sm:$0xff]   ;;  %v3779_v41 = vld [vmem:[%s4722_s1 + $0x570] sm:$0xff]  }
  0x87   :  { %2706 = vmatprep.mubr.bf16.mxu1 %v695_v18  ;;  %v3778_v40 = vld [vmem:[%s4722_s1 + $0x5a8] sm:$0xff]   ;;  %v3814_v13 = vld [vmem:[%s4722_s1 + $0x630] sm:$0xff]   ;;  %v26_v18 = vld [vmem:[%s4723_s0 + $0x18] sm:$0xff] }
  0x88   :  { %3419 = vmatpush3.bf16.msra.mxu0 %v3729_v42  ;;  %v3780_v42 = vld [vmem:[%s4722_s1 + $0x5f0] sm:$0xff]  }
  0x89   :  { %3420 = vmatprep.subr.bf16.mxu0 %v3731_v44  ;;  %3441 = vmatpush3.bf16.msra.mxu1 %v3730_v43  ;;  %v3781_v43 = vld [vmem:[%s4722_s1 + $0x530] sm:$0xff]  }
  0x8a   :  { %3442 = vmatprep.subr.bf16.mxu1 %v3732_v45  ;;  %v3782_v44 = vld [vmem:[%s4722_s1 + $0x5b0] sm:$0xff]   ;;  %v3783_v45 = vld [vmem:[%s4722_s1 + $0x578] sm:$0xff]  }
  0x8c   :  { %3421 = vmatpush3.bf16.msra.mxu0 %v3733_v46  ;;  %v3784_v46 = vld [vmem:[%s4722_s1 + $0x5f8] sm:$0xff]  }
  0x8d   :  { %3422 = vmatprep.subr.bf16.mxu0 %v3735_v48  ;;  %3443 = vmatpush3.bf16.msra.mxu1 %v3734_v47  ;;  %v3785_v47 = vld [vmem:[%s4722_s1 + $0x538] sm:$0xff]  }
  0x8e   :  { %3444 = vmatprep.subr.bf16.mxu1 %v3736_v49  ;;  %v3786_v48 = vld [vmem:[%s4722_s1 + $0x5b8] sm:$0xff]   ;;  %v678_v49 = vrot.slane %v4406_v11, %v3974_v35  ;;  %v3812_v11 = vld [vmem:[%s4722_s1 + $0x670] sm:$0xff]  }
  0x90   :  { %3423 = vmatpush3.bf16.msra.mxu0 %v3737_v50  ;;  %v3788_v50 = vld [vmem:[%s4722_s1 + $0x640] sm:$0xff]  }
  0x91   :  { %3424 = vmatprep.subr.bf16.mxu0 %v3739_v52  ;;  %3445 = vmatpush3.bf16.msra.mxu1 %v3738_v51  ;;  %v3789_v51 = vld [vmem:[%s4722_s1 + $0x6c0] sm:$0xff]  }
  0x92   :  { %3446 = vmatprep.subr.bf16.mxu1 %v3740_v53  ;;  %v3790_v52 = vld [vmem:[%s4722_s1 + $0x600] sm:$0xff]  }
  0x93   :  { %v3791_v53 = vld [vmem:[%s4722_s1 + $0x680] sm:$0xff]  }
  0x94   :  { %3425 = vmatpush3.bf16.msra.mxu0 %v3741_v54  ;;  %v694_v54 = vcombine.high %v678_v49, %v678_v49 }
  0x95   :  { %3426 = vmatprep.subr.bf16.mxu0 %v3743_v56  ;;  %3447 = vmatpush3.bf16.msra.mxu1 %v3742_v55  ;;  %v3792_v55 = vld [vmem:[%s4722_s1 + $0x648] sm:$0xff]  }
  0x96   :  { %3448 = vmatprep.subr.bf16.mxu1 %v3744_v57  ;;  %v3793_v56 = vld [vmem:[%s4722_s1 + $0x6c8] sm:$0xff]  }
  0x97   :  { %v3794_v57 = vld [vmem:[%s4722_s1 + $0x608] sm:$0xff]  }
  0x98   :  { %3427 = vmatpush3.bf16.msra.mxu0 %v3745_v58  ;;  %v3795_v58 = vld [vmem:[%s4722_s1 + $0x688] sm:$0xff]  }
  0x99   :  { %3428 = vmatprep.subr.bf16.mxu0 %v3747_v60  ;;  %3449 = vmatpush3.bf16.msra.mxu1 %v3746_v59  ;;  %v3796_v59 = vld [vmem:[%s4722_s1 + $0x650] sm:$0xff]  }
  0x9a   :  { %3450 = vmatprep.subr.bf16.mxu1 %v3748_v61  ;;  %v3797_v60 = vld [vmem:[%s4722_s1 + $0x6d0] sm:$0xff]  }
  0x9b   :  { %v3798_v61 = vld [vmem:[%s4722_s1 + $0x610] sm:$0xff]  }
  0x9c   :  { %3429 = vmatpush3.bf16.msra.mxu0 %v3749_v62  ;;  %v3799_v62 = vld [vmem:[%s4722_s1 + $0x690] sm:$0xff]  }
  0x9d   :  { %3430 = vmatprep.subr.bf16.mxu0 %v3751_v0  ;;  %3451 = vmatpush3.bf16.msra.mxu1 %v3750_v63  ;;  %v3800_v63 = vld [vmem:[%s4722_s1 + $0x658] sm:$0xff]  }
  0x9e   :  { %3452 = vmatprep.subr.bf16.mxu1 %v3752_v1  ;;  %v3801_v0 = vld [vmem:[%s4722_s1 + $0x6d8] sm:$0xff]  }
  0x9f   :  { %v3802_v1 = vld [vmem:[%s4722_s1 + $0x618] sm:$0xff]  }
  0xa0   :  { %3431 = vmatpush3.bf16.msra.mxu0 %v3753_v2  ;;  %v3803_v2 = vld [vmem:[%s4722_s1 + $0x698] sm:$0xff]  }
  0xa1   :  { %3460 = vmatprep.subr.bf16.mxu0 %v3755_v7  ;;  %3453 = vmatpush3.bf16.msra.mxu1 %v3754_v4  ;;  %v3805_v4 = vld [vmem:[%s4722_s1 + $0x6e0] sm:$0xff]   ;;  %v3808_v7 = vld [vmem:[%s4722_s1 + $0x668] sm:$0xff]  }
  0xa2   :  { %3482 = vmatprep.subr.bf16.mxu1 %v3756_v10  ;;  %v3811_v10 = vld [vmem:[%s4722_s1 + $0x6a8] sm:$0xff]  }
  0xa3   :  { %2667 = vmatmul.mubr.bf16.vlgmr.msra.gmra.mrb[16].mxu0 %v671_v9  ;;  %v3810_v9 = vld [vmem:[%s4722_s1 + $0x628] sm:$0xff]  }
  0xa4   :  { %3461 = vmatpush3.bf16.msra.mxu0 %v3757_v12  ;;  %2707 = vmatmul.mubr.bf16.vlgmr.msra.gmra.mrb[16].mxu1 %v693_v16  ;;  %v3813_v12 = vld [vmem:[%s4722_s1 + $0x6f0] sm:$0xff]   ;;  %v3817_v16 = vld [vmem:[%s4722_s1 + $0x6f8] sm:$0xff]  }
  0xa5   :  { %3462 = vmatprep.subr.bf16.mxu0 %v3759_v17  ;;  %3483 = vmatpush3.bf16.msra.mxu1 %v3758_v14  ;;  %v3815_v14 = vld [vmem:[%s4722_s1 + $0x6b0] sm:$0xff]   ;;  %v3818_v17 = vld [vmem:[%s4722_s1 + $0x638] sm:$0xff]  }
  0xa6   :  { %2746 = vmatprep.mubr.bf16.mxu0 %v692_v20  ;;  %3484 = vmatprep.subr.bf16.mxu1 %v3760_v19  ;;  %v704_v19 = vrot.slane %v26_v18, %v3974_v35  ;;  %v3820_v20 = vld [vmem:[%s4722_s1 + $0x740] sm:$0xff]  }
  0xa7   :  { %2786 = vmatprep.mubr.bf16.mxu1 %v696_v23 }
  0xa8   :  { %3463 = vmatpush3.bf16.msra.mxu0 %v3761_v21  ;;  %v697_v21 = vcombine.high %v26_v18, %v26_v18  ;;  %v712_v23 = vcombine.high %v704_v19, %v704_v19 }
  0xa9   :  { %3464 = vmatprep.subr.bf16.mxu0 %v3763_v24  ;;  %3485 = vmatpush3.bf16.msra.mxu1 %v3762_v22  ;;  %v3819_v22 = vld [vmem:[%s4722_s1 + $0x6b8] sm:$0xff]   ;;  %v720_v24 = vrot.slane %v704_v19, %v3974_v35 }
  0xaa   :  { %3486 = vmatprep.subr.bf16.mxu1 %v3764_v25  ;;  %v3821_v25 = vld [vmem:[%s4722_s1 + $0x7c0] sm:$0xff]  }
  0xac   :  { %3465 = vmatpush3.bf16.msra.mxu0 %v3765_v26  ;;  %v4612_v26 = vrot.slane %v697_v21, %v3974_v35 }
  0xad   :  { %3466 = vmatprep.subr.bf16.mxu0 %v3767_v28  ;;  %3487 = vmatpush3.bf16.msra.mxu1 %v3766_v27  ;;  %v734_v27 = vrot.slane %v712_v23, %v3974_v35  ;;  %v3822_v28 = vld [vmem:[%s4722_s1 + $0x700] sm:$0xff]  }
  0xae   :  { %3488 = vmatprep.subr.bf16.mxu1 %v3768_v29  ;;  %v713_v29 = vcombine.high %v4612_v26, %v4612_v26 }
  0xb0   :  { %3467 = vmatpush3.bf16.msra.mxu0 %v3769_v30  ;;  %v742_v30 = vcombine.high %v720_v24, %v720_v24 }
  0xb1   :  { %3468 = vmatprep.subr.bf16.mxu0 %v3771_v32  ;;  %3489 = vmatpush3.bf16.msra.mxu1 %v3770_v31  ;;  %v3824_v31 = vld [vmem:[%s4722_s1 + $0x748] sm:$0xff]   ;;  %v744_v32 = vcombine.high %v734_v27, %v734_v27 }
  0xb2   :  { %3490 = vmatprep.subr.bf16.mxu1 %v3772_v33  ;;  %v3823_v33 = vld [vmem:[%s4722_s1 + $0x780] sm:$0xff]  }
  0xb4   :  { %3469 = vmatpush3.bf16.msra.mxu0 %v3773_v34  ;;  %v741_v34 = vrot.slane %v713_v29, %v3974_v35 }
  0xb5   :  { %3470 = vmatprep.subr.bf16.mxu0 %v3775_v37  ;;  %3491 = vmatpush3.bf16.msra.mxu1 %v3774_v36  ;;  %v3825_v36 = vld [vmem:[%s4722_s1 + $0x7c8] sm:$0xff]  }
  0xb6   :  { %3492 = vmatprep.subr.bf16.mxu1 %v3776_v38  ;;  %v3826_v37 = vld [vmem:[%s4722_s1 + $0x708] sm:$0xff]   ;;  %v745_v38 = vcombine.high %v741_v34, %v741_v34 }
  0xb8   :  { %3471 = vmatpush3.bf16.msra.mxu0 %v3777_v39  ;;  %v3828_v39 = vld [vmem:[%s4722_s1 + $0x750] sm:$0xff]  }
  0xb9   :  { %3472 = vmatprep.subr.bf16.mxu0 %v3779_v41  ;;  %3493 = vmatpush3.bf16.msra.mxu1 %v3778_v40  ;;  %v3827_v40 = vld [vmem:[%s4722_s1 + $0x788] sm:$0xff]   ;;  %v3829_v41 = vld [vmem:[%s4722_s1 + $0x7d0] sm:$0xff]  }
  0xba   :  { %3494 = vmatprep.subr.bf16.mxu1 %v3780_v42  ;;  %v3830_v42 = vld [vmem:[%s4722_s1 + $0x710] sm:$0xff]  }
  0xbc   :  { %3473 = vmatpush3.bf16.msra.mxu0 %v3781_v43  ;;  %v3832_v43 = vld [vmem:[%s4722_s1 + $0x758] sm:$0xff]  }
  0xbd   :  { %3474 = vmatprep.subr.bf16.mxu0 %v3783_v45  ;;  %3495 = vmatpush3.bf16.msra.mxu1 %v3782_v44  ;;  %v3831_v44 = vld [vmem:[%s4722_s1 + $0x790] sm:$0xff]   ;;  %v3833_v45 = vld [vmem:[%s4722_s1 + $0x7d8] sm:$0xff]  }
  0xbe   :  { %3496 = vmatprep.subr.bf16.mxu1 %v3784_v46  ;;  %v3834_v46 = vld [vmem:[%s4722_s1 + $0x718] sm:$0xff]  }
  0xc0   :  { %3475 = vmatpush3.bf16.msra.mxu0 %v3785_v47  ;;  %v3836_v47 = vld [vmem:[%s4722_s1 + $0x760] sm:$0xff]  }
  0xc1   :  { %3504 = vmatprep.subr.bf16.mxu0 %v3788_v50  ;;  %3497 = vmatpush3.bf16.msra.mxu1 %v3786_v48  ;;  %v3835_v48 = vld [vmem:[%s4722_s1 + $0x798] sm:$0xff]   ;;  %v3838_v50 = vld [vmem:[%s4722_s1 + $0x720] sm:$0xff]  }
  0xc2   :  { %3526 = vmatprep.subr.bf16.mxu1 %v3789_v51  ;;  %v3840_v51 = vld [vmem:[%s4722_s1 + $0x768] sm:$0xff]  }
  0xc3   :  { %2747 = vmatmul.mubr.bf16.vlgmr.msra.gmra.mrb[20].mxu0 %v678_v49  ;;  %v3837_v49 = vld [vmem:[%s4722_s1 + $0x7e0] sm:$0xff]  }
  0xc4   :  { %3505 = vmatpush3.bf16.msra.mxu0 %v3790_v52  ;;  %2787 = vmatmul.mubr.bf16.vlgmr.msra.gmra.mrb[20].mxu1 %v694_v54  ;;  %v3839_v52 = vld [vmem:[%s4722_s1 + $0x7a0] sm:$0xff]  }
  0xc5   :  { %3506 = vmatprep.subr.bf16.mxu0 %v3792_v55  ;;  %3527 = vmatpush3.bf16.msra.mxu1 %v3791_v53  ;;  %v3841_v53 = vld [vmem:[%s4722_s1 + $0x7e8] sm:$0xff]   ;;  %v2981_v54 = vld [vmem:[%s4724_s2] ss:$0 sm:$0xff] }
  0xc6   :  { %3528 = vmatprep.subr.bf16.mxu1 %v3793_v56  ;;  %2826 = vmatprep.mubr.bf16.mxu0 %v734_v27  ;;  %v3842_v55 = vld [vmem:[%s4722_s1 + $0x728] sm:$0xff]  }
  0xc7   :  { %2866 = vmatprep.mubr.bf16.mxu1 %v744_v32 }
  0xc8   :  { %3507 = vmatpush3.bf16.msra.mxu0 %v3794_v57  ;;  %v3844_v57 = vld [vmem:[%s4722_s1 + $0x770] sm:$0xff]  }
  0xc9   :  { %3508 = vmatprep.subr.bf16.mxu0 %v3796_v59  ;;  %3529 = vmatpush3.bf16.msra.mxu1 %v3795_v58  ;;  %v3843_v59 = vld [vmem:[%s4722_s1 + $0x7a8] sm:$0xff]  }
  0xca   :  { %3530 = vmatprep.subr.bf16.mxu1 %v3797_v60 }
  0xcc   :  { %3509 = vmatpush3.bf16.msra.mxu0 %v3798_v61 }
  0xcd   :  { %3510 = vmatprep.subr.bf16.mxu0 %v3800_v63  ;;  %3531 = vmatpush3.bf16.msra.mxu1 %v3799_v62  ;;  %v3845_v63 = vld [vmem:[%s4722_s1 + $0x7f0] sm:$0xff]  }
  0xce   :  { %3532 = vmatprep.subr.bf16.mxu1 %v3801_v0  ;;  %v3846_v0 = vld [vmem:[%s4722_s1 + $0x730] sm:$0xff]  }
  0xd0   :  { %3511 = vmatpush3.bf16.msra.mxu0 %v3802_v1 }
  0xd1   :  { %3512 = vmatprep.subr.bf16.mxu0 %v3804_v3  ;;  %3533 = vmatpush3.bf16.msra.mxu1 %v3803_v2 }
  0xd2   :  { %3534 = vmatprep.subr.bf16.mxu1 %v3805_v4 }
  0xd4   :  { %3513 = vmatpush3.bf16.msra.mxu0 %v3806_v5 }
  0xd5   :  { %3514 = vmatprep.subr.bf16.mxu0 %v3808_v7  ;;  %3535 = vmatpush3.bf16.msra.mxu1 %v3807_v6  ;;  %v3848_v6 = vld [vmem:[%s4722_s1 + $0x778] sm:$0xff]  }
  0xd6   :  { %3536 = vmatprep.subr.bf16.mxu1 %v3809_v8  ;;  %v3847_v8 = vld [vmem:[%s4722_s1 + $0x7b0] sm:$0xff]  }
  0xd8   :  { %3515 = vmatpush3.bf16.msra.mxu0 %v3810_v9 }
  0xd9   :  { %3516 = vmatprep.subr.bf16.mxu0 %v3812_v11  ;;  %3537 = vmatpush3.bf16.msra.mxu1 %v3811_v10  ;;  %v3849_v10 = vld [vmem:[%s4722_s1 + $0x7f8] sm:$0xff]  }
  0xda   :  { %3538 = vmatprep.subr.bf16.mxu1 %v3813_v12  ;;  %v3850_v11 = vld [vmem:[%s4722_s1 + $0x738] sm:$0xff]   ;;  %v727_v12 = vrot.slane %v4612_v26, %v3974_v35 }
  0xdc   :  { %3517 = vmatpush3.bf16.msra.mxu0 %v3814_v13  ;;  %v3851_v13 = vld [vmem:[%s4722_s1 + $0x7b8] sm:$0xff]  }
  0xdd   :  { %3518 = vmatprep.subr.bf16.mxu0 %v3816_v15  ;;  %3539 = vmatpush3.bf16.msra.mxu1 %v3815_v14  ;;  %v743_v14 = vcombine.high %v727_v12, %v727_v12 }
  0xde   :  { %3540 = vmatprep.subr.bf16.mxu1 %v3817_v16 }
  0xe0   :  { %3519 = vmatpush3.bf16.msra.mxu0 %v3818_v17 }
  0xe1   :  { %3548 = vmatprep.subr.bf16.mxu0 %v3820_v20  ;;  %3541 = vmatpush3.bf16.msra.mxu1 %v3819_v22 }
  0xe2   :  { %3570 = vmatprep.subr.bf16.mxu1 %v3821_v25 }
  0xe3   :  { %2827 = vmatmul.mubr.bf16.vlgmr.msra.gmra.mrb[24].mxu0 %v720_v24 }
  0xe4   :  { %3549 = vmatpush3.bf16.msra.mxu0 %v3822_v28  ;;  %2867 = vmatmul.mubr.bf16.vlgmr.msra.gmra.mrb[24].mxu1 %v742_v30 }
  0xe5   :  { %3550 = vmatprep.subr.bf16.mxu0 %v3824_v31  ;;  %3571 = vmatpush3.bf16.msra.mxu1 %v3823_v33 }
  0xe6   :  { %2906 = vmatprep.mubr.bf16.mxu0 %v741_v34  ;;  %3572 = vmatprep.subr.bf16.mxu1 %v3825_v36 }
  0xe7   :  { %2946 = vmatprep.mubr.bf16.mxu1 %v745_v38 }
  0xe8   :  { %3551 = vmatpush3.bf16.msra.mxu0 %v3826_v37 }
  0xe9   :  { %3552 = vmatprep.subr.bf16.mxu0 %v3828_v39  ;;  %3573 = vmatpush3.bf16.msra.mxu1 %v3827_v40 }
  0xea   :  { %3574 = vmatprep.subr.bf16.mxu1 %v3829_v41 }
  0xec   :  { %3553 = vmatpush3.bf16.msra.mxu0 %v3830_v42 }
  0xed   :  { %3554 = vmatprep.subr.bf16.mxu0 %v3832_v43  ;;  %3575 = vmatpush3.bf16.msra.mxu1 %v3831_v44 }
  0xee   :  { %3576 = vmatprep.subr.bf16.mxu1 %v3833_v45 }
  0xf0   :  { %3555 = vmatpush3.bf16.msra.mxu0 %v3834_v46 }
  0xf1   :  { %3556 = vmatprep.subr.bf16.mxu0 %v3836_v47  ;;  %3577 = vmatpush3.bf16.msra.mxu1 %v3835_v48 }
  0xf2   :  { %3578 = vmatprep.subr.bf16.mxu1 %v3837_v49 }
  0xf4   :  { %3557 = vmatpush3.bf16.msra.mxu0 %v3838_v50 }
  0xf5   :  { %3558 = vmatprep.subr.bf16.mxu0 %v3840_v51  ;;  %3579 = vmatpush3.bf16.msra.mxu1 %v3839_v52  ;;  %v10_v51 = vstv %s4725_s4 }
  0xf6   :  { %v3256_v56 = vpop.f32.mrb[0].mxu0  ;;  %3580 = vmatprep.subr.bf16.mxu1 %v3841_v53  ;;  %11 = vst [vmem:[#allocation2] sm:$0x1] %v10_v51 }
  0xf7   :  { %v3257_v58 = vpop.f32.mrb[1].mxu0  ;;  %v3278_v60 = vpop.f32.mrb[0].mxu1 }
  0xf8   :  { %v3258_v61 = vadd.f32 %v3257_v58, %v3256_v56  ;;  %v3259_v62 = vpop.f32.mrb[2].mxu0  ;;  %v3279_v1 = vpop.f32.mrb[1].mxu1  ;;  %3559 = vmatpush3.bf16.msra.mxu0 %v3842_v55 }
  0xf9   :  { %v3260_v2 = vpop.f32.mrb[3].mxu0  ;;  %v3280_v4 = vadd.f32 %v3279_v1, %v3278_v60  ;;  %v3281_v5 = vpop.f32.mrb[2].mxu1  ;;  %3560 = vmatprep.subr.bf16.mxu0 %v3844_v57  ;;  %3581 = vmatpush3.bf16.msra.mxu1 %v3843_v59 }
  0xfa   :  { %v2349_v3 = vadd.f32 %v3258_v61, %v2981_v54  ;;  %v3282_v7 = vpop.f32.mrb[3].mxu1  ;;  %3582 = vmatprep.subr.bf16.mxu1 %v3845_v63 }
  0xfc   :  { %v2389_v9 = vadd.f32 %v3280_v4, %v2349_v3  ;;  %3561 = vmatpush3.bf16.msra.mxu0 %v3846_v0 }
  0xfd   :  { %3562 = vmatprep.subr.bf16.mxu0 %v3848_v6  ;;  %3583 = vmatpush3.bf16.msra.mxu1 %v3847_v8 }
  0xfe   :  { %3584 = vmatprep.subr.bf16.mxu1 %v3849_v10 }
 0x100   :  { %3563 = vmatpush3.bf16.msra.mxu0 %v3850_v11 }
 0x101   :  { %3585 = vmatpush3.bf16.msra.mxu1 %v3851_v13 }
 0x103   :  { %2907 = vmatmul.mubr.bf16.vlgmr.msra.gmra.mrb[28].mxu0 %v727_v12 }
 0x104   :  { %2947 = vmatmul.mubr.bf16.vlgmr.msra.gmra.mrb[28].mxu1 %v743_v14 }
 0x116   :  { %v3300_v15 = vpop.f32.mrb[4].mxu0 }
 0x117   :  { %v3301_v16 = vpop.f32.mrb[5].mxu0  ;;  %v3322_v17 = vpop.f32.mrb[4].mxu1 }
 0x118   :  { %v3302_v18 = vadd.f32 %v3301_v16, %v3300_v15  ;;  %v3303_v19 = vpop.f32.mrb[6].mxu0  ;;  %v3323_v20 = vpop.f32.mrb[5].mxu1 }
 0x119   :  { %v3304_v21 = vpop.f32.mrb[7].mxu0  ;;  %v3324_v35 = vadd.f32 %v3323_v20, %v3322_v17  ;;  %v3325_v23 = vpop.f32.mrb[6].mxu1 }
 0x11a   :  { %v2429_v22 = vadd.f32 %v3302_v18, %v2389_v9  ;;  %v3326_v24 = vpop.f32.mrb[7].mxu1 }
 0x11c   :  { %v2469_v25 = vadd.f32 %v3324_v35, %v2429_v22 }
 0x136   :  { %v3344_v26 = vpop.f32.mrb[8].mxu0 }
 0x137   :  { %v3345_v27 = vpop.f32.mrb[9].mxu0  ;;  %v3366_v28 = vpop.f32.mrb[8].mxu1 }
 0x138   :  { %v3346_v29 = vadd.f32 %v3345_v27, %v3344_v26  ;;  %v3347_v30 = vpop.f32.mrb[10].mxu0  ;;  %v3367_v31 = vpop.f32.mrb[9].mxu1 }
 0x139   :  { %v3348_v32 = vpop.f32.mrb[11].mxu0  ;;  %v3368_v34 = vadd.f32 %v3367_v31, %v3366_v28  ;;  %v3369_v36 = vpop.f32.mrb[10].mxu1 }
 0x13a   :  { %v2509_v33 = vadd.f32 %v3346_v29, %v2469_v25  ;;  %v3370_v37 = vpop.f32.mrb[11].mxu1  ;;  %v3238_v36 = vld [vmem:[%s4726_s3] ss:$0 sm:$0xff] }
 0x13c   :  { %v2549_v38 = vadd.f32 %v3368_v34, %v2509_v33 }
 0x156   :  { %v3388_v39 = vpop.f32.mrb[12].mxu0 }
 0x157   :  { %v3389_v40 = vpop.f32.mrb[13].mxu0  ;;  %v3410_v41 = vpop.f32.mrb[12].mxu1 }
 0x158   :  { %v3390_v42 = vadd.f32 %v3389_v40, %v3388_v39  ;;  %v3391_v43 = vpop.f32.mrb[14].mxu0  ;;  %v3411_v44 = vpop.f32.mrb[13].mxu1  ;;  %v3239_v40 = vld [vmem:[#allocation2] ss:$0 sm:$0xff] }
 0x159   :  { %v3392_v45 = vpop.f32.mrb[15].mxu0  ;;  %v3412_v47 = vadd.f32 %v3411_v44, %v3410_v41  ;;  %v3413_v48 = vpop.f32.mrb[14].mxu1 }
 0x15a   :  { %v2589_v46 = vadd.f32 %v3390_v42, %v2549_v38  ;;  %v3414_v49 = vpop.f32.mrb[15].mxu1 }
 0x15c   :  { %v2629_v50 = vadd.f32 %v3412_v47, %v2589_v46 }
 0x176   :  { %v3432_v52 = vpop.f32.mrb[16].mxu0 }
 0x177   :  { %v3433_v53 = vpop.f32.mrb[17].mxu0  ;;  %v3454_v54 = vpop.f32.mrb[16].mxu1 }
 0x178   :  { %v3434_v55 = vadd.f32 %v3433_v53, %v3432_v52  ;;  %v3435_v56 = vpop.f32.mrb[18].mxu0  ;;  %v3455_v57 = vpop.f32.mrb[17].mxu1 }
 0x179   :  { %v3436_v58 = vpop.f32.mrb[19].mxu0  ;;  %v3456_v60 = vadd.f32 %v3455_v57, %v3454_v54  ;;  %v3457_v61 = vpop.f32.mrb[18].mxu1 }
 0x17a   :  { %v2669_v59 = vadd.f32 %v3434_v55, %v2629_v50  ;;  %v3458_v62 = vpop.f32.mrb[19].mxu1 }
 0x17c   :  { %v2709_v63 = vadd.f32 %v3456_v60, %v2669_v59 }
 0x196   :  { %v3476_v0 = vpop.f32.mrb[20].mxu0 }
 0x197   :  { %v3477_v1 = vpop.f32.mrb[21].mxu0  ;;  %v3498_v2 = vpop.f32.mrb[20].mxu1 }
 0x198   :  { %v3478_v3 = vadd.f32 %v3477_v1, %v3476_v0  ;;  %v3479_v4 = vpop.f32.mrb[22].mxu0  ;;  %v3499_v5 = vpop.f32.mrb[21].mxu1 }
 0x199   :  { %v3480_v6 = vpop.f32.mrb[23].mxu0  ;;  %v3500_v8 = vadd.f32 %v3499_v5, %v3498_v2  ;;  %v3501_v9 = vpop.f32.mrb[22].mxu1 }
 0x19a   :  { %v2749_v7 = vadd.f32 %v3478_v3, %v2709_v63  ;;  %v3502_v10 = vpop.f32.mrb[23].mxu1 }
 0x19c   :  { %v2789_v11 = vadd.f32 %v3500_v8, %v2749_v7 }
 0x1b6   :  { %v3520_v12 = vpop.f32.mrb[24].mxu0 }
 0x1b7   :  { %v3521_v13 = vpop.f32.mrb[25].mxu0  ;;  %v3542_v14 = vpop.f32.mrb[24].mxu1 }
 0x1b8   :  { %v3522_v15 = vadd.f32 %v3521_v13, %v3520_v12  ;;  %v3523_v16 = vpop.f32.mrb[26].mxu0  ;;  %v3543_v17 = vpop.f32.mrb[25].mxu1 }
 0x1b9   :  { %v3524_v18 = vpop.f32.mrb[27].mxu0  ;;  %v3544_v20 = vadd.f32 %v3543_v17, %v3542_v14  ;;  %v3545_v21 = vpop.f32.mrb[26].mxu1 }
 0x1ba   :  { %v2829_v19 = vadd.f32 %v3522_v15, %v2789_v11  ;;  %v3546_v22 = vpop.f32.mrb[27].mxu1 }
 0x1bc   :  { %v2869_v35 = vadd.f32 %v3544_v20, %v2829_v19 }
 0x1d6   :  { %v3564_v23 = vpop.f32.mrb[28].mxu0 }
 0x1d7   :  { %v3565_v24 = vpop.f32.mrb[29].mxu0  ;;  %v3586_v25 = vpop.f32.mrb[28].mxu1 }
 0x1d8   :  { %v3566_v26 = vadd.f32 %v3565_v24, %v3564_v23  ;;  %v3567_v27 = vpop.f32.mrb[30].mxu0  ;;  %v3587_v28 = vpop.f32.mrb[29].mxu1 }
 0x1d9   :  { %v3568_v29 = vpop.f32.mrb[31].mxu0  ;;  %v3588_v31 = vadd.f32 %v3587_v28, %v3586_v25  ;;  %v3589_v32 = vpop.f32.mrb[30].mxu1 }
 0x1da   :  { %v2909_v30 = vadd.f32 %v3566_v26, %v2869_v35  ;;  %v3590_v33 = vpop.f32.mrb[31].mxu1 }
 0x1dc   :  { %v2949_v34 = vadd.f32 %v3588_v31, %v2909_v30 }
 0x1de   :  { %v2954_v37 = vmax.f32 %v2949_v34, 0.0 }
 0x1e0   :  { %v2962_v38 = vmul.f32 %v3238_v36, %v2954_v37 }
 0x1e2   :  { %v2964_v39 = vsel %vm2963_vm0, %v2962_v38, 0.0 }
 0x1e3   :  { %2965 = vadd.xlane.f32.xlu0 %v2964_v39 }
 0x270   :  { %v2966_v41 = vpop.xlane.xlu0 %2965 }
 0x271   :  { %v2974_v42 = vadd.f32 %v3239_v40, %v2966_v41 }
 0x273   :  { %2976 = vst.msk [vmem:[%s4727_s5] sm:$0x3] %vm2975_vm1, %v2974_v42 }

</bundles_post_ra>
